<compile_context>
chip_gen: v7x
topology: tpu7x:2x2x1
jax: 0.10.0
libtpu: 0.0.40
codegen_flags: <defaults>
</compile_context>

<pallas_src>
import functools

import numpy as np

import jax
import jax.numpy as jnp
from jax.experimental import pallas as pl
from jax.experimental.pallas import tpu as pltpu


def _spatial_attention_kernel(w_ref, m_ref, x_ref, o_ref, sum_ref, max_ref,
                              *, H, W, K, P, Bb, C):
    # w_ref   : SMEM (2*K*K,)       flattened conv weight (channel 0=avg, 1=max)
    # m_ref   : VMEM (2*K, HW)      host-precomputed edge masks (rows, then cols)
    # x_ref   : VMEM (Bb, Ct, HW)   batch x channel block, lane-dense spatial dim
    # o_ref   : VMEM (Bb, HW)       attention map block (written on last C step)
    # sum_ref : VMEM (Bb, HW) f32   running channel sum
    # max_ref : VMEM (Bb, HW) f32   running channel max
    HW = H * W
    c_idx = pl.program_id(1)
    nc = pl.num_programs(1)
    Ct = x_ref.shape[1]

    # ---- Channel-block reduction (chunked: no full-block f32 copy). ----------
    CH = 8 if Ct % 8 == 0 else Ct
    part_sum = jnp.zeros((Bb, HW), jnp.float32)
    part_max = jnp.full((Bb, HW), -jnp.inf, dtype=x_ref.dtype)  # stays bf16-narrow
    for cc in range(Ct // CH):
        xc = x_ref[:, cc * CH:(cc + 1) * CH, :]                 # (Bb, CH, HW)
        part_sum = part_sum + jnp.sum(xc.astype(jnp.float32), axis=1)
        part_max = jnp.maximum(part_max, jnp.max(xc, axis=1))
    part_maxf = part_max.astype(jnp.float32)

    @pl.when(c_idx == 0)
    def _():
        sum_ref[...] = part_sum
        max_ref[...] = part_maxf

    @pl.when(c_idx > 0)
    def _():
        sum_ref[...] = sum_ref[...] + part_sum
        max_ref[...] = jnp.maximum(max_ref[...], part_maxf)

    # ---- K x K SAME conv (roll + mask) + sigmoid, only on the last C step. ---
    @pl.when(c_idx == nc - 1)
    def _():
        avg = sum_ref[...] * (1.0 / C)                          # (Bb, HW)
        mx = max_ref[...]                                       # (Bb, HW)
        # Pack avg/max along sublanes -> one roll per tap instead of two.
        am = jnp.concatenate([avg, mx], axis=0)                 # (2*Bb, HW)

        masks = m_ref[...]                                      # (2K, HW)
        y_ok = [masks[k:k + 1, :] for k in range(K)]            # batch-invariant
        x_ok = [masks[K + k:K + k + 1, :] for k in range(K)]    # (1, HW) rows
        w = [w_ref[i] for i in range(2 * K * K)]                # hoisted SMEM reads

        acc = jnp.zeros((Bb, HW), jnp.float32)
        for ky in range(K):
            dy = ky - P
            row = jnp.zeros((Bb, HW), jnp.float32)
            for kx in range(K):
                dx = kx - P
                shift = (-(dy * W + dx)) % HW
                r = am if shift == 0 else pltpu.roll(am, shift, axis=1)
                r_avg, r_max = r[:Bb, :], r[Bb:, :]
                tap = w[ky * K + kx] * r_avg + w[K * K + ky * K + kx] * r_max
                row = row + x_ok[kx] * tap
            acc = acc + y_ok[ky] * row

        # NOTE: wrapped roll values are zeroed by the masks; this matches true
        # zero padding for finite activations (0 * inf would give NaN).
        o_ref[...] = jax.nn.sigmoid(acc).astype(o_ref.dtype)


def _edge_masks(H, W, K, P):
    """Exact SAME-padding validity masks, (2K, H*W) f32: K row masks + K col masks."""
    ys = np.arange(H).reshape(H, 1)
    xs = np.arange(W).reshape(1, W)
    m = np.zeros((2 * K, H * W), np.float32)
    for k in range(K):
        d = k - P
        ym = ((ys + d >= 0) & (ys + d < H)).astype(np.float32)
        xm = ((xs + d >= 0) & (xs + d < W)).astype(np.float32)
        m[k] = np.broadcast_to(ym, (H, W)).reshape(-1)
        m[K + k] = np.broadcast_to(xm, (H, W)).reshape(-1)
    return jnp.asarray(m)


def _pick_blocks(B, C, HW, K, in_itemsize, budget_bytes=12 << 20):
    """Pick (Bb, Ct, est_vmem_bytes) under a per-generation-safe VMEM budget.

    Rules: Bb == B or Bb % 8 == 0 (keeps the 2-D (Bb, HW) output block
    sublane-aligned); prefer >=2 (even, for v7x's 2 TCs) batch grid steps;
    Ct == C or Ct % 8 == 0 and sized so the double-buffered input block plus
    fixed overheads fit `budget_bytes` (fits v5e's 16 MiB scoped default too).
    """
    def divisors_desc(n):
        return [d for d in range(n, 0, -1) if n % d == 0]

    b_cands = [d for d in divisors_desc(B)
               if d == B or (d % 8 == 0 and d <= 64)]
    if not b_cands:
        b_cands = [B]

    def rank(Bb):
        nb = B // Bb
        tier = 0 if (nb >= 2 and nb % 2 == 0) else (1 if nb >= 2 else 2)
        return (tier, -Bb)
    b_cands.sort(key=rank)

    def ct_options(cap):
        return [d for d in divisors_desc(C)
                if d <= cap and (d == C or d % 8 == 0)]

    for Bb in b_cands:
        fixed = 4 * (2 * Bb * HW      # double-buffered f32 output block
                     + 2 * Bb * HW    # f32 sum/max scratch
                     + 2 * 2 * K * HW)  # double-buffered edge masks
        per_c = 2 * Bb * HW * in_itemsize   # double-buffered input, per channel
        cap = min(128, max(0, (budget_bytes - fixed) // per_c))
        opts = ct_options(cap)
        if opts:
            Ct = opts[0]
            return Bb, Ct, fixed + per_c * Ct
    # Fallback: smallest valid blocks even if over budget.
    Bb = b_cands[-1]
    Ct = ct_options(C)[-1]
    est = 4 * (4 * Bb * HW + 4 * K * HW) + 2 * Bb * Ct * HW * in_itemsize
    return Bb, Ct, est


def spatial_attention(x, weight, *, kernel_size=7):
    """x: (B, C, H, W), weight: (1, 2, K, K) -> (B, 1, H, W) f32 attention map."""
    assert kernel_size in (3, 7), "kernel size must be 3 or 7"
    B, C, H, W = x.shape
    K = kernel_size
    P = 3 if K == 7 else 1
    HW = H * W

    Bb, Ct, est_bytes = _pick_blocks(B, C, HW, K, x.dtype.itemsize)
    nb, nc = B // Bb, C // Ct
    vmem_limit = int(min(max(2 * est_bytes, 32 << 20), 60 << 20))

    x_flat = x.reshape(B, C, HW)                        # lane-dense last dim
    w_flat = weight.reshape(-1).astype(jnp.float32)     # (2*K*K,) -> SMEM
    masks = _edge_masks(H, W, K, P)                     # (2K, HW) f32, exact

    kernel = functools.partial(
        _spatial_attention_kernel, H=H, W=W, K=K, P=P, Bb=Bb, C=C)

    out_flat = pl.pallas_call(
        kernel,
        out_shape=jax.ShapeDtypeStruct((B, HW), jnp.float32),
        grid_spec=pltpu.PrefetchScalarGridSpec(
            num_scalar_prefetch=0,
            grid=(nb, nc),                                      # reduction axis last
            in_specs=[
                pl.BlockSpec(memory_space=pltpu.SMEM),          # conv weights
                pl.BlockSpec((2 * K, HW), lambda b, c: (0, 0)),  # edge masks
                pl.BlockSpec((Bb, Ct, HW), lambda b, c: (b, c, 0)),  # x block
            ],
            out_specs=pl.BlockSpec((Bb, HW), lambda b, c: (b, 0)),
            scratch_shapes=[pltpu.VMEM((Bb, HW), jnp.float32),   # running sum
                            pltpu.VMEM((Bb, HW), jnp.float32)],  # running max
        ),
        compiler_params=pltpu.CompilerParams(
            dimension_semantics=("parallel", "arbitrary"),
            vmem_limit_bytes=vmem_limit),
    )(w_flat, masks, x_flat)

    return out_flat.reshape(B, 1, H, W)


def _reference(x, weight):
    """Pure-JAX reference mirroring the PyTorch forward."""
    avg_out = jnp.mean(x, axis=1, keepdims=True)
    max_out = jnp.max(x, axis=1, keepdims=True)
    cat = jnp.concatenate([avg_out, max_out], axis=1)   # (B, 2, H, W)
    out = jax.lax.conv_general_dilated(
        cat, weight, window_strides=(1, 1), padding="SAME",
        dimension_numbers=("NCHW", "OIHW", "NCHW"))
    return jax.nn.sigmoid(out)


if __name__ == "__main__":
    key = jax.random.PRNGKey(0)
    kx, kw = jax.random.split(key)

    B, C, H, W = 2, 4, 16, 16
    kernel_size = 7

    x = jax.random.normal(kx, (B, C, H, W), dtype=jnp.float32)
    # Deterministic synthetic conv weight (PyTorch shape: (out=1, in=2, K, K)).
    weight = 0.1 * jax.random.normal(kw, (1, 2, kernel_size, kernel_size),
                                     dtype=jnp.float32)

    out = spatial_attention(x, weight, kernel_size=kernel_size)
    out = jax.block_until_ready(out)

    ref = jax.block_until_ready(_reference(x, weight))
    assert out.shape == (B, 1, H, W)
    assert jnp.max(jnp.abs(out - ref)) < 1e-4, "mismatch vs pure-JAX reference"

    print("KERNEL_OK")
</pallas_src>

<mosaic_0001>
module attributes {stable_mosaic.version = 11 : i64} {
  func.func @_spatial_attention_kernel(%arg0: i32, %arg1: i32, %arg2: memref<98xf32, #tpu.memory_space<smem>>, %arg3: memref<14x256xf32, #tpu.memory_space<vmem>>, %arg4: memref<2x4x256xf32, #tpu.memory_space<vmem>>, %arg5: memref<2x256xf32, #tpu.memory_space<vmem>>, %arg6: memref<2x256xf32, #tpu.memory_space<vmem>>, %arg7: memref<2x256xf32, #tpu.memory_space<vmem>>) attributes {dimension_semantics = [#tpu.dimension_semantics<parallel>, #tpu.dimension_semantics<arbitrary>], iteration_bounds = array<i64: 1, 1>, scalar_prefetch = 0 : i64, scratch_operands = 2 : i64, tpu.core_type = #tpu.core_type<tc>, window_params = [{transform_indices = @transform_0, window_bounds = array<i64: 98>}, {pipeline_mode = #tpu.pipeline_mode<synchronous>, transform_indices = @transform_1, window_bounds = array<i64: 14, 256>}, {transform_indices = @transform_2, window_bounds = array<i64: 2, 4, 256>}, {transform_indices = @transform_3, window_bounds = array<i64: 2, 256>}]} {
    %cst = arith.constant 0.000000e+00 : f32
    %0 = vector.broadcast %cst : f32 to vector<2x256xf32>
    %cst_0 = arith.constant 0xFF800000 : f32
    %1 = vector.broadcast %cst_0 : f32 to vector<2x256xf32>
    %c0 = arith.constant 0 : index
    %c0_1 = arith.constant 0 : index
    %c0_2 = arith.constant 0 : index
    %2 = vector.load %arg4[%c0, %c0_1, %c0_2] : memref<2x4x256xf32, #tpu.memory_space<vmem>>, vector<2x4x256xf32>
    %cst_3 = arith.constant dense<0.000000e+00> : vector<2x256xf32>
    %3 = vector.multi_reduction <add>, %2, %cst_3 [1] : vector<2x4x256xf32> to vector<2x256xf32>
    %4 = arith.addf %0, %3 : vector<2x256xf32>
    %cst_4 = arith.constant dense<0xFF800000> : vector<2x256xf32>
    %5 = vector.multi_reduction <maximumf>, %2, %cst_4 [1] : vector<2x4x256xf32> to vector<2x256xf32>
    %6 = arith.maximumf %1, %5 : vector<2x256xf32>
    %c0_i32 = arith.constant 0 : i32
    %7 = arith.cmpi eq, %arg1, %c0_i32 : i32
    %8 = arith.extui %7 : i1 to i32
    %c0_i32_5 = arith.constant 0 : i32
    %9 = arith.cmpi ne, %8, %c0_i32_5 : i32
    scf.if %9 {
      %c0_10 = arith.constant 0 : index
      %c0_11 = arith.constant 0 : index
      %16 = vector.load %arg6[%c0_10, %c0_11] : memref<2x256xf32, #tpu.memory_space<vmem>>, vector<2x256xf32>
      tpu.vector_store %arg6[%c0_10, %c0_11], %4 {strides = array<i32>} : memref<2x256xf32, #tpu.memory_space<vmem>>, vector<2x256xf32>,
      %c0_12 = arith.constant 0 : index
      %c0_13 = arith.constant 0 : index
      %17 = vector.load %arg7[%c0_12, %c0_13] : memref<2x256xf32, #tpu.memory_space<vmem>>, vector<2x256xf32>
      tpu.vector_store %arg7[%c0_12, %c0_13], %6 {strides = array<i32>} : memref<2x256xf32, #tpu.memory_space<vmem>>, vector<2x256xf32>,
    } else {
    }
    %c0_i32_6 = arith.constant 0 : i32
    %10 = arith.cmpi sgt, %arg1, %c0_i32_6 : i32
    %11 = arith.extui %10 : i1 to i32
    %c0_i32_7 = arith.constant 0 : i32
    %12 = arith.cmpi ne, %11, %c0_i32_7 : i32
    scf.if %12 {
      %c0_10 = arith.constant 0 : index
      %c0_11 = arith.constant 0 : index
      %16 = vector.load %arg6[%c0_10, %c0_11] : memref<2x256xf32, #tpu.memory_space<vmem>>, vector<2x256xf32>
      %17 = arith.addf %16, %4 : vector<2x256xf32>
      %c0_12 = arith.constant 0 : index
      %c0_13 = arith.constant 0 : index
      %18 = vector.load %arg6[%c0_12, %c0_13] : memref<2x256xf32, #tpu.memory_space<vmem>>, vector<2x256xf32>
      tpu.vector_store %arg6[%c0_12, %c0_13], %17 {strides = array<i32>} : memref<2x256xf32, #tpu.memory_space<vmem>>, vector<2x256xf32>,
      %c0_14 = arith.constant 0 : index
      %c0_15 = arith.constant 0 : index
      %19 = vector.load %arg7[%c0_14, %c0_15] : memref<2x256xf32, #tpu.memory_space<vmem>>, vector<2x256xf32>
      %20 = arith.maximumf %19, %6 : vector<2x256xf32>
      %c0_16 = arith.constant 0 : index
      %c0_17 = arith.constant 0 : index
      %21 = vector.load %arg7[%c0_16, %c0_17] : memref<2x256xf32, #tpu.memory_space<vmem>>, vector<2x256xf32>
      tpu.vector_store %arg7[%c0_16, %c0_17], %20 {strides = array<i32>} : memref<2x256xf32, #tpu.memory_space<vmem>>, vector<2x256xf32>,
    } else {
    }
    %c0_i32_8 = arith.constant 0 : i32
    %13 = arith.cmpi eq, %arg1, %c0_i32_8 : i32
    %14 = arith.extui %13 : i1 to i32
    %c0_i32_9 = arith.constant 0 : i32
    %15 = arith.cmpi ne, %14, %c0_i32_9 : i32
    scf.if %15 {
      %c0_10 = arith.constant 0 : index
      %c0_11 = arith.constant 0 : index
      %16 = vector.load %arg6[%c0_10, %c0_11] : memref<2x256xf32, #tpu.memory_space<vmem>>, vector<2x256xf32>
      %cst_12 = arith.constant 2.500000e-01 : f32
      %17 = vector.broadcast %cst_12 : f32 to vector<2x256xf32>
      %18 = arith.mulf %16, %17 : vector<2x256xf32>
      %c0_13 = arith.constant 0 : index
      %c0_14 = arith.constant 0 : index
      %19 = vector.load %arg7[%c0_13, %c0_14] : memref<2x256xf32, #tpu.memory_space<vmem>>, vector<2x256xf32>
      %20 = tpu.concatenate %18, %19 in 0 : vector<2x256xf32>, vector<2x256xf32> -> vector<4x256xf32>
      %c0_15 = arith.constant 0 : index
      %c0_16 = arith.constant 0 : index
      %21 = vector.load %arg3[%c0_15, %c0_16] : memref<14x256xf32, #tpu.memory_space<vmem>>, vector<14x256xf32>
      %22 = vector.extract_strided_slice %21 {offsets = [0, 0], sizes = [1, 256], strides = [1, 1]} : vector<14x256xf32> to vector<1x256xf32>
      %23 = vector.extract_strided_slice %21 {offsets = [1, 0], sizes = [1, 256], strides = [1, 1]} : vector<14x256xf32> to vector<1x256xf32>
      %24 = vector.extract_strided_slice %21 {offsets = [2, 0], sizes = [1, 256], strides = [1, 1]} : vector<14x256xf32> to vector<1x256xf32>
      %25 = vector.extract_strided_slice %21 {offsets = [3, 0], sizes = [1, 256], strides = [1, 1]} : vector<14x256xf32> to vector<1x256xf32>
      %26 = vector.extract_strided_slice %21 {offsets = [4, 0], sizes = [1, 256], strides = [1, 1]} : vector<14x256xf32> to vector<1x256xf32>
      %27 = vector.extract_strided_slice %21 {offsets = [5, 0], sizes = [1, 256], strides = [1, 1]} : vector<14x256xf32> to vector<1x256xf32>
      %28 = vector.extract_strided_slice %21 {offsets = [6, 0], sizes = [1, 256], strides = [1, 1]} : vector<14x256xf32> to vector<1x256xf32>
      %29 = vector.extract_strided_slice %21 {offsets = [7, 0], sizes = [1, 256], strides = [1, 1]} : vector<14x256xf32> to vector<1x256xf32>
      %30 = vector.extract_strided_slice %21 {offsets = [8, 0], sizes = [1, 256], strides = [1, 1]} : vector<14x256xf32> to vector<1x256xf32>
      %31 = vector.extract_strided_slice %21 {offsets = [9, 0], sizes = [1, 256], strides = [1, 1]} : vector<14x256xf32> to vector<1x256xf32>
      %32 = vector.extract_strided_slice %21 {offsets = [10, 0], sizes = [1, 256], strides = [1, 1]} : vector<14x256xf32> to vector<1x256xf32>
      %33 = vector.extract_strided_slice %21 {offsets = [11, 0], sizes = [1, 256], strides = [1, 1]} : vector<14x256xf32> to vector<1x256xf32>
      %34 = vector.extract_strided_slice %21 {offsets = [12, 0], sizes = [1, 256], strides = [1, 1]} : vector<14x256xf32> to vector<1x256xf32>
      %35 = vector.extract_strided_slice %21 {offsets = [13, 0], sizes = [1, 256], strides = [1, 1]} : vector<14x256xf32> to vector<1x256xf32>
      %c0_17 = arith.constant 0 : index
      %36 = memref.load %arg2[%c0_17] : memref<98xf32, #tpu.memory_space<smem>>
      %c1 = arith.constant 1 : index
      %37 = memref.load %arg2[%c1] : memref<98xf32, #tpu.memory_space<smem>>
      %c2 = arith.constant 2 : index
      %38 = memref.load %arg2[%c2] : memref<98xf32, #tpu.memory_space<smem>>
      %c3 = arith.constant 3 : index
      %39 = memref.load %arg2[%c3] : memref<98xf32, #tpu.memory_space<smem>>
      %c4 = arith.constant 4 : index
      %40 = memref.load %arg2[%c4] : memref<98xf32, #tpu.memory_space<smem>>
      %c5 = arith.constant 5 : index
      %41 = memref.load %arg2[%c5] : memref<98xf32, #tpu.memory_space<smem>>
      %c6 = arith.constant 6 : index
      %42 = memref.load %arg2[%c6] : memref<98xf32, #tpu.memory_space<smem>>
      %c7 = arith.constant 7 : index
      %43 = memref.load %arg2[%c7] : memref<98xf32, #tpu.memory_space<smem>>
      %c8 = arith.constant 8 : index
      %44 = memref.load %arg2[%c8] : memref<98xf32, #tpu.memory_space<smem>>
      %c9 = arith.constant 9 : index
      %45 = memref.load %arg2[%c9] : memref<98xf32, #tpu.memory_space<smem>>
      %c10 = arith.constant 10 : index
      %46 = memref.load %arg2[%c10] : memref<98xf32, #tpu.memory_space<smem>>
      %c11 = arith.constant 11 : index
      %47 = memref.load %arg2[%c11] : memref<98xf32, #tpu.memory_space<smem>>
      %c12 = arith.constant 12 : index
      %48 = memref.load %arg2[%c12] : memref<98xf32, #tpu.memory_space<smem>>
      %c13 = arith.constant 13 : index
      %49 = memref.load %arg2[%c13] : memref<98xf32, #tpu.memory_space<smem>>
      %c14 = arith.constant 14 : index
      %50 = memref.load %arg2[%c14] : memref<98xf32, #tpu.memory_space<smem>>
      %c15 = arith.constant 15 : index
      %51 = memref.load %arg2[%c15] : memref<98xf32, #tpu.memory_space<smem>>
      %c16 = arith.constant 16 : index
      %52 = memref.load %arg2[%c16] : memref<98xf32, #tpu.memory_space<smem>>
      %c17 = arith.constant 17 : index
      %53 = memref.load %arg2[%c17] : memref<98xf32, #tpu.memory_space<smem>>
      %c18 = arith.constant 18 : index
      %54 = memref.load %arg2[%c18] : memref<98xf32, #tpu.memory_space<smem>>
      %c19 = arith.constant 19 : index
      %55 = memref.load %arg2[%c19] : memref<98xf32, #tpu.memory_space<smem>>
      %c20 = arith.constant 20 : index
      %56 = memref.load %arg2[%c20] : memref<98xf32, #tpu.memory_space<smem>>
      %c21 = arith.constant 21 : index
      %57 = memref.load %arg2[%c21] : memref<98xf32, #tpu.memory_space<smem>>
      %c22 = arith.constant 22 : index
      %58 = memref.load %arg2[%c22] : memref<98xf32, #tpu.memory_space<smem>>
      %c23 = arith.constant 23 : index
      %59 = memref.load %arg2[%c23] : memref<98xf32, #tpu.memory_space<smem>>
      %c24 = arith.constant 24 : index
      %60 = memref.load %arg2[%c24] : memref<98xf32, #tpu.memory_space<smem>>
      %c25 = arith.constant 25 : index
      %61 = memref.load %arg2[%c25] : memref<98xf32, #tpu.memory_space<smem>>
      %c26 = arith.constant 26 : index
      %62 = memref.load %arg2[%c26] : memref<98xf32, #tpu.memory_space<smem>>
      %c27 = arith.constant 27 : index
      %63 = memref.load %arg2[%c27] : memref<98xf32, #tpu.memory_space<smem>>
      %c28 = arith.constant 28 : index
      %64 = memref.load %arg2[%c28] : memref<98xf32, #tpu.memory_space<smem>>
      %c29 = arith.constant 29 : index
      %65 = memref.load %arg2[%c29] : memref<98xf32, #tpu.memory_space<smem>>
      %c30 = arith.constant 30 : index
      %66 = memref.load %arg2[%c30] : memref<98xf32, #tpu.memory_space<smem>>
      %c31 = arith.constant 31 : index
      %67 = memref.load %arg2[%c31] : memref<98xf32, #tpu.memory_space<smem>>
      %c32 = arith.constant 32 : index
      %68 = memref.load %arg2[%c32] : memref<98xf32, #tpu.memory_space<smem>>
      %c33 = arith.constant 33 : index
      %69 = memref.load %arg2[%c33] : memref<98xf32, #tpu.memory_space<smem>>
      %c34 = arith.constant 34 : index
      %70 = memref.load %arg2[%c34] : memref<98xf32, #tpu.memory_space<smem>>
      %c35 = arith.constant 35 : index
      %71 = memref.load %arg2[%c35] : memref<98xf32, #tpu.memory_space<smem>>
      %c36 = arith.constant 36 : index
      %72 = memref.load %arg2[%c36] : memref<98xf32, #tpu.memory_space<smem>>
      %c37 = arith.constant 37 : index
      %73 = memref.load %arg2[%c37] : memref<98xf32, #tpu.memory_space<smem>>
      %c38 = arith.constant 38 : index
      %74 = memref.load %arg2[%c38] : memref<98xf32, #tpu.memory_space<smem>>
      %c39 = arith.constant 39 : index
      %75 = memref.load %arg2[%c39] : memref<98xf32, #tpu.memory_space<smem>>
      %c40 = arith.constant 40 : index
      %76 = memref.load %arg2[%c40] : memref<98xf32, #tpu.memory_space<smem>>
      %c41 = arith.constant 41 : index
      %77 = memref.load %arg2[%c41] : memref<98xf32, #tpu.memory_space<smem>>
      %c42 = arith.constant 42 : index
      %78 = memref.load %arg2[%c42] : memref<98xf32, #tpu.memory_space<smem>>
      %c43 = arith.constant 43 : index
      %79 = memref.load %arg2[%c43] : memref<98xf32, #tpu.memory_space<smem>>
      %c44 = arith.constant 44 : index
      %80 = memref.load %arg2[%c44] : memref<98xf32, #tpu.memory_space<smem>>
      %c45 = arith.constant 45 : index
      %81 = memref.load %arg2[%c45] : memref<98xf32, #tpu.memory_space<smem>>
      %c46 = arith.constant 46 : index
      %82 = memref.load %arg2[%c46] : memref<98xf32, #tpu.memory_space<smem>>
      %c47 = arith.constant 47 : index
      %83 = memref.load %arg2[%c47] : memref<98xf32, #tpu.memory_space<smem>>
      %c48 = arith.constant 48 : index
      %84 = memref.load %arg2[%c48] : memref<98xf32, #tpu.memory_space<smem>>
      %c49 = arith.constant 49 : index
      %85 = memref.load %arg2[%c49] : memref<98xf32, #tpu.memory_space<smem>>
      %c50 = arith.constant 50 : index
      %86 = memref.load %arg2[%c50] : memref<98xf32, #tpu.memory_space<smem>>
      %c51 = arith.constant 51 : index
      %87 = memref.load %arg2[%c51] : memref<98xf32, #tpu.memory_space<smem>>
      %c52 = arith.constant 52 : index
      %88 = memref.load %arg2[%c52] : memref<98xf32, #tpu.memory_space<smem>>
      %c53 = arith.constant 53 : index
      %89 = memref.load %arg2[%c53] : memref<98xf32, #tpu.memory_space<smem>>
      %c54 = arith.constant 54 : index
      %90 = memref.load %arg2[%c54] : memref<98xf32, #tpu.memory_space<smem>>
      %c55 = arith.constant 55 : index
      %91 = memref.load %arg2[%c55] : memref<98xf32, #tpu.memory_space<smem>>
      %c56 = arith.constant 56 : index
      %92 = memref.load %arg2[%c56] : memref<98xf32, #tpu.memory_space<smem>>
      %c57 = arith.constant 57 : index
      %93 = memref.load %arg2[%c57] : memref<98xf32, #tpu.memory_space<smem>>
      %c58 = arith.constant 58 : index
      %94 = memref.load %arg2[%c58] : memref<98xf32, #tpu.memory_space<smem>>
      %c59 = arith.constant 59 : index
      %95 = memref.load %arg2[%c59] : memref<98xf32, #tpu.memory_space<smem>>
      %c60 = arith.constant 60 : index
      %96 = memref.load %arg2[%c60] : memref<98xf32, #tpu.memory_space<smem>>
      %c61 = arith.constant 61 : index
      %97 = memref.load %arg2[%c61] : memref<98xf32, #tpu.memory_space<smem>>
      %c62 = arith.constant 62 : index
      %98 = memref.load %arg2[%c62] : memref<98xf32, #tpu.memory_space<smem>>
      %c63 = arith.constant 63 : index
      %99 = memref.load %arg2[%c63] : memref<98xf32, #tpu.memory_space<smem>>
      %c64 = arith.constant 64 : index
      %100 = memref.load %arg2[%c64] : memref<98xf32, #tpu.memory_space<smem>>
      %c65 = arith.constant 65 : index
      %101 = memref.load %arg2[%c65] : memref<98xf32, #tpu.memory_space<smem>>
      %c66 = arith.constant 66 : index
      %102 = memref.load %arg2[%c66] : memref<98xf32, #tpu.memory_space<smem>>
      %c67 = arith.constant 67 : index
      %103 = memref.load %arg2[%c67] : memref<98xf32, #tpu.memory_space<smem>>
      %c68 = arith.constant 68 : index
      %104 = memref.load %arg2[%c68] : memref<98xf32, #tpu.memory_space<smem>>
      %c69 = arith.constant 69 : index
      %105 = memref.load %arg2[%c69] : memref<98xf32, #tpu.memory_space<smem>>
      %c70 = arith.constant 70 : index
      %106 = memref.load %arg2[%c70] : memref<98xf32, #tpu.memory_space<smem>>
      %c71 = arith.constant 71 : index
      %107 = memref.load %arg2[%c71] : memref<98xf32, #tpu.memory_space<smem>>
      %c72 = arith.constant 72 : index
      %108 = memref.load %arg2[%c72] : memref<98xf32, #tpu.memory_space<smem>>
      %c73 = arith.constant 73 : index
      %109 = memref.load %arg2[%c73] : memref<98xf32, #tpu.memory_space<smem>>
      %c74 = arith.constant 74 : index
      %110 = memref.load %arg2[%c74] : memref<98xf32, #tpu.memory_space<smem>>
      %c75 = arith.constant 75 : index
      %111 = memref.load %arg2[%c75] : memref<98xf32, #tpu.memory_space<smem>>
      %c76 = arith.constant 76 : index
      %112 = memref.load %arg2[%c76] : memref<98xf32, #tpu.memory_space<smem>>
      %c77 = arith.constant 77 : index
      %113 = memref.load %arg2[%c77] : memref<98xf32, #tpu.memory_space<smem>>
      %c78 = arith.constant 78 : index
      %114 = memref.load %arg2[%c78] : memref<98xf32, #tpu.memory_space<smem>>
      %c79 = arith.constant 79 : index
      %115 = memref.load %arg2[%c79] : memref<98xf32, #tpu.memory_space<smem>>
      %c80 = arith.constant 80 : index
      %116 = memref.load %arg2[%c80] : memref<98xf32, #tpu.memory_space<smem>>
      %c81 = arith.constant 81 : index
      %117 = memref.load %arg2[%c81] : memref<98xf32, #tpu.memory_space<smem>>
      %c82 = arith.constant 82 : index
      %118 = memref.load %arg2[%c82] : memref<98xf32, #tpu.memory_space<smem>>
      %c83 = arith.constant 83 : index
      %119 = memref.load %arg2[%c83] : memref<98xf32, #tpu.memory_space<smem>>
      %c84 = arith.constant 84 : index
      %120 = memref.load %arg2[%c84] : memref<98xf32, #tpu.memory_space<smem>>
      %c85 = arith.constant 85 : index
      %121 = memref.load %arg2[%c85] : memref<98xf32, #tpu.memory_space<smem>>
      %c86 = arith.constant 86 : index
      %122 = memref.load %arg2[%c86] : memref<98xf32, #tpu.memory_space<smem>>
      %c87 = arith.constant 87 : index
      %123 = memref.load %arg2[%c87] : memref<98xf32, #tpu.memory_space<smem>>
      %c88 = arith.constant 88 : index
      %124 = memref.load %arg2[%c88] : memref<98xf32, #tpu.memory_space<smem>>
      %c89 = arith.constant 89 : index
      %125 = memref.load %arg2[%c89] : memref<98xf32, #tpu.memory_space<smem>>
      %c90 = arith.constant 90 : index
      %126 = memref.load %arg2[%c90] : memref<98xf32, #tpu.memory_space<smem>>
      %c91 = arith.constant 91 : index
      %127 = memref.load %arg2[%c91] : memref<98xf32, #tpu.memory_space<smem>>
      %c92 = arith.constant 92 : index
      %128 = memref.load %arg2[%c92] : memref<98xf32, #tpu.memory_space<smem>>
      %c93 = arith.constant 93 : index
      %129 = memref.load %arg2[%c93] : memref<98xf32, #tpu.memory_space<smem>>
      %c94 = arith.constant 94 : index
      %130 = memref.load %arg2[%c94] : memref<98xf32, #tpu.memory_space<smem>>
      %c95 = arith.constant 95 : index
      %131 = memref.load %arg2[%c95] : memref<98xf32, #tpu.memory_space<smem>>
      %c96 = arith.constant 96 : index
      %132 = memref.load %arg2[%c96] : memref<98xf32, #tpu.memory_space<smem>>
      %c97 = arith.constant 97 : index
      %133 = memref.load %arg2[%c97] : memref<98xf32, #tpu.memory_space<smem>>
      %cst_18 = arith.constant 0.000000e+00 : f32
      %134 = vector.broadcast %cst_18 : f32 to vector<2x256xf32>
      %cst_19 = arith.constant 0.000000e+00 : f32
      %135 = vector.broadcast %cst_19 : f32 to vector<2x256xf32>
      %c51_i32 = arith.constant 51 : i32
      %136 = tpu.dynamic_rotate %20 by %c51_i32 dim 1 : vector<4x256xf32>, i32 -> vector<4x256xf32>
      %137 = vector.extract_strided_slice %136 {offsets = [0, 0], sizes = [2, 256], strides = [1, 1]} : vector<4x256xf32> to vector<2x256xf32>
      %138 = vector.extract_strided_slice %136 {offsets = [2, 0], sizes = [2, 256], strides = [1, 1]} : vector<4x256xf32> to vector<2x256xf32>
      %139 = vector.broadcast %36 : f32 to vector<2x256xf32>
      %140 = arith.mulf %139, %137 : vector<2x256xf32>
      %141 = vector.broadcast %85 : f32 to vector<2x256xf32>
      %142 = arith.mulf %141, %138 : vector<2x256xf32>
      %143 = arith.addf %140, %142 : vector<2x256xf32>
      %144 = vector.broadcast %29 : vector<1x256xf32> to vector<2x256xf32>
      %145 = arith.mulf %144, %143 : vector<2x256xf32>
      %146 = arith.addf %135, %145 : vector<2x256xf32>
      %c50_i32 = arith.constant 50 : i32
      %147 = tpu.dynamic_rotate %20 by %c50_i32 dim 1 : vector<4x256xf32>, i32 -> vector<4x256xf32>
      %148 = vector.extract_strided_slice %147 {offsets = [0, 0], sizes = [2, 256], strides = [1, 1]} : vector<4x256xf32> to vector<2x256xf32>
      %149 = vector.extract_strided_slice %147 {offsets = [2, 0], sizes = [2, 256], strides = [1, 1]} : vector<4x256xf32> to vector<2x256xf32>
      %150 = vector.broadcast %37 : f32 to vector<2x256xf32>
      %151 = arith.mulf %150, %148 : vector<2x256xf32>
      %152 = vector.broadcast %86 : f32 to vector<2x256xf32>
      %153 = arith.mulf %152, %149 : vector<2x256xf32>
      %154 = arith.addf %151, %153 : vector<2x256xf32>
      %155 = vector.broadcast %30 : vector<1x256xf32> to vector<2x256xf32>
      %156 = arith.mulf %155, %154 : vector<2x256xf32>
      %157 = arith.addf %146, %156 : vector<2x256xf32>
      %c49_i32 = arith.constant 49 : i32
      %158 = tpu.dynamic_rotate %20 by %c49_i32 dim 1 : vector<4x256xf32>, i32 -> vector<4x256xf32>
      %159 = vector.extract_strided_slice %158 {offsets = [0, 0], sizes = [2, 256], strides = [1, 1]} : vector<4x256xf32> to vector<2x256xf32>
      %160 = vector.extract_strided_slice %158 {offsets = [2, 0], sizes = [2, 256], strides = [1, 1]} : vector<4x256xf32> to vector<2x256xf32>
      %161 = vector.broadcast %38 : f32 to vector<2x256xf32>
      %162 = arith.mulf %161, %159 : vector<2x256xf32>
      %163 = vector.broadcast %87 : f32 to vector<2x256xf32>
      %164 = arith.mulf %163, %160 : vector<2x256xf32>
      %165 = arith.addf %162, %164 : vector<2x256xf32>
      %166 = vector.broadcast %31 : vector<1x256xf32> to vector<2x256xf32>
      %167 = arith.mulf %166, %165 : vector<2x256xf32>
      %168 = arith.addf %157, %167 : vector<2x256xf32>
      %c48_i32 = arith.constant 48 : i32
      %169 = tpu.dynamic_rotate %20 by %c48_i32 dim 1 : vector<4x256xf32>, i32 -> vector<4x256xf32>
      %170 = vector.extract_strided_slice %169 {offsets = [0, 0], sizes = [2, 256], strides = [1, 1]} : vector<4x256xf32> to vector<2x256xf32>
      %171 = vector.extract_strided_slice %169 {offsets = [2, 0], sizes = [2, 256], strides = [1, 1]} : vector<4x256xf32> to vector<2x256xf32>
      %172 = vector.broadcast %39 : f32 to vector<2x256xf32>
      %173 = arith.mulf %172, %170 : vector<2x256xf32>
      %174 = vector.broadcast %88 : f32 to vector<2x256xf32>
      %175 = arith.mulf %174, %171 : vector<2x256xf32>
      %176 = arith.addf %173, %175 : vector<2x256xf32>
      %177 = vector.broadcast %32 : vector<1x256xf32> to vector<2x256xf32>
      %178 = arith.mulf %177, %176 : vector<2x256xf32>
      %179 = arith.addf %168, %178 : vector<2x256xf32>
      %c47_i32 = arith.constant 47 : i32
      %180 = tpu.dynamic_rotate %20 by %c47_i32 dim 1 : vector<4x256xf32>, i32 -> vector<4x256xf32>
      %181 = vector.extract_strided_slice %180 {offsets = [0, 0], sizes = [2, 256], strides = [1, 1]} : vector<4x256xf32> to vector<2x256xf32>
      %182 = vector.extract_strided_slice %180 {offsets = [2, 0], sizes = [2, 256], strides = [1, 1]} : vector<4x256xf32> to vector<2x256xf32>
      %183 = vector.broadcast %40 : f32 to vector<2x256xf32>
      %184 = arith.mulf %183, %181 : vector<2x256xf32>
      %185 = vector.broadcast %89 : f32 to vector<2x256xf32>
      %186 = arith.mulf %185, %182 : vector<2x256xf32>
      %187 = arith.addf %184, %186 : vector<2x256xf32>
      %188 = vector.broadcast %33 : vector<1x256xf32> to vector<2x256xf32>
      %189 = arith.mulf %188, %187 : vector<2x256xf32>
      %190 = arith.addf %179, %189 : vector<2x256xf32>
      %c46_i32 = arith.constant 46 : i32
      %191 = tpu.dynamic_rotate %20 by %c46_i32 dim 1 : vector<4x256xf32>, i32 -> vector<4x256xf32>
      %192 = vector.extract_strided_slice %191 {offsets = [0, 0], sizes = [2, 256], strides = [1, 1]} : vector<4x256xf32> to vector<2x256xf32>
      %193 = vector.extract_strided_slice %191 {offsets = [2, 0], sizes = [2, 256], strides = [1, 1]} : vector<4x256xf32> to vector<2x256xf32>
      %194 = vector.broadcast %41 : f32 to vector<2x256xf32>
      %195 = arith.mulf %194, %192 : vector<2x256xf32>
      %196 = vector.broadcast %90 : f32 to vector<2x256xf32>
      %197 = arith.mulf %196, %193 : vector<2x256xf32>
      %198 = arith.addf %195, %197 : vector<2x256xf32>
      %199 = vector.broadcast %34 : vector<1x256xf32> to vector<2x256xf32>
      %200 = arith.mulf %199, %198 : vector<2x256xf32>
      %201 = arith.addf %190, %200 : vector<2x256xf32>
      %c45_i32 = arith.constant 45 : i32
      %202 = tpu.dynamic_rotate %20 by %c45_i32 dim 1 : vector<4x256xf32>, i32 -> vector<4x256xf32>
      %203 = vector.extract_strided_slice %202 {offsets = [0, 0], sizes = [2, 256], strides = [1, 1]} : vector<4x256xf32> to vector<2x256xf32>
      %204 = vector.extract_strided_slice %202 {offsets = [2, 0], sizes = [2, 256], strides = [1, 1]} : vector<4x256xf32> to vector<2x256xf32>
      %205 = vector.broadcast %42 : f32 to vector<2x256xf32>
      %206 = arith.mulf %205, %203 : vector<2x256xf32>
      %207 = vector.broadcast %91 : f32 to vector<2x256xf32>
      %208 = arith.mulf %207, %204 : vector<2x256xf32>
      %209 = arith.addf %206, %208 : vector<2x256xf32>
      %210 = vector.broadcast %35 : vector<1x256xf32> to vector<2x256xf32>
      %211 = arith.mulf %210, %209 : vector<2x256xf32>
      %212 = arith.addf %201, %211 : vector<2x256xf32>
      %213 = vector.broadcast %22 : vector<1x256xf32> to vector<2x256xf32>
      %214 = arith.mulf %213, %212 : vector<2x256xf32>
      %215 = arith.addf %134, %214 : vector<2x256xf32>
      %cst_20 = arith.constant 0.000000e+00 : f32
      %216 = vector.broadcast %cst_20 : f32 to vector<2x256xf32>
      %c35_i32 = arith.constant 35 : i32
      %217 = tpu.dynamic_rotate %20 by %c35_i32 dim 1 : vector<4x256xf32>, i32 -> vector<4x256xf32>
      %218 = vector.extract_strided_slice %217 {offsets = [0, 0], sizes = [2, 256], strides = [1, 1]} : vector<4x256xf32> to vector<2x256xf32>
      %219 = vector.extract_strided_slice %217 {offsets = [2, 0], sizes = [2, 256], strides = [1, 1]} : vector<4x256xf32> to vector<2x256xf32>
      %220 = vector.broadcast %43 : f32 to vector<2x256xf32>
      %221 = arith.mulf %220, %218 : vector<2x256xf32>
      %222 = vector.broadcast %92 : f32 to vector<2x256xf32>
      %223 = arith.mulf %222, %219 : vector<2x256xf32>
      %224 = arith.addf %221, %223 : vector<2x256xf32>
      %225 = vector.broadcast %29 : vector<1x256xf32> to vector<2x256xf32>
      %226 = arith.mulf %225, %224 : vector<2x256xf32>
      %227 = arith.addf %216, %226 : vector<2x256xf32>
      %c34_i32 = arith.constant 34 : i32
      %228 = tpu.dynamic_rotate %20 by %c34_i32 dim 1 : vector<4x256xf32>, i32 -> vector<4x256xf32>
      %229 = vector.extract_strided_slice %228 {offsets = [0, 0], sizes = [2, 256], strides = [1, 1]} : vector<4x256xf32> to vector<2x256xf32>
      %230 = vector.extract_strided_slice %228 {offsets = [2, 0], sizes = [2, 256], strides = [1, 1]} : vector<4x256xf32> to vector<2x256xf32>
      %231 = vector.broadcast %44 : f32 to vector<2x256xf32>
      %232 = arith.mulf %231, %229 : vector<2x256xf32>
      %233 = vector.broadcast %93 : f32 to vector<2x256xf32>
      %234 = arith.mulf %233, %230 : vector<2x256xf32>
      %235 = arith.addf %232, %234 : vector<2x256xf32>
      %236 = vector.broadcast %30 : vector<1x256xf32> to vector<2x256xf32>
      %237 = arith.mulf %236, %235 : vector<2x256xf32>
      %238 = arith.addf %227, %237 : vector<2x256xf32>
      %c33_i32 = arith.constant 33 : i32
      %239 = tpu.dynamic_rotate %20 by %c33_i32 dim 1 : vector<4x256xf32>, i32 -> vector<4x256xf32>
      %240 = vector.extract_strided_slice %239 {offsets = [0, 0], sizes = [2, 256], strides = [1, 1]} : vector<4x256xf32> to vector<2x256xf32>
      %241 = vector.extract_strided_slice %239 {offsets = [2, 0], sizes = [2, 256], strides = [1, 1]} : vector<4x256xf32> to vector<2x256xf32>
      %242 = vector.broadcast %45 : f32 to vector<2x256xf32>
      %243 = arith.mulf %242, %240 : vector<2x256xf32>
      %244 = vector.broadcast %94 : f32 to vector<2x256xf32>
      %245 = arith.mulf %244, %241 : vector<2x256xf32>
      %246 = arith.addf %243, %245 : vector<2x256xf32>
      %247 = vector.broadcast %31 : vector<1x256xf32> to vector<2x256xf32>
      %248 = arith.mulf %247, %246 : vector<2x256xf32>
      %249 = arith.addf %238, %248 : vector<2x256xf32>
      %c32_i32 = arith.constant 32 : i32
      %250 = tpu.dynamic_rotate %20 by %c32_i32 dim 1 : vector<4x256xf32>, i32 -> vector<4x256xf32>
      %251 = vector.extract_strided_slice %250 {offsets = [0, 0], sizes = [2, 256], strides = [1, 1]} : vector<4x256xf32> to vector<2x256xf32>
      %252 = vector.extract_strided_slice %250 {offsets = [2, 0], sizes = [2, 256], strides = [1, 1]} : vector<4x256xf32> to vector<2x256xf32>
      %253 = vector.broadcast %46 : f32 to vector<2x256xf32>
      %254 = arith.mulf %253, %251 : vector<2x256xf32>
      %255 = vector.broadcast %95 : f32 to vector<2x256xf32>
      %256 = arith.mulf %255, %252 : vector<2x256xf32>
      %257 = arith.addf %254, %256 : vector<2x256xf32>
      %258 = vector.broadcast %32 : vector<1x256xf32> to vector<2x256xf32>
      %259 = arith.mulf %258, %257 : vector<2x256xf32>
      %260 = arith.addf %249, %259 : vector<2x256xf32>
      %c31_i32 = arith.constant 31 : i32
      %261 = tpu.dynamic_rotate %20 by %c31_i32 dim 1 : vector<4x256xf32>, i32 -> vector<4x256xf32>
      %262 = vector.extract_strided_slice %261 {offsets = [0, 0], sizes = [2, 256], strides = [1, 1]} : vector<4x256xf32> to vector<2x256xf32>
      %263 = vector.extract_strided_slice %261 {offsets = [2, 0], sizes = [2, 256], strides = [1, 1]} : vector<4x256xf32> to vector<2x256xf32>
      %264 = vector.broadcast %47 : f32 to vector<2x256xf32>
      %265 = arith.mulf %264, %262 : vector<2x256xf32>
      %266 = vector.broadcast %96 : f32 to vector<2x256xf32>
      %267 = arith.mulf %266, %263 : vector<2x256xf32>
      %268 = arith.addf %265, %267 : vector<2x256xf32>
      %269 = vector.broadcast %33 : vector<1x256xf32> to vector<2x256xf32>
      %270 = arith.mulf %269, %268 : vector<2x256xf32>
      %271 = arith.addf %260, %270 : vector<2x256xf32>
      %c30_i32 = arith.constant 30 : i32
      %272 = tpu.dynamic_rotate %20 by %c30_i32 dim 1 : vector<4x256xf32>, i32 -> vector<4x256xf32>
      %273 = vector.extract_strided_slice %272 {offsets = [0, 0], sizes = [2, 256], strides = [1, 1]} : vector<4x256xf32> to vector<2x256xf32>
      %274 = vector.extract_strided_slice %272 {offsets = [2, 0], sizes = [2, 256], strides = [1, 1]} : vector<4x256xf32> to vector<2x256xf32>
      %275 = vector.broadcast %48 : f32 to vector<2x256xf32>
      %276 = arith.mulf %275, %273 : vector<2x256xf32>
      %277 = vector.broadcast %97 : f32 to vector<2x256xf32>
      %278 = arith.mulf %277, %274 : vector<2x256xf32>
      %279 = arith.addf %276, %278 : vector<2x256xf32>
      %280 = vector.broadcast %34 : vector<1x256xf32> to vector<2x256xf32>
      %281 = arith.mulf %280, %279 : vector<2x256xf32>
      %282 = arith.addf %271, %281 : vector<2x256xf32>
      %c29_i32 = arith.constant 29 : i32
      %283 = tpu.dynamic_rotate %20 by %c29_i32 dim 1 : vector<4x256xf32>, i32 -> vector<4x256xf32>
      %284 = vector.extract_strided_slice %283 {offsets = [0, 0], sizes = [2, 256], strides = [1, 1]} : vector<4x256xf32> to vector<2x256xf32>
      %285 = vector.extract_strided_slice %283 {offsets = [2, 0], sizes = [2, 256], strides = [1, 1]} : vector<4x256xf32> to vector<2x256xf32>
      %286 = vector.broadcast %49 : f32 to vector<2x256xf32>
      %287 = arith.mulf %286, %284 : vector<2x256xf32>
      %288 = vector.broadcast %98 : f32 to vector<2x256xf32>
      %289 = arith.mulf %288, %285 : vector<2x256xf32>
      %290 = arith.addf %287, %289 : vector<2x256xf32>
      %291 = vector.broadcast %35 : vector<1x256xf32> to vector<2x256xf32>
      %292 = arith.mulf %291, %290 : vector<2x256xf32>
      %293 = arith.addf %282, %292 : vector<2x256xf32>
      %294 = vector.broadcast %23 : vector<1x256xf32> to vector<2x256xf32>
      %295 = arith.mulf %294, %293 : vector<2x256xf32>
      %296 = arith.addf %215, %295 : vector<2x256xf32>
      %cst_21 = arith.constant 0.000000e+00 : f32
      %297 = vector.broadcast %cst_21 : f32 to vector<2x256xf32>
      %c19_i32 = arith.constant 19 : i32
      %298 = tpu.dynamic_rotate %20 by %c19_i32 dim 1 : vector<4x256xf32>, i32 -> vector<4x256xf32>
      %299 = vector.extract_strided_slice %298 {offsets = [0, 0], sizes = [2, 256], strides = [1, 1]} : vector<4x256xf32> to vector<2x256xf32>
      %300 = vector.extract_strided_slice %298 {offsets = [2, 0], sizes = [2, 256], strides = [1, 1]} : vector<4x256xf32> to vector<2x256xf32>
      %301 = vector.broadcast %50 : f32 to vector<2x256xf32>
      %302 = arith.mulf %301, %299 : vector<2x256xf32>
      %303 = vector.broadcast %99 : f32 to vector<2x256xf32>
      %304 = arith.mulf %303, %300 : vector<2x256xf32>
      %305 = arith.addf %302, %304 : vector<2x256xf32>
      %306 = vector.broadcast %29 : vector<1x256xf32> to vector<2x256xf32>
      %307 = arith.mulf %306, %305 : vector<2x256xf32>
      %308 = arith.addf %297, %307 : vector<2x256xf32>
      %c18_i32 = arith.constant 18 : i32
      %309 = tpu.dynamic_rotate %20 by %c18_i32 dim 1 : vector<4x256xf32>, i32 -> vector<4x256xf32>
      %310 = vector.extract_strided_slice %309 {offsets = [0, 0], sizes = [2, 256], strides = [1, 1]} : vector<4x256xf32> to vector<2x256xf32>
      %311 = vector.extract_strided_slice %309 {offsets = [2, 0], sizes = [2, 256], strides = [1, 1]} : vector<4x256xf32> to vector<2x256xf32>
      %312 = vector.broadcast %51 : f32 to vector<2x256xf32>
      %313 = arith.mulf %312, %310 : vector<2x256xf32>
      %314 = vector.broadcast %100 : f32 to vector<2x256xf32>
      %315 = arith.mulf %314, %311 : vector<2x256xf32>
      %316 = arith.addf %313, %315 : vector<2x256xf32>
      %317 = vector.broadcast %30 : vector<1x256xf32> to vector<2x256xf32>
      %318 = arith.mulf %317, %316 : vector<2x256xf32>
      %319 = arith.addf %308, %318 : vector<2x256xf32>
      %c17_i32 = arith.constant 17 : i32
      %320 = tpu.dynamic_rotate %20 by %c17_i32 dim 1 : vector<4x256xf32>, i32 -> vector<4x256xf32>
      %321 = vector.extract_strided_slice %320 {offsets = [0, 0], sizes = [2, 256], strides = [1, 1]} : vector<4x256xf32> to vector<2x256xf32>
      %322 = vector.extract_strided_slice %320 {offsets = [2, 0], sizes = [2, 256], strides = [1, 1]} : vector<4x256xf32> to vector<2x256xf32>
      %323 = vector.broadcast %52 : f32 to vector<2x256xf32>
      %324 = arith.mulf %323, %321 : vector<2x256xf32>
      %325 = vector.broadcast %101 : f32 to vector<2x256xf32>
      %326 = arith.mulf %325, %322 : vector<2x256xf32>
      %327 = arith.addf %324, %326 : vector<2x256xf32>
      %328 = vector.broadcast %31 : vector<1x256xf32> to vector<2x256xf32>
      %329 = arith.mulf %328, %327 : vector<2x256xf32>
      %330 = arith.addf %319, %329 : vector<2x256xf32>
      %c16_i32 = arith.constant 16 : i32
      %331 = tpu.dynamic_rotate %20 by %c16_i32 dim 1 : vector<4x256xf32>, i32 -> vector<4x256xf32>
      %332 = vector.extract_strided_slice %331 {offsets = [0, 0], sizes = [2, 256], strides = [1, 1]} : vector<4x256xf32> to vector<2x256xf32>
      %333 = vector.extract_strided_slice %331 {offsets = [2, 0], sizes = [2, 256], strides = [1, 1]} : vector<4x256xf32> to vector<2x256xf32>
      %334 = vector.broadcast %53 : f32 to vector<2x256xf32>
      %335 = arith.mulf %334, %332 : vector<2x256xf32>
      %336 = vector.broadcast %102 : f32 to vector<2x256xf32>
      %337 = arith.mulf %336, %333 : vector<2x256xf32>
      %338 = arith.addf %335, %337 : vector<2x256xf32>
      %339 = vector.broadcast %32 : vector<1x256xf32> to vector<2x256xf32>
      %340 = arith.mulf %339, %338 : vector<2x256xf32>
      %341 = arith.addf %330, %340 : vector<2x256xf32>
      %c15_i32 = arith.constant 15 : i32
      %342 = tpu.dynamic_rotate %20 by %c15_i32 dim 1 : vector<4x256xf32>, i32 -> vector<4x256xf32>
      %343 = vector.extract_strided_slice %342 {offsets = [0, 0], sizes = [2, 256], strides = [1, 1]} : vector<4x256xf32> to vector<2x256xf32>
      %344 = vector.extract_strided_slice %342 {offsets = [2, 0], sizes = [2, 256], strides = [1, 1]} : vector<4x256xf32> to vector<2x256xf32>
      %345 = vector.broadcast %54 : f32 to vector<2x256xf32>
      %346 = arith.mulf %345, %343 : vector<2x256xf32>
      %347 = vector.broadcast %103 : f32 to vector<2x256xf32>
      %348 = arith.mulf %347, %344 : vector<2x256xf32>
      %349 = arith.addf %346, %348 : vector<2x256xf32>
      %350 = vector.broadcast %33 : vector<1x256xf32> to vector<2x256xf32>
      %351 = arith.mulf %350, %349 : vector<2x256xf32>
      %352 = arith.addf %341, %351 : vector<2x256xf32>
      %c14_i32 = arith.constant 14 : i32
      %353 = tpu.dynamic_rotate %20 by %c14_i32 dim 1 : vector<4x256xf32>, i32 -> vector<4x256xf32>
      %354 = vector.extract_strided_slice %353 {offsets = [0, 0], sizes = [2, 256], strides = [1, 1]} : vector<4x256xf32> to vector<2x256xf32>
      %355 = vector.extract_strided_slice %353 {offsets = [2, 0], sizes = [2, 256], strides = [1, 1]} : vector<4x256xf32> to vector<2x256xf32>
      %356 = vector.broadcast %55 : f32 to vector<2x256xf32>
      %357 = arith.mulf %356, %354 : vector<2x256xf32>
      %358 = vector.broadcast %104 : f32 to vector<2x256xf32>
      %359 = arith.mulf %358, %355 : vector<2x256xf32>
      %360 = arith.addf %357, %359 : vector<2x256xf32>
      %361 = vector.broadcast %34 : vector<1x256xf32> to vector<2x256xf32>
      %362 = arith.mulf %361, %360 : vector<2x256xf32>
      %363 = arith.addf %352, %362 : vector<2x256xf32>
      %c13_i32 = arith.constant 13 : i32
      %364 = tpu.dynamic_rotate %20 by %c13_i32 dim 1 : vector<4x256xf32>, i32 -> vector<4x256xf32>
      %365 = vector.extract_strided_slice %364 {offsets = [0, 0], sizes = [2, 256], strides = [1, 1]} : vector<4x256xf32> to vector<2x256xf32>
      %366 = vector.extract_strided_slice %364 {offsets = [2, 0], sizes = [2, 256], strides = [1, 1]} : vector<4x256xf32> to vector<2x256xf32>
      %367 = vector.broadcast %56 : f32 to vector<2x256xf32>
      %368 = arith.mulf %367, %365 : vector<2x256xf32>
      %369 = vector.broadcast %105 : f32 to vector<2x256xf32>
      %370 = arith.mulf %369, %366 : vector<2x256xf32>
      %371 = arith.addf %368, %370 : vector<2x256xf32>
      %372 = vector.broadcast %35 : vector<1x256xf32> to vector<2x256xf32>
      %373 = arith.mulf %372, %371 : vector<2x256xf32>
      %374 = arith.addf %363, %373 : vector<2x256xf32>
      %375 = vector.broadcast %24 : vector<1x256xf32> to vector<2x256xf32>
      %376 = arith.mulf %375, %374 : vector<2x256xf32>
      %377 = arith.addf %296, %376 : vector<2x256xf32>
      %cst_22 = arith.constant 0.000000e+00 : f32
      %378 = vector.broadcast %cst_22 : f32 to vector<2x256xf32>
      %c3_i32 = arith.constant 3 : i32
      %379 = tpu.dynamic_rotate %20 by %c3_i32 dim 1 : vector<4x256xf32>, i32 -> vector<4x256xf32>
      %380 = vector.extract_strided_slice %379 {offsets = [0, 0], sizes = [2, 256], strides = [1, 1]} : vector<4x256xf32> to vector<2x256xf32>
      %381 = vector.extract_strided_slice %379 {offsets = [2, 0], sizes = [2, 256], strides = [1, 1]} : vector<4x256xf32> to vector<2x256xf32>
      %382 = vector.broadcast %57 : f32 to vector<2x256xf32>
      %383 = arith.mulf %382, %380 : vector<2x256xf32>
      %384 = vector.broadcast %106 : f32 to vector<2x256xf32>
      %385 = arith.mulf %384, %381 : vector<2x256xf32>
      %386 = arith.addf %383, %385 : vector<2x256xf32>
      %387 = vector.broadcast %29 : vector<1x256xf32> to vector<2x256xf32>
      %388 = arith.mulf %387, %386 : vector<2x256xf32>
      %389 = arith.addf %378, %388 : vector<2x256xf32>
      %c2_i32 = arith.constant 2 : i32
      %390 = tpu.dynamic_rotate %20 by %c2_i32 dim 1 : vector<4x256xf32>, i32 -> vector<4x256xf32>
      %391 = vector.extract_strided_slice %390 {offsets = [0, 0], sizes = [2, 256], strides = [1, 1]} : vector<4x256xf32> to vector<2x256xf32>
      %392 = vector.extract_strided_slice %390 {offsets = [2, 0], sizes = [2, 256], strides = [1, 1]} : vector<4x256xf32> to vector<2x256xf32>
      %393 = vector.broadcast %58 : f32 to vector<2x256xf32>
      %394 = arith.mulf %393, %391 : vector<2x256xf32>
      %395 = vector.broadcast %107 : f32 to vector<2x256xf32>
      %396 = arith.mulf %395, %392 : vector<2x256xf32>
      %397 = arith.addf %394, %396 : vector<2x256xf32>
      %398 = vector.broadcast %30 : vector<1x256xf32> to vector<2x256xf32>
      %399 = arith.mulf %398, %397 : vector<2x256xf32>
      %400 = arith.addf %389, %399 : vector<2x256xf32>
      %c1_i32 = arith.constant 1 : i32
      %401 = tpu.dynamic_rotate %20 by %c1_i32 dim 1 : vector<4x256xf32>, i32 -> vector<4x256xf32>
      %402 = vector.extract_strided_slice %401 {offsets = [0, 0], sizes = [2, 256], strides = [1, 1]} : vector<4x256xf32> to vector<2x256xf32>
      %403 = vector.extract_strided_slice %401 {offsets = [2, 0], sizes = [2, 256], strides = [1, 1]} : vector<4x256xf32> to vector<2x256xf32>
      %404 = vector.broadcast %59 : f32 to vector<2x256xf32>
      %405 = arith.mulf %404, %402 : vector<2x256xf32>
      %406 = vector.broadcast %108 : f32 to vector<2x256xf32>
      %407 = arith.mulf %406, %403 : vector<2x256xf32>
      %408 = arith.addf %405, %407 : vector<2x256xf32>
      %409 = vector.broadcast %31 : vector<1x256xf32> to vector<2x256xf32>
      %410 = arith.mulf %409, %408 : vector<2x256xf32>
      %411 = arith.addf %400, %410 : vector<2x256xf32>
      %412 = vector.extract_strided_slice %20 {offsets = [0, 0], sizes = [2, 256], strides = [1, 1]} : vector<4x256xf32> to vector<2x256xf32>
      %413 = vector.extract_strided_slice %20 {offsets = [2, 0], sizes = [2, 256], strides = [1, 1]} : vector<4x256xf32> to vector<2x256xf32>
      %414 = vector.broadcast %60 : f32 to vector<2x256xf32>
      %415 = arith.mulf %414, %412 : vector<2x256xf32>
      %416 = vector.broadcast %109 : f32 to vector<2x256xf32>
      %417 = arith.mulf %416, %413 : vector<2x256xf32>
      %418 = arith.addf %415, %417 : vector<2x256xf32>
      %419 = vector.broadcast %32 : vector<1x256xf32> to vector<2x256xf32>
      %420 = arith.mulf %419, %418 : vector<2x256xf32>
      %421 = arith.addf %411, %420 : vector<2x256xf32>
      %c255_i32 = arith.constant 255 : i32
      %422 = tpu.dynamic_rotate %20 by %c255_i32 dim 1 : vector<4x256xf32>, i32 -> vector<4x256xf32>
      %423 = vector.extract_strided_slice %422 {offsets = [0, 0], sizes = [2, 256], strides = [1, 1]} : vector<4x256xf32> to vector<2x256xf32>
      %424 = vector.extract_strided_slice %422 {offsets = [2, 0], sizes = [2, 256], strides = [1, 1]} : vector<4x256xf32> to vector<2x256xf32>
      %425 = vector.broadcast %61 : f32 to vector<2x256xf32>
      %426 = arith.mulf %425, %423 : vector<2x256xf32>
      %427 = vector.broadcast %110 : f32 to vector<2x256xf32>
      %428 = arith.mulf %427, %424 : vector<2x256xf32>
      %429 = arith.addf %426, %428 : vector<2x256xf32>
      %430 = vector.broadcast %33 : vector<1x256xf32> to vector<2x256xf32>
      %431 = arith.mulf %430, %429 : vector<2x256xf32>
      %432 = arith.addf %421, %431 : vector<2x256xf32>
      %c254_i32 = arith.constant 254 : i32
      %433 = tpu.dynamic_rotate %20 by %c254_i32 dim 1 : vector<4x256xf32>, i32 -> vector<4x256xf32>
      %434 = vector.extract_strided_slice %433 {offsets = [0, 0], sizes = [2, 256], strides = [1, 1]} : vector<4x256xf32> to vector<2x256xf32>
      %435 = vector.extract_strided_slice %433 {offsets = [2, 0], sizes = [2, 256], strides = [1, 1]} : vector<4x256xf32> to vector<2x256xf32>
      %436 = vector.broadcast %62 : f32 to vector<2x256xf32>
      %437 = arith.mulf %436, %434 : vector<2x256xf32>
      %438 = vector.broadcast %111 : f32 to vector<2x256xf32>
      %439 = arith.mulf %438, %435 : vector<2x256xf32>
      %440 = arith.addf %437, %439 : vector<2x256xf32>
      %441 = vector.broadcast %34 : vector<1x256xf32> to vector<2x256xf32>
      %442 = arith.mulf %441, %440 : vector<2x256xf32>
      %443 = arith.addf %432, %442 : vector<2x256xf32>
      %c253_i32 = arith.constant 253 : i32
      %444 = tpu.dynamic_rotate %20 by %c253_i32 dim 1 : vector<4x256xf32>, i32 -> vector<4x256xf32>
      %445 = vector.extract_strided_slice %444 {offsets = [0, 0], sizes = [2, 256], strides = [1, 1]} : vector<4x256xf32> to vector<2x256xf32>
      %446 = vector.extract_strided_slice %444 {offsets = [2, 0], sizes = [2, 256], strides = [1, 1]} : vector<4x256xf32> to vector<2x256xf32>
      %447 = vector.broadcast %63 : f32 to vector<2x256xf32>
      %448 = arith.mulf %447, %445 : vector<2x256xf32>
      %449 = vector.broadcast %112 : f32 to vector<2x256xf32>
      %450 = arith.mulf %449, %446 : vector<2x256xf32>
      %451 = arith.addf %448, %450 : vector<2x256xf32>
      %452 = vector.broadcast %35 : vector<1x256xf32> to vector<2x256xf32>
      %453 = arith.mulf %452, %451 : vector<2x256xf32>
      %454 = arith.addf %443, %453 : vector<2x256xf32>
      %455 = vector.broadcast %25 : vector<1x256xf32> to vector<2x256xf32>
      %456 = arith.mulf %455, %454 : vector<2x256xf32>
      %457 = arith.addf %377, %456 : vector<2x256xf32>
      %cst_23 = arith.constant 0.000000e+00 : f32
      %458 = vector.broadcast %cst_23 : f32 to vector<2x256xf32>
      %c243_i32 = arith.constant 243 : i32
      %459 = tpu.dynamic_rotate %20 by %c243_i32 dim 1 : vector<4x256xf32>, i32 -> vector<4x256xf32>
      %460 = vector.extract_strided_slice %459 {offsets = [0, 0], sizes = [2, 256], strides = [1, 1]} : vector<4x256xf32> to vector<2x256xf32>
      %461 = vector.extract_strided_slice %459 {offsets = [2, 0], sizes = [2, 256], strides = [1, 1]} : vector<4x256xf32> to vector<2x256xf32>
      %462 = vector.broadcast %64 : f32 to vector<2x256xf32>
      %463 = arith.mulf %462, %460 : vector<2x256xf32>
      %464 = vector.broadcast %113 : f32 to vector<2x256xf32>
      %465 = arith.mulf %464, %461 : vector<2x256xf32>
      %466 = arith.addf %463, %465 : vector<2x256xf32>
      %467 = vector.broadcast %29 : vector<1x256xf32> to vector<2x256xf32>
      %468 = arith.mulf %467, %466 : vector<2x256xf32>
      %469 = arith.addf %458, %468 : vector<2x256xf32>
      %c242_i32 = arith.constant 242 : i32
      %470 = tpu.dynamic_rotate %20 by %c242_i32 dim 1 : vector<4x256xf32>, i32 -> vector<4x256xf32>
      %471 = vector.extract_strided_slice %470 {offsets = [0, 0], sizes = [2, 256], strides = [1, 1]} : vector<4x256xf32> to vector<2x256xf32>
      %472 = vector.extract_strided_slice %470 {offsets = [2, 0], sizes = [2, 256], strides = [1, 1]} : vector<4x256xf32> to vector<2x256xf32>
      %473 = vector.broadcast %65 : f32 to vector<2x256xf32>
      %474 = arith.mulf %473, %471 : vector<2x256xf32>
      %475 = vector.broadcast %114 : f32 to vector<2x256xf32>
      %476 = arith.mulf %475, %472 : vector<2x256xf32>
      %477 = arith.addf %474, %476 : vector<2x256xf32>
      %478 = vector.broadcast %30 : vector<1x256xf32> to vector<2x256xf32>
      %479 = arith.mulf %478, %477 : vector<2x256xf32>
      %480 = arith.addf %469, %479 : vector<2x256xf32>
      %c241_i32 = arith.constant 241 : i32
      %481 = tpu.dynamic_rotate %20 by %c241_i32 dim 1 : vector<4x256xf32>, i32 -> vector<4x256xf32>
      %482 = vector.extract_strided_slice %481 {offsets = [0, 0], sizes = [2, 256], strides = [1, 1]} : vector<4x256xf32> to vector<2x256xf32>
      %483 = vector.extract_strided_slice %481 {offsets = [2, 0], sizes = [2, 256], strides = [1, 1]} : vector<4x256xf32> to vector<2x256xf32>
      %484 = vector.broadcast %66 : f32 to vector<2x256xf32>
      %485 = arith.mulf %484, %482 : vector<2x256xf32>
      %486 = vector.broadcast %115 : f32 to vector<2x256xf32>
      %487 = arith.mulf %486, %483 : vector<2x256xf32>
      %488 = arith.addf %485, %487 : vector<2x256xf32>
      %489 = vector.broadcast %31 : vector<1x256xf32> to vector<2x256xf32>
      %490 = arith.mulf %489, %488 : vector<2x256xf32>
      %491 = arith.addf %480, %490 : vector<2x256xf32>
      %c240_i32 = arith.constant 240 : i32
      %492 = tpu.dynamic_rotate %20 by %c240_i32 dim 1 : vector<4x256xf32>, i32 -> vector<4x256xf32>
      %493 = vector.extract_strided_slice %492 {offsets = [0, 0], sizes = [2, 256], strides = [1, 1]} : vector<4x256xf32> to vector<2x256xf32>
      %494 = vector.extract_strided_slice %492 {offsets = [2, 0], sizes = [2, 256], strides = [1, 1]} : vector<4x256xf32> to vector<2x256xf32>
      %495 = vector.broadcast %67 : f32 to vector<2x256xf32>
      %496 = arith.mulf %495, %493 : vector<2x256xf32>
      %497 = vector.broadcast %116 : f32 to vector<2x256xf32>
      %498 = arith.mulf %497, %494 : vector<2x256xf32>
      %499 = arith.addf %496, %498 : vector<2x256xf32>
      %500 = vector.broadcast %32 : vector<1x256xf32> to vector<2x256xf32>
      %501 = arith.mulf %500, %499 : vector<2x256xf32>
      %502 = arith.addf %491, %501 : vector<2x256xf32>
      %c239_i32 = arith.constant 239 : i32
      %503 = tpu.dynamic_rotate %20 by %c239_i32 dim 1 : vector<4x256xf32>, i32 -> vector<4x256xf32>
      %504 = vector.extract_strided_slice %503 {offsets = [0, 0], sizes = [2, 256], strides = [1, 1]} : vector<4x256xf32> to vector<2x256xf32>
      %505 = vector.extract_strided_slice %503 {offsets = [2, 0], sizes = [2, 256], strides = [1, 1]} : vector<4x256xf32> to vector<2x256xf32>
      %506 = vector.broadcast %68 : f32 to vector<2x256xf32>
      %507 = arith.mulf %506, %504 : vector<2x256xf32>
      %508 = vector.broadcast %117 : f32 to vector<2x256xf32>
      %509 = arith.mulf %508, %505 : vector<2x256xf32>
      %510 = arith.addf %507, %509 : vector<2x256xf32>
      %511 = vector.broadcast %33 : vector<1x256xf32> to vector<2x256xf32>
      %512 = arith.mulf %511, %510 : vector<2x256xf32>
      %513 = arith.addf %502, %512 : vector<2x256xf32>
      %c238_i32 = arith.constant 238 : i32
      %514 = tpu.dynamic_rotate %20 by %c238_i32 dim 1 : vector<4x256xf32>, i32 -> vector<4x256xf32>
      %515 = vector.extract_strided_slice %514 {offsets = [0, 0], sizes = [2, 256], strides = [1, 1]} : vector<4x256xf32> to vector<2x256xf32>
      %516 = vector.extract_strided_slice %514 {offsets = [2, 0], sizes = [2, 256], strides = [1, 1]} : vector<4x256xf32> to vector<2x256xf32>
      %517 = vector.broadcast %69 : f32 to vector<2x256xf32>
      %518 = arith.mulf %517, %515 : vector<2x256xf32>
      %519 = vector.broadcast %118 : f32 to vector<2x256xf32>
      %520 = arith.mulf %519, %516 : vector<2x256xf32>
      %521 = arith.addf %518, %520 : vector<2x256xf32>
      %522 = vector.broadcast %34 : vector<1x256xf32> to vector<2x256xf32>
      %523 = arith.mulf %522, %521 : vector<2x256xf32>
      %524 = arith.addf %513, %523 : vector<2x256xf32>
      %c237_i32 = arith.constant 237 : i32
      %525 = tpu.dynamic_rotate %20 by %c237_i32 dim 1 : vector<4x256xf32>, i32 -> vector<4x256xf32>
      %526 = vector.extract_strided_slice %525 {offsets = [0, 0], sizes = [2, 256], strides = [1, 1]} : vector<4x256xf32> to vector<2x256xf32>
      %527 = vector.extract_strided_slice %525 {offsets = [2, 0], sizes = [2, 256], strides = [1, 1]} : vector<4x256xf32> to vector<2x256xf32>
      %528 = vector.broadcast %70 : f32 to vector<2x256xf32>
      %529 = arith.mulf %528, %526 : vector<2x256xf32>
      %530 = vector.broadcast %119 : f32 to vector<2x256xf32>
      %531 = arith.mulf %530, %527 : vector<2x256xf32>
      %532 = arith.addf %529, %531 : vector<2x256xf32>
      %533 = vector.broadcast %35 : vector<1x256xf32> to vector<2x256xf32>
      %534 = arith.mulf %533, %532 : vector<2x256xf32>
      %535 = arith.addf %524, %534 : vector<2x256xf32>
      %536 = vector.broadcast %26 : vector<1x256xf32> to vector<2x256xf32>
      %537 = arith.mulf %536, %535 : vector<2x256xf32>
      %538 = arith.addf %457, %537 : vector<2x256xf32>
      %cst_24 = arith.constant 0.000000e+00 : f32
      %539 = vector.broadcast %cst_24 : f32 to vector<2x256xf32>
      %c227_i32 = arith.constant 227 : i32
      %540 = tpu.dynamic_rotate %20 by %c227_i32 dim 1 : vector<4x256xf32>, i32 -> vector<4x256xf32>
      %541 = vector.extract_strided_slice %540 {offsets = [0, 0], sizes = [2, 256], strides = [1, 1]} : vector<4x256xf32> to vector<2x256xf32>
      %542 = vector.extract_strided_slice %540 {offsets = [2, 0], sizes = [2, 256], strides = [1, 1]} : vector<4x256xf32> to vector<2x256xf32>
      %543 = vector.broadcast %71 : f32 to vector<2x256xf32>
      %544 = arith.mulf %543, %541 : vector<2x256xf32>
      %545 = vector.broadcast %120 : f32 to vector<2x256xf32>
      %546 = arith.mulf %545, %542 : vector<2x256xf32>
      %547 = arith.addf %544, %546 : vector<2x256xf32>
      %548 = vector.broadcast %29 : vector<1x256xf32> to vector<2x256xf32>
      %549 = arith.mulf %548, %547 : vector<2x256xf32>
      %550 = arith.addf %539, %549 : vector<2x256xf32>
      %c226_i32 = arith.constant 226 : i32
      %551 = tpu.dynamic_rotate %20 by %c226_i32 dim 1 : vector<4x256xf32>, i32 -> vector<4x256xf32>
      %552 = vector.extract_strided_slice %551 {offsets = [0, 0], sizes = [2, 256], strides = [1, 1]} : vector<4x256xf32> to vector<2x256xf32>
      %553 = vector.extract_strided_slice %551 {offsets = [2, 0], sizes = [2, 256], strides = [1, 1]} : vector<4x256xf32> to vector<2x256xf32>
      %554 = vector.broadcast %72 : f32 to vector<2x256xf32>
      %555 = arith.mulf %554, %552 : vector<2x256xf32>
      %556 = vector.broadcast %121 : f32 to vector<2x256xf32>
      %557 = arith.mulf %556, %553 : vector<2x256xf32>
      %558 = arith.addf %555, %557 : vector<2x256xf32>
      %559 = vector.broadcast %30 : vector<1x256xf32> to vector<2x256xf32>
      %560 = arith.mulf %559, %558 : vector<2x256xf32>
      %561 = arith.addf %550, %560 : vector<2x256xf32>
      %c225_i32 = arith.constant 225 : i32
      %562 = tpu.dynamic_rotate %20 by %c225_i32 dim 1 : vector<4x256xf32>, i32 -> vector<4x256xf32>
      %563 = vector.extract_strided_slice %562 {offsets = [0, 0], sizes = [2, 256], strides = [1, 1]} : vector<4x256xf32> to vector<2x256xf32>
      %564 = vector.extract_strided_slice %562 {offsets = [2, 0], sizes = [2, 256], strides = [1, 1]} : vector<4x256xf32> to vector<2x256xf32>
      %565 = vector.broadcast %73 : f32 to vector<2x256xf32>
      %566 = arith.mulf %565, %563 : vector<2x256xf32>
      %567 = vector.broadcast %122 : f32 to vector<2x256xf32>
      %568 = arith.mulf %567, %564 : vector<2x256xf32>
      %569 = arith.addf %566, %568 : vector<2x256xf32>
      %570 = vector.broadcast %31 : vector<1x256xf32> to vector<2x256xf32>
      %571 = arith.mulf %570, %569 : vector<2x256xf32>
      %572 = arith.addf %561, %571 : vector<2x256xf32>
      %c224_i32 = arith.constant 224 : i32
      %573 = tpu.dynamic_rotate %20 by %c224_i32 dim 1 : vector<4x256xf32>, i32 -> vector<4x256xf32>
      %574 = vector.extract_strided_slice %573 {offsets = [0, 0], sizes = [2, 256], strides = [1, 1]} : vector<4x256xf32> to vector<2x256xf32>
      %575 = vector.extract_strided_slice %573 {offsets = [2, 0], sizes = [2, 256], strides = [1, 1]} : vector<4x256xf32> to vector<2x256xf32>
      %576 = vector.broadcast %74 : f32 to vector<2x256xf32>
      %577 = arith.mulf %576, %574 : vector<2x256xf32>
      %578 = vector.broadcast %123 : f32 to vector<2x256xf32>
      %579 = arith.mulf %578, %575 : vector<2x256xf32>
      %580 = arith.addf %577, %579 : vector<2x256xf32>
      %581 = vector.broadcast %32 : vector<1x256xf32> to vector<2x256xf32>
      %582 = arith.mulf %581, %580 : vector<2x256xf32>
      %583 = arith.addf %572, %582 : vector<2x256xf32>
      %c223_i32 = arith.constant 223 : i32
      %584 = tpu.dynamic_rotate %20 by %c223_i32 dim 1 : vector<4x256xf32>, i32 -> vector<4x256xf32>
      %585 = vector.extract_strided_slice %584 {offsets = [0, 0], sizes = [2, 256], strides = [1, 1]} : vector<4x256xf32> to vector<2x256xf32>
      %586 = vector.extract_strided_slice %584 {offsets = [2, 0], sizes = [2, 256], strides = [1, 1]} : vector<4x256xf32> to vector<2x256xf32>
      %587 = vector.broadcast %75 : f32 to vector<2x256xf32>
      %588 = arith.mulf %587, %585 : vector<2x256xf32>
      %589 = vector.broadcast %124 : f32 to vector<2x256xf32>
      %590 = arith.mulf %589, %586 : vector<2x256xf32>
      %591 = arith.addf %588, %590 : vector<2x256xf32>
      %592 = vector.broadcast %33 : vector<1x256xf32> to vector<2x256xf32>
      %593 = arith.mulf %592, %591 : vector<2x256xf32>
      %594 = arith.addf %583, %593 : vector<2x256xf32>
      %c222_i32 = arith.constant 222 : i32
      %595 = tpu.dynamic_rotate %20 by %c222_i32 dim 1 : vector<4x256xf32>, i32 -> vector<4x256xf32>
      %596 = vector.extract_strided_slice %595 {offsets = [0, 0], sizes = [2, 256], strides = [1, 1]} : vector<4x256xf32> to vector<2x256xf32>
      %597 = vector.extract_strided_slice %595 {offsets = [2, 0], sizes = [2, 256], strides = [1, 1]} : vector<4x256xf32> to vector<2x256xf32>
      %598 = vector.broadcast %76 : f32 to vector<2x256xf32>
      %599 = arith.mulf %598, %596 : vector<2x256xf32>
      %600 = vector.broadcast %125 : f32 to vector<2x256xf32>
      %601 = arith.mulf %600, %597 : vector<2x256xf32>
      %602 = arith.addf %599, %601 : vector<2x256xf32>
      %603 = vector.broadcast %34 : vector<1x256xf32> to vector<2x256xf32>
      %604 = arith.mulf %603, %602 : vector<2x256xf32>
      %605 = arith.addf %594, %604 : vector<2x256xf32>
      %c221_i32 = arith.constant 221 : i32
      %606 = tpu.dynamic_rotate %20 by %c221_i32 dim 1 : vector<4x256xf32>, i32 -> vector<4x256xf32>
      %607 = vector.extract_strided_slice %606 {offsets = [0, 0], sizes = [2, 256], strides = [1, 1]} : vector<4x256xf32> to vector<2x256xf32>
      %608 = vector.extract_strided_slice %606 {offsets = [2, 0], sizes = [2, 256], strides = [1, 1]} : vector<4x256xf32> to vector<2x256xf32>
      %609 = vector.broadcast %77 : f32 to vector<2x256xf32>
      %610 = arith.mulf %609, %607 : vector<2x256xf32>
      %611 = vector.broadcast %126 : f32 to vector<2x256xf32>
      %612 = arith.mulf %611, %608 : vector<2x256xf32>
      %613 = arith.addf %610, %612 : vector<2x256xf32>
      %614 = vector.broadcast %35 : vector<1x256xf32> to vector<2x256xf32>
      %615 = arith.mulf %614, %613 : vector<2x256xf32>
      %616 = arith.addf %605, %615 : vector<2x256xf32>
      %617 = vector.broadcast %27 : vector<1x256xf32> to vector<2x256xf32>
      %618 = arith.mulf %617, %616 : vector<2x256xf32>
      %619 = arith.addf %538, %618 : vector<2x256xf32>
      %cst_25 = arith.constant 0.000000e+00 : f32
      %620 = vector.broadcast %cst_25 : f32 to vector<2x256xf32>
      %c211_i32 = arith.constant 211 : i32
      %621 = tpu.dynamic_rotate %20 by %c211_i32 dim 1 : vector<4x256xf32>, i32 -> vector<4x256xf32>
      %622 = vector.extract_strided_slice %621 {offsets = [0, 0], sizes = [2, 256], strides = [1, 1]} : vector<4x256xf32> to vector<2x256xf32>
      %623 = vector.extract_strided_slice %621 {offsets = [2, 0], sizes = [2, 256], strides = [1, 1]} : vector<4x256xf32> to vector<2x256xf32>
      %624 = vector.broadcast %78 : f32 to vector<2x256xf32>
      %625 = arith.mulf %624, %622 : vector<2x256xf32>
      %626 = vector.broadcast %127 : f32 to vector<2x256xf32>
      %627 = arith.mulf %626, %623 : vector<2x256xf32>
      %628 = arith.addf %625, %627 : vector<2x256xf32>
      %629 = vector.broadcast %29 : vector<1x256xf32> to vector<2x256xf32>
      %630 = arith.mulf %629, %628 : vector<2x256xf32>
      %631 = arith.addf %620, %630 : vector<2x256xf32>
      %c210_i32 = arith.constant 210 : i32
      %632 = tpu.dynamic_rotate %20 by %c210_i32 dim 1 : vector<4x256xf32>, i32 -> vector<4x256xf32>
      %633 = vector.extract_strided_slice %632 {offsets = [0, 0], sizes = [2, 256], strides = [1, 1]} : vector<4x256xf32> to vector<2x256xf32>
      %634 = vector.extract_strided_slice %632 {offsets = [2, 0], sizes = [2, 256], strides = [1, 1]} : vector<4x256xf32> to vector<2x256xf32>
      %635 = vector.broadcast %79 : f32 to vector<2x256xf32>
      %636 = arith.mulf %635, %633 : vector<2x256xf32>
      %637 = vector.broadcast %128 : f32 to vector<2x256xf32>
      %638 = arith.mulf %637, %634 : vector<2x256xf32>
      %639 = arith.addf %636, %638 : vector<2x256xf32>
      %640 = vector.broadcast %30 : vector<1x256xf32> to vector<2x256xf32>
      %641 = arith.mulf %640, %639 : vector<2x256xf32>
      %642 = arith.addf %631, %641 : vector<2x256xf32>
      %c209_i32 = arith.constant 209 : i32
      %643 = tpu.dynamic_rotate %20 by %c209_i32 dim 1 : vector<4x256xf32>, i32 -> vector<4x256xf32>
      %644 = vector.extract_strided_slice %643 {offsets = [0, 0], sizes = [2, 256], strides = [1, 1]} : vector<4x256xf32> to vector<2x256xf32>
      %645 = vector.extract_strided_slice %643 {offsets = [2, 0], sizes = [2, 256], strides = [1, 1]} : vector<4x256xf32> to vector<2x256xf32>
      %646 = vector.broadcast %80 : f32 to vector<2x256xf32>
      %647 = arith.mulf %646, %644 : vector<2x256xf32>
      %648 = vector.broadcast %129 : f32 to vector<2x256xf32>
      %649 = arith.mulf %648, %645 : vector<2x256xf32>
      %650 = arith.addf %647, %649 : vector<2x256xf32>
      %651 = vector.broadcast %31 : vector<1x256xf32> to vector<2x256xf32>
      %652 = arith.mulf %651, %650 : vector<2x256xf32>
      %653 = arith.addf %642, %652 : vector<2x256xf32>
      %c208_i32 = arith.constant 208 : i32
      %654 = tpu.dynamic_rotate %20 by %c208_i32 dim 1 : vector<4x256xf32>, i32 -> vector<4x256xf32>
      %655 = vector.extract_strided_slice %654 {offsets = [0, 0], sizes = [2, 256], strides = [1, 1]} : vector<4x256xf32> to vector<2x256xf32>
      %656 = vector.extract_strided_slice %654 {offsets = [2, 0], sizes = [2, 256], strides = [1, 1]} : vector<4x256xf32> to vector<2x256xf32>
      %657 = vector.broadcast %81 : f32 to vector<2x256xf32>
      %658 = arith.mulf %657, %655 : vector<2x256xf32>
      %659 = vector.broadcast %130 : f32 to vector<2x256xf32>
      %660 = arith.mulf %659, %656 : vector<2x256xf32>
      %661 = arith.addf %658, %660 : vector<2x256xf32>
      %662 = vector.broadcast %32 : vector<1x256xf32> to vector<2x256xf32>
      %663 = arith.mulf %662, %661 : vector<2x256xf32>
      %664 = arith.addf %653, %663 : vector<2x256xf32>
      %c207_i32 = arith.constant 207 : i32
      %665 = tpu.dynamic_rotate %20 by %c207_i32 dim 1 : vector<4x256xf32>, i32 -> vector<4x256xf32>
      %666 = vector.extract_strided_slice %665 {offsets = [0, 0], sizes = [2, 256], strides = [1, 1]} : vector<4x256xf32> to vector<2x256xf32>
      %667 = vector.extract_strided_slice %665 {offsets = [2, 0], sizes = [2, 256], strides = [1, 1]} : vector<4x256xf32> to vector<2x256xf32>
      %668 = vector.broadcast %82 : f32 to vector<2x256xf32>
      %669 = arith.mulf %668, %666 : vector<2x256xf32>
      %670 = vector.broadcast %131 : f32 to vector<2x256xf32>
      %671 = arith.mulf %670, %667 : vector<2x256xf32>
      %672 = arith.addf %669, %671 : vector<2x256xf32>
      %673 = vector.broadcast %33 : vector<1x256xf32> to vector<2x256xf32>
      %674 = arith.mulf %673, %672 : vector<2x256xf32>
      %675 = arith.addf %664, %674 : vector<2x256xf32>
      %c206_i32 = arith.constant 206 : i32
      %676 = tpu.dynamic_rotate %20 by %c206_i32 dim 1 : vector<4x256xf32>, i32 -> vector<4x256xf32>
      %677 = vector.extract_strided_slice %676 {offsets = [0, 0], sizes = [2, 256], strides = [1, 1]} : vector<4x256xf32> to vector<2x256xf32>
      %678 = vector.extract_strided_slice %676 {offsets = [2, 0], sizes = [2, 256], strides = [1, 1]} : vector<4x256xf32> to vector<2x256xf32>
      %679 = vector.broadcast %83 : f32 to vector<2x256xf32>
      %680 = arith.mulf %679, %677 : vector<2x256xf32>
      %681 = vector.broadcast %132 : f32 to vector<2x256xf32>
      %682 = arith.mulf %681, %678 : vector<2x256xf32>
      %683 = arith.addf %680, %682 : vector<2x256xf32>
      %684 = vector.broadcast %34 : vector<1x256xf32> to vector<2x256xf32>
      %685 = arith.mulf %684, %683 : vector<2x256xf32>
      %686 = arith.addf %675, %685 : vector<2x256xf32>
      %c205_i32 = arith.constant 205 : i32
      %687 = tpu.dynamic_rotate %20 by %c205_i32 dim 1 : vector<4x256xf32>, i32 -> vector<4x256xf32>
      %688 = vector.extract_strided_slice %687 {offsets = [0, 0], sizes = [2, 256], strides = [1, 1]} : vector<4x256xf32> to vector<2x256xf32>
      %689 = vector.extract_strided_slice %687 {offsets = [2, 0], sizes = [2, 256], strides = [1, 1]} : vector<4x256xf32> to vector<2x256xf32>
      %690 = vector.broadcast %84 : f32 to vector<2x256xf32>
      %691 = arith.mulf %690, %688 : vector<2x256xf32>
      %692 = vector.broadcast %133 : f32 to vector<2x256xf32>
      %693 = arith.mulf %692, %689 : vector<2x256xf32>
      %694 = arith.addf %691, %693 : vector<2x256xf32>
      %695 = vector.broadcast %35 : vector<1x256xf32> to vector<2x256xf32>
      %696 = arith.mulf %695, %694 : vector<2x256xf32>
      %697 = arith.addf %686, %696 : vector<2x256xf32>
      %698 = vector.broadcast %28 : vector<1x256xf32> to vector<2x256xf32>
      %699 = arith.mulf %698, %697 : vector<2x256xf32>
      %700 = arith.addf %619, %699 : vector<2x256xf32>
      %701 = arith.negf %700 : vector<2x256xf32>
      %702 = math.exp %701 : vector<2x256xf32>
      %cst_26 = arith.constant 1.000000e+00 : f32
      %703 = vector.broadcast %cst_26 : f32 to vector<2x256xf32>
      %704 = arith.addf %703, %702 : vector<2x256xf32>
      %705 = arith.divf %703, %704 : vector<2x256xf32>
      %c0_27 = arith.constant 0 : index
      %c0_28 = arith.constant 0 : index
      %706 = vector.load %arg5[%c0_27, %c0_28] : memref<2x256xf32, #tpu.memory_space<vmem>>, vector<2x256xf32>
      tpu.vector_store %arg5[%c0_27, %c0_28], %705 {strides = array<i32>} : memref<2x256xf32, #tpu.memory_space<vmem>>, vector<2x256xf32>,
    } else {
    }
    return
  }
  func.func @transform_0(%arg0: i32, %arg1: i32) -> i32 {
    %c0_i32 = arith.constant 0 : i32
    %c0_i32_0 = arith.constant 0 : i32
    return %c0_i32 : i32
  }
  func.func @transform_1(%arg0: i32, %arg1: i32) -> (i32, i32) {
    %c0_i32 = arith.constant 0 : i32
    %c0_i32_0 = arith.constant 0 : i32
    %c0_i32_1 = arith.constant 0 : i32
    return %c0_i32, %c0_i32_0 : i32, i32
  }
  func.func @transform_2(%arg0: i32, %arg1: i32) -> (i32, i32, i32) {
    %c0_i32 = arith.constant 0 : i32
    %c0_i32_0 = arith.constant 0 : i32
    return %arg0, %arg1, %c0_i32 : i32, i32, i32
  }
  func.func @transform_3(%arg0: i32, %arg1: i32) -> (i32, i32) {
    %c0_i32 = arith.constant 0 : i32
    %c0_i32_0 = arith.constant 0 : i32
    return %arg0, %c0_i32 : i32, i32
  }
}

</mosaic_0001>

<bundles_post_ra>
// kernel: tpu_custom_call.1
= control target key start
LH: loop header
LB: loop body
LE: loop exit
PB: predicated region body
PF: predicated region fallthrough
CT: control target
= control target key end

     0   :  { %s3666_s0 = inlined_call_operand.hbm [shape: f32[98], index: 0, kind: input, shape index: {}]   ;;  %s3667_s1 = inlined_call_operand.hbm [shape: f32[14,256], index: 1, kind: input, shape index: {}]   ;;  %s3668_s2 = inlined_call_operand.hbm [shape: f32[2,4,256], index: 2, kind: input, shape index: {}]   ;;  %s3669_s3 = inlined_call_operand.hbm [shape: f32[2,256], index: 3, kind: output, shape index: {}]  }
   0x1   :  { %3725 = sst [smem:[#allocation43_spill]] %s3669_s3 }
   0x2   :  { %8 = vsyncpa [#allocation7], 0 }
   0x3   :  { %9 = vsyncpa [#allocation5], 0 }
   0x4   :  { %10 = vsyncpa [#allocation10], 0 }
   0x5   :  { %11 = vsyncpa [#allocation6], 0  ;;  %s1967_s14 = scalar_lea.hbm %s3666_s0, 16 }
   0x6   :  { %p1968_p0 = scmp.ne.s32.totalorder %s3666_s0, %s1967_s14  ;;  %p1971_p1 = scmp.lt.u32.totalorder %s1967_s14, %s3666_s0 }
   0x8   :  { %p1973_p2 = pnand %p1971_p1, %p1968_p0 }
   0xa   :  { %1976 = shalt.err (!%p1973_p2)
}
   0xb   :  { %s2051_s19 = smov [#allocation4]   ;;  %s2052_s22 = smov [#allocation8]  }
   0xc   :  { %19 = dma.hbm_to_smem %s3666_s0, 16, %s2051_s19, [#allocation7]  }
   0xd   :  { %s25_s23 = sshll.u32 %s2052_s22, 4  ;;  %s1977_s26 = scalar_lea.hbm %s3667_s1, 512  ;;  %s26_s23 = int_to_ptr.vmem [resolvable:$true] %s25_s23 }
   0xe   :  { %p1978_p3 = scmp.ne.s32.totalorder %s3667_s1, %s1977_s26  ;;  %p1981_p4 = scmp.lt.u32.totalorder %s1977_s26, %s3667_s1 }
  0x10   :  { %p1983_p5 = pnand %p1981_p4, %p1978_p3 }
  0x12   :  { %1986 = shalt.err (!%p1983_p5)
}
  0x13   :  { %s1987_s4 = scalar_lea.vmem %s26_s23, 512  ;;  %p1992_p7 = scmp.lt.s32.totalorder %s26_s23, %s26_s23 }
  0x14   :  { %p1988_p6 = scmp.ne.s32.totalorder %s26_s23, %s1987_s4  ;;  %p1993_p8 = scmp.lt.s32.totalorder %s1987_s4, %s1987_s4 }
  0x16   :  { %p1994_p9 = por %p1993_p8, %p1992_p7 }
  0x18   :  { %p1995_p10 = pnand %p1994_p9, %p1988_p6 }
  0x1a   :  { %1998 = shalt.err (!%p1995_p10)
}
  0x1b   :  { %s2053_s0 = smov 256   ;;  %s2054_s5 = smov 16  }
  0x1c   :  { %31 = dma.hbm_to_vmem [thread:$0]  %s3667_s1, 512, %s26_s23, [#allocation5], %s2053_s0, %s2053_s0, %s2054_s5  }
  0x1d   :  { %s2055_s8 = smov [#allocation9]   ;;  %s1999_s12 = scalar_lea.hbm %s3668_s2, 256 }
  0x1e   :  { %s37_s9 = sshll.u32 %s2055_s8, 4  ;;  %p2000_p11 = scmp.ne.s32.totalorder %s3668_s2, %s1999_s12  ;;  %s38_s9 = int_to_ptr.vmem [resolvable:$true] %s37_s9 }
  0x1f   :  { %p2003_p12 = scmp.lt.u32.totalorder %s1999_s12, %s3668_s2 }
  0x21   :  { %p2005_p13 = pnand %p2003_p12, %p2000_p11 }
  0x23   :  { %2008 = shalt.err (!%p2005_p13)
}
  0x24   :  { %s2009_s17 = scalar_lea.vmem %s38_s9, 256  ;;  %p2014_p1 = scmp.lt.s32.totalorder %s38_s9, %s38_s9 }
  0x25   :  { %p2010_p0 = scmp.ne.s32.totalorder %s38_s9, %s2009_s17  ;;  %p2015_p2 = scmp.lt.s32.totalorder %s2009_s17, %s2009_s17 }
  0x27   :  { %p2016_p3 = por %p2015_p2, %p2014_p1 }
  0x29   :  { %p2017_p4 = pnand %p2016_p3, %p2010_p0 }
  0x2b   :  { %2020 = shalt.err (!%p2017_p4)
}
  0x2c   :  { %s2056_s1 = smov 128   ;;  %s2057_s18 = smov 8  }
  0x2d   :  { %43 = dma.hbm_to_vmem [thread:$0]  %s3668_s2, 256, %s38_s9, [#allocation10], %s2056_s1, %s2056_s1, %s2057_s18  }
  0x2e   :  { %2043 = dma.done.wait [#allocation7], 16  }
  0x2f   :  { %2044 = vsyncadd [#allocation7], 4294967280 }
  0x30   :  { %2045 = dma.done.wait [#allocation5], 512  }
  0x31   :  { %2046 = vsyncadd [#allocation5], 4294966784 }
  0x32   :  { %2047 = dma.done.wait [#allocation10], 256  }
  0x33   :  { %2048 = vsyncadd [#allocation10], 4294967040 }
  0x34   :  { %53 = sfence }
  0x35   :  { %v54_v0 = vld [vmem:[#allocation9] sm:$0xff]  ;;  %v55_v1 = vld [vmem:[#allocation9 + $0x8] sm:$0xff]  ;;  %vm62_vm0 = vcmask 1043456   ;;  %v135_v2 = vlaneseq  ;;  %v2058_v57 = vmov 1983009808   ;;  %vm152_vm1 = vcmask 1041409  }
  0x36   :  { %v58_v3 = vcombine.high %v54_v0, %v54_v0  ;;  %v59_v4 = vcombine.high %v55_v1, %v55_v1  ;;  %v63_v5 = vsel %vm62_vm0, %v54_v0, 0.0  ;;  %v77_v6 = vsel %vm62_vm0, %v55_v1, 0.0  ;;  %s2059_s2 = smov 50   ;;  %s2060_s21 = smov 51  }
  0x37   :  { %v64_v7 = vrot.slane %v63_v5, 4  ;;  %v78_v8 = vrot.slane %v77_v6, 4  ;;  %v95_v9 = vsel %vm62_vm0, %v54_v0, -inf  ;;  %v109_v10 = vsel %vm62_vm0, %v55_v1, -inf  ;;  %s2061_s22 = smov 49   ;;  %s2062_s23 = smov 48  }
  0x38   :  { %v70_v11 = vsel %vm62_vm0, %v58_v3, 0.0  ;;  %v84_v12 = vsel %vm62_vm0, %v59_v4, 0.0  ;;  %v96_v13 = vrot.slane %v95_v9, 4  ;;  %v102_v14 = vsel %vm62_vm0, %v58_v3, -inf  ;;  %s2063_s24 = smov 47   ;;  %s2064_s25 = smov 46  }
  0x39   :  { %v65_v15 = vadd.f32 %v64_v7, %v63_v5  ;;  %v71_v16 = vrot.slane %v70_v11, 4  ;;  %v79_v17 = vadd.f32 %v78_v8, %v77_v6  ;;  %v85_v18 = vrot.slane %v84_v12, 4  ;;  %s2065_s26 = smov 45   ;;  %s2066_s27 = smov 35  }
  0x3a   :  { %v97_v19 = vmax.f32 %v95_v9, %v96_v13  ;;  %v103_v20 = vrot.slane %v102_v14, 4  ;;  %v110_v21 = vrot.slane %v109_v10, 4  ;;  %v116_v22 = vsel %vm62_vm0, %v59_v4, -inf  ;;  %s2067_s28 = smov 34   ;;  %s2068_s29 = smov 33  }
  0x3b   :  { %v66_v23 = vrot.slane %v65_v15, 2  ;;  %v72_v24 = vadd.f32 %v71_v16, %v70_v11  ;;  %v80_v25 = vrot.slane %v79_v17, 2  ;;  %v86_v26 = vadd.f32 %v85_v18, %v84_v12  ;;  %s2069_s30 = smov 32   ;;  %s2070_s4 = smov 31  }
  0x3c   :  { %v98_v27 = vrot.slane %v97_v19, 2  ;;  %v104_v28 = vmax.f32 %v102_v14, %v103_v20  ;;  %v111_v29 = vmax.f32 %v109_v10, %v110_v21  ;;  %v117_v30 = vrot.slane %v116_v22, 4  ;;  %s2071_s0 = smov 30   ;;  %s2072_s6 = smov 29  }
  0x3d   :  { %v67_v31 = vadd.f32 %v66_v23, %v65_v15  ;;  %v73_v32 = vrot.slane %v72_v24, 2  ;;  %v81_v33 = vadd.f32 %v80_v25, %v79_v17  ;;  %v87_v34 = vrot.slane %v86_v26, 2  ;;  %s2073_s7 = smov 19   ;;  %s2074_s8 = smov 18  }
  0x3e   :  { %v99_v35 = vmax.f32 %v97_v19, %v98_v27  ;;  %v105_v36 = vrot.slane %v104_v28, 2  ;;  %v112_v37 = vrot.slane %v111_v29, 2  ;;  %v118_v38 = vmax.f32 %v116_v22, %v117_v30  ;;  %s2075_s9 = smov 17   ;;  %s2076_s10 = smov 3  }
  0x3f   :  { %v68_v39 = vrot.slane %v67_v31, 1  ;;  %v74_v40 = vadd.f32 %v73_v32, %v72_v24  ;;  %v82_v41 = vrot.slane %v81_v33, 1  ;;  %v88_v42 = vadd.f32 %v87_v34, %v86_v26  ;;  %s2077_s11 = smov 15   ;;  %s2078_s12 = smov 2   ;;  %v2273_v32 = vld [vmem:[#allocation8 + $0x18] sm:$0x3f] }
  0x40   :  { %v100_v43 = vrot.slane %v99_v35, 1  ;;  %v106_v44 = vmax.f32 %v104_v28, %v105_v36  ;;  %v113_v45 = vmax.f32 %v111_v29, %v112_v37  ;;  %v119_v46 = vrot.slane %v118_v38, 2  ;;  %s2079_s13 = smov 1   ;;  %s2080_s14 = smov 115  }
  0x41   :  { %v69_v47 = vadd.f32 %v68_v39, %v67_v31  ;;  %v75_v48 = vrot.slane %v74_v40, 1  ;;  %v83_v49 = vadd.f32 %v82_v41, %v81_v33  ;;  %v89_v50 = vrot.slane %v88_v42, 1  ;;  %s2232_s15 = sld [smem:[#allocation4 + $0x1]]  ;;  %s2234_s16 = sld [smem:[#allocation4 + $0x32]]  ;;  %v2271_v31 = vld [vmem:[#allocation8 + $0x10] sm:$0x3f] }
  0x42   :  { %v101_v51 = vmax.f32 %v99_v35, %v100_v43  ;;  %v107_v52 = vrot.slane %v106_v44, 1  ;;  %v114_v53 = vrot.slane %v113_v45, 1  ;;  %v120_v54 = vmax.f32 %v118_v38, %v119_v46  ;;  %s2082_s17 = smov 113   ;;  %s2238_s1 = sld [smem:[#allocation4 + $0x2]] }
  0x43   :  { %v76_v55 = vadd.f32 %v75_v48, %v74_v40  ;;  %v90_v56 = vadd.f32 %v89_v50, %v88_v42  ;;  %v133_v58 = vunpack.c.l.s4 %v2058_v57  ;;  %v2173_v59 = vshrl.u32 %v135_v2, 7  ;;  %s2240_s18 = sld [smem:[#allocation4 + $0x33]]  ;;  %s2244_s20 = sld [smem:[#allocation4 + $0x34]] }
  0x44   :  { %v108_v60 = vmax.f32 %v106_v44, %v107_v52  ;;  %v115_v61 = vmax.f32 %v113_v45, %v114_v53  ;;  %v121_v62 = vrot.slane %v120_v54, 1  ;;  %vm154_vm2 = vcmask 1043459   ;;  %s2242_s19 = sld [smem:[#allocation4 + $0x3]]  ;;  %s2350_s3 = sld [smem:[#allocation4 + $0xe]] }
  0x45   :  { %3726 = vst [vmem:[#allocation16_spill] sm:$0xff] %v2173_v59  ;;  %v131_v63 = vcombine.low %v69_v47, %v76_v55  ;;  %v134_v0 = vunpack.c.0.s8 %v133_v58  ;;  %v139_v1 = vcombine.low %v83_v49, %v90_v56  ;;  %vm156_vm3 = vcmask 1045509   ;;  %v2379_v58 = vld [vmem:[#allocation8] sm:$0xff] }
  0x46   :  { %v122_v3 = vmax.f32 %v120_v54, %v121_v62  ;;  %v166_v4 = vcombine.low %v101_v51, %v108_v60  ;;  %vm158_vm4 = vcmask 1047559   ;;  %vm292_vm5 = vcmask 1041408  }
  0x47   :  { %v137_v5 = vsub.s32 %v134_v0, %v2173_v59  ;;  %v2263_v30 = vand.u32 127, %v135_v2  ;;  %v2280_v2 = vsub.s32 0, %v2173_v59  ;;  %v2287_v33 = vsub.s32 1, %v2173_v59 }
  0x48   :  { %v174_v6 = vcombine.low %v115_v61, %v122_v3  ;;  %3727 = sst [smem:[#allocation17_spill]] %s2238_s1  ;;  %v439_v34 = vstv %s2232_s15  ;;  %v442_v35 = vstv %s2234_s16  ;;  %v2303_v36 = vsub.s32 2, %v2173_v59 }
  0x49   :  { %v138_v7 = vrot.slane %v131_v63, %v137_v5  ;;  %v146_v8 = vrot.slane %v139_v1, %v137_v5  ;;  %v173_v9 = vrot.slane %v166_v4, %v137_v5  ;;  %3729 = sst [smem:[#allocation19_spill]] %s2244_s20  ;;  %vm436_vm6 = vcmp.lt.s32.totalorder %v2263_v30, 50 }
  0x4a   :  { %v181_v10 = vrot.slane %v174_v6, %v137_v5  ;;  %3728 = sst [smem:[#allocation18_spill]] %s2242_s19  ;;  %v2306_v37 = vsub.s32 3, %v2173_v59  ;;  %v2314_v38 = vrot.slane %v2271_v31, %v2280_v2  ;;  %v2318_v39 = vrot.slane %v2273_v32, %v2280_v2 }
  0x4b   :  { %v151_v11 = vrot.slane %v146_v8, 7  ;;  %v472_v40 = vstv %s2238_s1  ;;  %v475_v41 = vstv %s2240_s18  ;;  %v2328_v42 = vrot.slane %v2271_v31, %v2287_v33  ;;  %s2381_s1 = sld [smem:[#allocation4 + $0x40]]  ;;  %s2091_s18 = smov 13  }
  0x4c   :  { %v184_v12 = vrot.slane %v181_v10, 7  ;;  %v2332_v43 = vrot.slane %v2273_v32, %v2287_v33  ;;  %v505_v44 = vstv %s2242_s19  ;;  %v2336_v45 = vsub.s32 4, %v2173_v59  ;;  %s2086_s19 = smov 127  }
  0x4d   :  { %v153_v13 = vsel %vm152_vm1, %v151_v11, %v138_v7  ;;  %v508_v46 = vstv %s2244_s20  ;;  %v2346_v49 = vsub.s32 5, %v2173_v59  ;;  %vm469_vm7 = vcmp.lt.s32.totalorder %v2263_v30, 49  ;;  %s2087_s20 = smov 112  }
  0x4e   :  { %v155_v14 = vsel %vm154_vm2, %v151_v11, %v153_v13  ;;  %v185_v15 = vsel %vm152_vm1, %v184_v12, %v173_v9  ;;  %v2357_v50 = vrot.slane %v2271_v31, %v2303_v36  ;;  %v2361_v51 = vrot.slane %v2273_v32, %v2303_v36 }
  0x4f   :  { %v157_v16 = vsel %vm156_vm3, %v151_v11, %v155_v14  ;;  %v186_v17 = vsel %vm154_vm2, %v184_v12, %v185_v15  ;;  %3748 = vst [vmem:[#allocation38_spill] sm:$0xff] %v2346_v49  ;;  %v2365_v52 = vrot.slane %v2271_v31, %v2306_v37  ;;  %v422_v53 = vsub.s32 7, %v2173_v59 }
  0x50   :  { %v159_v18 = vsel %vm158_vm4, %v151_v11, %v157_v16  ;;  %v187_v19 = vsel %vm156_vm3, %v184_v12, %v186_v17  ;;  %v2374_v54 = vrot.slane %v2273_v32, %v2306_v37  ;;  %v2389_v62 = vrot.slane %v2271_v31, %v2336_v45  ;;  %v2428_v11 = vld [vmem:[#allocation8 + $0x8] sm:$0xff] }
  0x51   :  { %161 = vst [vmem:[#allocation2] sm:$0xf] %v159_v18  ;;  %v188_v20 = vsel %vm158_vm4, %v184_v12, %v187_v19  ;;  %v2393_v63 = vrot.slane %v2273_v32, %v2336_v45  ;;  %v2403_v3 = vrot.slane %v2271_v31, %v2346_v49  ;;  %vm502_vm8 = vcmp.lt.s32.totalorder %v2263_v30, 48 }
  0x52   :  { %190 = vst [vmem:[#allocation3] sm:$0xf] %v188_v20  ;;  %v2417_v7 = vrot.slane %v2273_v32, %v2346_v49  ;;  %v2420_v8 = vrot.slane %v2379_v58, %v422_v53  ;;  %vm535_vm9 = vcmp.lt.s32.totalorder %v2263_v30, 47  ;;  %vm568_vm10 = vcmp.lt.s32.totalorder %v2263_v30, 46 }
  0x53   :  { %vm601_vm11 = vcmp.lt.s32.totalorder %v2263_v30, 45  ;;  %vm646_vm12 = vcmp.lt.s32.totalorder %v2263_v30, 35  ;;  %vm671_vm13 = vcmp.lt.s32.totalorder %v2263_v30, 34  ;;  %vm696_vm14 = vcmp.lt.s32.totalorder %v2263_v30, 33 }
  0x54   :  { %vm721_vm15 = vcmp.lt.s32.totalorder %v2263_v30, 32  ;;  %vm403_vm0 = vcmp.lt.s32.totalorder %v2263_v30, 51  ;;  %vm746_vm1 = vcmp.lt.s32.totalorder %v2263_v30, 31  ;;  %vm771_vm2 = vcmp.lt.s32.totalorder %v2263_v30, 30 }
  0x55   :  { %vm796_vm3 = vcmp.lt.s32.totalorder %v2263_v30, 29  ;;  %vm833_vm4 = vcmp.lt.s32.totalorder %v2263_v30, 19 }
  0x58   :  { %v266_v21 = vld [vmem:[#allocation2] sm:$0xf] }
  0x59   :  { %v267_v22 = vmul.f32 0.25, %v266_v21  ;;  %v1956_v23 = vld [vmem:[#allocation3] ss:$0 sps:$4 sm:$0xff]  }
  0x5a   :  { %v288_v25 = vrot.slane %v1956_v23, %v137_v5 }
  0x5b   :  { %v276_v24 = vrot.slane %v267_v22, %v137_v5 }
  0x5c   :  { %v289_v28 = vcombine.high %v288_v25, %v288_v25 }
  0x5d   :  { %v2176_v26 = vsel %vm292_vm5, %v276_v24, %v288_v25  ;;  %v277_v27 = vcombine.high %v276_v24, %v276_v24 }
  0x5e   :  { %432 = vrot.lane.b32.xlu1 %v2176_v26, %s2059_s2  ;;  %397 = vrot.lane.b32.xlu0 %v2176_v26, %s2060_s21 }
  0x5f   :  { %v2181_v29 = vsel %vm292_vm5, %v277_v27, %v289_v28  ;;  %v2465_v27 = vrot.slane %v2428_v11, %v422_v53  ;;  %vm858_vm5 = vcmp.lt.s32.totalorder %v2263_v30, 18 }
  0x62   :  { %465 = vrot.lane.b32.xlu0 %v2176_v26, %s2061_s22  ;;  %434 = vrot.lane.b32.xlu1 %v2181_v29, %s2059_s2  ;;  %s2246_s2 = sld [smem:[#allocation4 + $0x4]] }
  0x66   :  { %498 = vrot.lane.b32.xlu0 %v2176_v26, %s2062_s23  ;;  %467 = vrot.lane.b32.xlu1 %v2181_v29, %s2061_s22  ;;  %s2250_s22 = sld [smem:[#allocation4 + $0x35]] }
  0x68   :  { %3730 = sst [smem:[#allocation20_spill]] %s2246_s2  ;;  %v538_v47 = vstv %s2246_s2  ;;  %s2368_s2 = sld [smem:[#allocation4 + $0x3f]] }
  0x6a   :  { %531 = vrot.lane.b32.xlu0 %v2176_v26, %s2063_s24  ;;  %500 = vrot.lane.b32.xlu1 %v2181_v29, %s2062_s23  ;;  %s2252_s23 = sld [smem:[#allocation4 + $0x5]] }
  0x6c   :  { %3731 = sst [smem:[#allocation21_spill]] %s2250_s22  ;;  %v541_v48 = vstv %s2250_s22  ;;  %s2383_s22 = sld [smem:[#allocation4 + $0x10]] }
  0x6e   :  { %564 = vrot.lane.b32.xlu0 %v2176_v26, %s2064_s25  ;;  %533 = vrot.lane.b32.xlu1 %v2181_v29, %s2063_s24  ;;  %s2254_s24 = sld [smem:[#allocation4 + $0x36]] }
  0x70   :  { %3732 = sst [smem:[#allocation22_spill]] %s2252_s23  ;;  %v571_v55 = vstv %s2252_s23  ;;  %s2398_s23 = sld [smem:[#allocation4 + $0x11]] }
  0x72   :  { %597 = vrot.lane.b32.xlu0 %v2176_v26, %s2065_s26  ;;  %566 = vrot.lane.b32.xlu1 %v2181_v29, %s2064_s25  ;;  %s2256_s25 = sld [smem:[#allocation4 + $0x6]] }
  0x73   :  { %3750 = sst [smem:[#allocation40_spill]] %s2383_s22  ;;  %s2509_s22 = sld [smem:[#allocation4 + $0x23]] }
  0x74   :  { %3733 = sst [smem:[#allocation23_spill]] %s2254_s24  ;;  %v574_v56 = vstv %s2254_s24  ;;  %s2408_s24 = sld [smem:[#allocation4 + $0x42]] }
  0x76   :  { %642 = vrot.lane.b32.xlu0 %v2176_v26, %s2066_s27  ;;  %599 = vrot.lane.b32.xlu1 %v2181_v29, %s2065_s26  ;;  %s2258_s26 = sld [smem:[#allocation4 + $0x37]] }
  0x78   :  { %3734 = sst [smem:[#allocation24_spill]] %s2256_s25  ;;  %s2396_s25 = sld [smem:[#allocation4 + $0x41]] }
  0x79   :  { %s3765_s15 = sld [smem:[#allocation24_spill]] }
  0x7a   :  { %667 = vrot.lane.b32.xlu0 %v2176_v26, %s2067_s28  ;;  %644 = vrot.lane.b32.xlu1 %v2181_v29, %s2066_s27  ;;  %s2260_s27 = sld [smem:[#allocation4 + $0x7]] }
  0x7c   :  { %3735 = sst [smem:[#allocation25_spill]] %s2258_s26  ;;  %v607_v0 = vstv %s2258_s26  ;;  %s2410_s26 = sld [smem:[#allocation4 + $0x15]] }
  0x7e   :  { %692 = vrot.lane.b32.xlu0 %v2176_v26, %s2068_s29  ;;  %669 = vrot.lane.b32.xlu1 %v2181_v29, %s2067_s28  ;;  %s2265_s28 = sld [smem:[#allocation4 + $0x38]] }
  0x80   :  { %3736 = sst [smem:[#allocation26_spill]] %s2260_s27  ;;  %s2426_s27 = sld [smem:[#allocation4 + $0x16]] }
  0x82   :  { %717 = vrot.lane.b32.xlu0 %v2176_v26, %s2069_s30  ;;  %694 = vrot.lane.b32.xlu1 %v2181_v29, %s2068_s29  ;;  %s2267_s29 = sld [smem:[#allocation4 + $0x8]]  ;;  %3751 = sst [smem:[#allocation41_spill]] %s2410_s26 }
  0x83   :  { %s2518_s26 = sld [smem:[#allocation4 + $0x54]] }
  0x84   :  { %3737 = sst [smem:[#allocation27_spill]] %s2265_s28  ;;  %s2435_s28 = sld [smem:[#allocation4 + $0x17]] }
  0x86   :  { %719 = vrot.lane.b32.xlu1 %v2181_v29, %s2069_s30  ;;  %399 = vrot.lane.b32.xlu0 %v2181_v29, %s2060_s21  ;;  %s2083_s21 = smov 99   ;;  %s2084_s30 = smov 98  }
  0x88   :  { %3738 = sst [smem:[#allocation28_spill]] %s2267_s29  ;;  %s2424_s29 = sld [smem:[#allocation4 + $0x46]] }
  0x89   :  { %s3768_s16 = sld [smem:[#allocation28_spill]] }
  0x8a   :  { %744 = vrot.lane.b32.xlu1 %v2181_v29, %s2070_s4  ;;  %742 = vrot.lane.b32.xlu0 %v2176_v26, %s2070_s4  ;;  %s2275_s4 = sld [smem:[#allocation4 + $0x39]] }
  0x8e   :  { %769 = vrot.lane.b32.xlu1 %v2181_v29, %s2071_s0  ;;  %767 = vrot.lane.b32.xlu0 %v2176_v26, %s2071_s0  ;;  %s2277_s0 = sld [smem:[#allocation4 + $0x9]] }
  0x92   :  { %794 = vrot.lane.b32.xlu1 %v2181_v29, %s2072_s6  ;;  %792 = vrot.lane.b32.xlu0 %v2176_v26, %s2072_s6  ;;  %s2282_s6 = sld [smem:[#allocation4 + $0x3a]] }
  0x94   :  { %3739 = sst [smem:[#allocation29_spill]] %s2277_s0  ;;  %s2443_s0 = sld [smem:[#allocation4 + $0x48]] }
  0x96   :  { %831 = vrot.lane.b32.xlu1 %v2181_v29, %s2073_s7  ;;  %829 = vrot.lane.b32.xlu0 %v2176_v26, %s2073_s7  ;;  %s2284_s7 = sld [smem:[#allocation4 + $0xa]] }
  0x98   :  { %3740 = sst [smem:[#allocation30_spill]] %s2282_s6  ;;  %s2479_s6 = sld [smem:[#allocation4 + $0x1e]] }
  0x9a   :  { %856 = vrot.lane.b32.xlu1 %v2181_v29, %s2074_s8  ;;  %854 = vrot.lane.b32.xlu0 %v2176_v26, %s2074_s8  ;;  %s2289_s8 = sld [smem:[#allocation4 + $0x3b]] }
  0x9c   :  { %3741 = sst [smem:[#allocation31_spill]] %s2284_s7  ;;  %s2445_s7 = sld [smem:[#allocation4 + $0x1c]] }
  0x9e   :  { %881 = vrot.lane.b32.xlu1 %v2181_v29, %s2075_s9  ;;  %879 = vrot.lane.b32.xlu0 %v2176_v26, %s2075_s9  ;;  %s2291_s9 = sld [smem:[#allocation4 + $0x49]]  ;;  %3752 = sst [smem:[#allocation42_spill]] %s2479_s6 }
  0x9f   :  { %s2093_s6 = smov 111  }
  0xa0   :  { %3742 = sst [smem:[#allocation32_spill]] %s2289_s8  ;;  %s2477_s8 = sld [smem:[#allocation4 + $0x4e]] }
  0xa2   :  { %906 = vrot.lane.b32.xlu1 %v2181_v29, %s2054_s5  ;;  %904 = vrot.lane.b32.xlu0 %v2176_v26, %s2054_s5  ;;  %s2081_s5 = smov 114  }
  0xa4   :  { %v1094_v1 = vstv %s2291_s9  ;;  %s3761_s9 = sld [smem:[#allocation27_spill]] }
  0xa5   :  { %v1095_v15 = vmul.f32 %v1094_v1, %v2176_v26  ;;  %v1096_v13 = vmul.f32 %v1094_v1, %v2181_v29 }
  0xa6   :  { %1016 = vrot.lane.b32.xlu1 %v2176_v26, %s2076_s10  ;;  %929 = vrot.lane.b32.xlu0 %v2176_v26, %s2077_s11 }
  0xa7   :  { %v1099_v31 = vrot.slane %v1095_v15, 2 }
  0xaa   :  { %1041 = vrot.lane.b32.xlu1 %v2176_v26, %s2078_s12  ;;  %1018 = vrot.lane.b32.xlu0 %v2181_v29, %s2076_s10  ;;  %s2293_s10 = sld [smem:[#allocation4]] }
  0xae   :  { %1066 = vrot.lane.b32.xlu1 %v2176_v26, %s2079_s13  ;;  %1043 = vrot.lane.b32.xlu0 %v2181_v29, %s2078_s12  ;;  %s2085_s12 = smov 14  }
  0xb0   :  { %3743 = sst [smem:[#allocation33_spill]] %s2293_s10  ;;  %s2088_s10 = smov 97  }
  0xb2   :  { %1196 = vrot.lane.b32.xlu1 %v2176_v26, %s2080_s14  ;;  %1068 = vrot.lane.b32.xlu0 %v2181_v29, %s2079_s13  ;;  %s2308_s13 = sld [smem:[#allocation4 + $0xb]] }
  0xb6   :  { %1221 = vrot.lane.b32.xlu1 %v2176_v26, %s2081_s5  ;;  %1198 = vrot.lane.b32.xlu0 %v2181_v29, %s2080_s14  ;;  %s2310_s14 = sld [smem:[#allocation4 + $0x3c]] }
  0xb8   :  { %3745 = sst [smem:[#allocation35_spill]] %s2308_s13 }
  0xb9   :  { %s2460_s13 = sld [smem:[#allocation4 + $0x12]] }
  0xba   :  { %931 = vrot.lane.b32.xlu1 %v2181_v29, %s2077_s11  ;;  %1223 = vrot.lane.b32.xlu0 %v2181_v29, %s2081_s5  ;;  %s2295_s11 = sld [smem:[#allocation4 + $0x31]]  ;;  %s2322_s5 = sld [smem:[#allocation4 + $0xc]] }
  0xbc   :  { %3746 = sst [smem:[#allocation36_spill]] %s2310_s14 }
  0xbd   :  { %s2470_s14 = sld [smem:[#allocation4 + $0x43]] }
  0xbe   :  { %1248 = vrot.lane.b32.xlu1 %v2181_v29, %s2082_s17  ;;  %1246 = vrot.lane.b32.xlu0 %v2176_v26, %s2082_s17  ;;  %s2324_s17 = sld [smem:[#allocation4 + $0x3d]] }
  0xc0   :  { %3744 = sst [smem:[#allocation34_spill]] %s2295_s11  ;;  %s2458_s11 = sld [smem:[#allocation4 + $0x4d]] }
  0xc1   :  { %3747 = sst [smem:[#allocation37_spill]] %s2322_s5  ;;  %s2472_s5 = sld [smem:[#allocation4 + $0x1d]] }
  0xc2   :  { %1385 = vrot.lane.b32.xlu1 %v2181_v29, %s2083_s21  ;;  %1383 = vrot.lane.b32.xlu0 %v2176_v26, %s2083_s21  ;;  %s2338_s21 = sld [smem:[#allocation4 + $0xd]] }
  0xc6   :  { %1410 = vrot.lane.b32.xlu1 %v2181_v29, %s2084_s30  ;;  %1408 = vrot.lane.b32.xlu0 %v2176_v26, %s2084_s30  ;;  %s2340_s30 = sld [smem:[#allocation4 + $0x18]] }
  0xca   :  { %956 = vrot.lane.b32.xlu1 %v2181_v29, %s2085_s12  ;;  %954 = vrot.lane.b32.xlu0 %v2176_v26, %s2085_s12  ;;  %s2348_s12 = sld [smem:[#allocation4 + $0x3e]] }
  0xcc   :  { %v1091_v21 = vstv %s2340_s30  ;;  %s2570_s30 = sld [smem:[#allocation4 + $0x24]] }
  0xcd   :  { %v1092_v53 = vmul.f32 %v1091_v21, %v2176_v26  ;;  %v1093_v1 = vmul.f32 %v1091_v21, %v2181_v29 }
  0xce   :  { %1111 = vrot.lane.b32.xlu1 %v2181_v29, %s2086_s19  ;;  %1109 = vrot.lane.b32.xlu0 %v2176_v26, %s2086_s19  ;;  %s2370_s19 = sld [smem:[#allocation4 + $0xf]] }
  0xcf   :  { %v1103_v18 = vadd.f32 %v1099_v31, %v1092_v53 }
  0xd0   :  { %v433_v60 = vpop.permute.xlu1 %432  ;;  %v2385_v61 = vpop.permute.xlu0 %397 }
  0xd2   :  { %1273 = vrot.lane.b32.xlu1 %v2181_v29, %s2087_s20  ;;  %1271 = vrot.lane.b32.xlu0 %v2176_v26, %s2087_s20  ;;  %s2433_s20 = sld [smem:[#allocation4 + $0x47]] }
  0xd4   :  { %3749 = sst [smem:[#allocation39_spill]] %s2370_s19  ;;  %v466_v16 = vpop.permute.xlu0 %465  ;;  %v435_v17 = vpop.permute.xlu1 %434  ;;  %s2507_s19 = sld [smem:[#allocation4 + $0x4f]] }
  0xd5   :  { %v2450_v22 = vsel %vm436_vm6, %v433_v60, %v435_v17  ;;  %v2454_v23 = vsel %vm436_vm6, %v435_v17, %v433_v60  ;;  %vm883_vm6 = vcmp.lt.s32.totalorder %v2263_v30, 17 }
  0xd6   :  { %1435 = vrot.lane.b32.xlu1 %v2181_v29, %s2088_s10  ;;  %1433 = vrot.lane.b32.xlu0 %v2176_v26, %s2088_s10  ;;  %s2089_s10 = smov 83   ;;  %v444_v31 = vmul.f32 %v442_v35, %v2450_v22  ;;  %v441_v6 = vmul.f32 %v439_v34, %v2450_v22 }
  0xd8   :  { %v499_v32 = vpop.permute.xlu0 %498  ;;  %v468_v28 = vpop.permute.xlu1 %467 }
  0xd9   :  { %v2492_v20 = vsel %vm469_vm7, %v466_v16, %v468_v28  ;;  %v2496_v15 = vsel %vm469_vm7, %v468_v28, %v466_v16  ;;  %v443_v28 = vmul.f32 %v442_v35, %v2454_v23  ;;  %v1100_v16 = vrot.slane %v1096_v13, 2 }
  0xda   :  { %1572 = vrot.lane.b32.xlu1 %v2181_v29, %s2089_s10  ;;  %1570 = vrot.lane.b32.xlu0 %v2176_v26, %s2089_s10  ;;  %s2090_s10 = smov 82   ;;  %v477_v24 = vmul.f32 %v475_v41, %v2492_v20  ;;  %vm908_vm7 = vcmp.lt.s32.totalorder %v2263_v30, 16 }
  0xdb   :  { %v447_v10 = vrot.slane %v443_v28, 2  ;;  %v2584_v9 = vadd.f32 %v1100_v16, %v1093_v1 }
  0xdc   :  { %v532_v14 = vpop.permute.xlu0 %531  ;;  %v501_v17 = vpop.permute.xlu1 %500  ;;  %v481_v28 = vrot.slane %v477_v24, 2  ;;  %v474_v24 = vmul.f32 %v472_v40, %v2492_v20 }
  0xdd   :  { %v503_v53 = vsel %vm502_vm8, %v499_v32, %v501_v17  ;;  %v504_v25 = vsel %vm502_vm8, %v501_v17, %v499_v32  ;;  %v2545_v32 = vmul.f32 %v1103_v18, %v2357_v50  ;;  %v476_v17 = vmul.f32 %v475_v41, %v2496_v15 }
  0xde   :  { %1597 = vrot.lane.b32.xlu1 %v2181_v29, %s2090_s10  ;;  %1595 = vrot.lane.b32.xlu0 %v2176_v26, %s2090_s10  ;;  %v448_v18 = vrot.slane %v444_v31, 2  ;;  %v440_v41 = vmul.f32 %v439_v34, %v2454_v23  ;;  %s2572_s10 = sld [smem:[#allocation4 + $0x55]]  ;;  %vm1020_vm8 = vcmp.lt.s32.totalorder %v2263_v30, 3 }
  0xdf   :  { %v480_v23 = vrot.slane %v476_v17, 2  ;;  %v506_v17 = vmul.f32 %v505_v44, %v504_v25 }
  0xe0   :  { %v565_v60 = vpop.permute.xlu0 %564  ;;  %v534_v19 = vpop.permute.xlu1 %533  ;;  %v451_v57 = vadd.f32 %v447_v10, %v440_v41  ;;  %v452_v4 = vadd.f32 %v448_v18, %v441_v6  ;;  %v507_v10 = vmul.f32 %v505_v44, %v503_v53 }
  0xe1   :  { %v536_v35 = vsel %vm535_vm9, %v532_v14, %v534_v19  ;;  %v537_v12 = vsel %vm535_vm9, %v534_v19, %v532_v14  ;;  %v509_v14 = vmul.f32 %v508_v46, %v504_v25  ;;  %v510_v19 = vmul.f32 %v508_v46, %v503_v53 }
  0xe2   :  { %981 = vrot.lane.b32.xlu1 %v2181_v29, %s2091_s18  ;;  %v542_v34 = vmul.f32 %v541_v48, %v537_v12  ;;  %v543_v22 = vmul.f32 %v541_v48, %v536_v35  ;;  %979 = vrot.lane.b32.xlu0 %v2176_v26, %s2091_s18  ;;  %v473_v48 = vmul.f32 %v472_v40, %v2496_v15  ;;  %s2092_s18 = smov 126   ;;  %vm1045_vm9 = vcmp.lt.s32.totalorder %v2263_v30, 2 }
  0xe3   :  { %v513_v6 = vrot.slane %v509_v14, 2  ;;  %v485_v40 = vadd.f32 %v481_v28, %v474_v24  ;;  %v539_v18 = vmul.f32 %v538_v47, %v537_v12  ;;  %v540_v41 = vmul.f32 %v538_v47, %v536_v35 }
  0xe4   :  { %v598_v31 = vpop.permute.xlu0 %597  ;;  %v567_v21 = vpop.permute.xlu1 %566  ;;  %v546_v16 = vrot.slane %v542_v34, 2  ;;  %v547_v1 = vrot.slane %v543_v22, 2  ;;  %v484_v15 = vadd.f32 %v480_v23, %v473_v48  ;;  %v2619_v34 = vmul.f32 %v2318_v39, %v452_v4 }
  0xe5   :  { %v569_v46 = vsel %vm568_vm10, %v565_v60, %v567_v21  ;;  %v570_v5 = vsel %vm568_vm10, %v567_v21, %v565_v60  ;;  %v514_v60 = vrot.slane %v510_v19, 2  ;;  %v2616_v19 = vmul.f32 %v2314_v38, %v451_v57 }
  0xe6   :  { %1136 = vrot.lane.b32.xlu1 %v2181_v29, %s2092_s18  ;;  %1134 = vrot.lane.b32.xlu0 %v2176_v26, %s2092_s18  ;;  %v575_v20 = vmul.f32 %v574_v56, %v570_v5  ;;  %v576_v44 = vmul.f32 %v574_v56, %v569_v46  ;;  %v517_v12 = vadd.f32 %v513_v6, %v506_v17  ;;  %s3764_s18 = sld [smem:[#allocation26_spill]]  ;;  %vm1070_vm10 = vcmp.lt.s32.totalorder %v2263_v30, 1 }
  0xe7   :  { %v518_v35 = vadd.f32 %v514_v60, %v507_v10  ;;  %v550_v22 = vadd.f32 %v546_v16, %v539_v18  ;;  %v551_v57 = vadd.f32 %v547_v1, %v540_v41  ;;  %v2627_v4 = vmul.f32 %v2328_v42, %v484_v15 }
  0xe8   :  { %v643_v25 = vpop.permute.xlu0 %642  ;;  %v600_v53 = vpop.permute.xlu1 %599  ;;  %v2630_v23 = vmul.f32 %v2332_v43, %v485_v40  ;;  %v579_v28 = vrot.slane %v575_v20, 2  ;;  %v572_v17 = vmul.f32 %v571_v55, %v570_v5  ;;  %v573_v10 = vmul.f32 %v571_v55, %v569_v46 }
  0xe9   :  { %v602_v21 = vsel %vm601_vm11, %v598_v31, %v600_v53  ;;  %v603_v14 = vsel %vm601_vm11, %v600_v53, %v598_v31  ;;  %v580_v31 = vrot.slane %v576_v44, 2  ;;  %v3762_v15 = vstv %s3761_s9  ;;  %s2095_s9 = smov 81  }
  0xea   :  { %1298 = vrot.lane.b32.xlu1 %v2181_v29, %s2093_s6  ;;  %1296 = vrot.lane.b32.xlu0 %v2176_v26, %s2093_s6  ;;  %v608_v16 = vmul.f32 %v607_v0, %v603_v14  ;;  %v609_v1 = vmul.f32 %v607_v0, %v602_v21  ;;  %v3763_v20 = vmov %v3762_v15  ;;  %s2094_s6 = smov 96   ;;  %v2651_v55 = vmul.f32 %v2357_v50, %v517_v12 }
  0xeb   :  { %v2654_v5 = vmul.f32 %v2361_v51, %v518_v35  ;;  %v2657_v0 = vmul.f32 %v2365_v52, %v550_v22  ;;  %v2660_v46 = vmul.f32 %v2374_v54, %v551_v57  ;;  %v584_v53 = vadd.f32 %v580_v31, %v573_v10 }
  0xec   :  { %v668_v48 = vpop.permute.xlu0 %667  ;;  %v645_v24 = vpop.permute.xlu1 %644  ;;  %vm1200_vm11 = vcmp.lt.s32.totalorder %v2263_v30, 115 }
  0xed   :  { %v647_v6 = vsel %vm646_vm12, %v643_v25, %v645_v24  ;;  %v648_v60 = vsel %vm646_vm12, %v645_v24, %v643_v25  ;;  %v583_v25 = vadd.f32 %v579_v28, %v572_v17  ;;  %v3769_v28 = vstv %s3765_s15  ;;  %s3779_s15 = sld [smem:[#allocation31_spill]] }
  0xee   :  { %v653_v40 = vmul.f32 %v3762_v15, %v648_v60  ;;  %v654_v44 = vmul.f32 %v3763_v20, %v647_v6  ;;  %1460 = vrot.lane.b32.xlu1 %v2181_v29, %s2094_s6  ;;  %1458 = vrot.lane.b32.xlu0 %v2176_v26, %s2094_s6  ;;  %v3766_v15 = vstv %s3764_s18  ;;  %v605_v31 = vmul.f32 %v3769_v28, %v603_v14  ;;  %s3773_s18 = sld [smem:[#allocation30_spill]]  ;;  %s2096_s6 = smov 125  }
  0xef   :  { %v650_v35 = vmul.f32 %v3766_v15, %v648_v60  ;;  %v3767_v20 = vmov %v3766_v15  ;;  %v3770_v17 = vmov %v3769_v28  ;;  %v3771_v15 = vstv %s2275_s4  ;;  %s3776_s4 = sld [smem:[#allocation29_spill]] }
  0xf0   :  { %v657_v18 = vrot.slane %v653_v40, 2  ;;  %v658_v41 = vrot.slane %v654_v44, 2  ;;  %v693_v12 = vpop.permute.xlu0 %692  ;;  %v670_v24 = vpop.permute.xlu1 %669  ;;  %v651_v56 = vmul.f32 %v3767_v20, %v647_v6  ;;  %v606_v10 = vmul.f32 %v3770_v17, %v602_v21 }
  0xf1   :  { %v672_v22 = vsel %vm671_vm13, %v668_v48, %v670_v24  ;;  %v673_v57 = vsel %vm671_vm13, %v670_v24, %v668_v48  ;;  %v612_v40 = vrot.slane %v608_v16, 2  ;;  %v613_v44 = vrot.slane %v609_v1, 2 }
  0xf2   :  { %1622 = vrot.lane.b32.xlu1 %v2181_v29, %s2095_s9  ;;  %v661_v6 = vadd.f32 %v657_v18, %v650_v35  ;;  %v662_v60 = vadd.f32 %v658_v41, %v651_v56  ;;  %v678_v20 = vmul.f32 %v3771_v15, %v673_v57  ;;  %v3772_v47 = vmov %v3771_v15 }
  0xf3   :  { %v679_v13 = vmul.f32 %v3772_v47, %v672_v22  ;;  %1620 = vrot.lane.b32.xlu0 %v2176_v26, %s2095_s9  ;;  %v2683_v48 = vmul.f32 %v2389_v62, %v583_v25  ;;  %v2686_v21 = vmul.f32 %v2393_v63, %v584_v53  ;;  %v3774_v14 = vstv %s3768_s16  ;;  %s3782_s16 = sld [smem:[#allocation32_spill]]  ;;  %s2097_s9 = smov 110  }
  0xf4   :  { %v675_v16 = vmul.f32 %v3774_v14, %v673_v57  ;;  %v3775_v1 = vmov %v3774_v14  ;;  %v718_v18 = vpop.permute.xlu0 %717  ;;  %v695_v56 = vpop.permute.xlu1 %694  ;;  %v682_v41 = vrot.slane %v678_v20, 2  ;;  %v2697_v53 = vadd.f32 %v612_v40, %v605_v31 }
  0xf5   :  { %v676_v24 = vmul.f32 %v3775_v1, %v672_v22  ;;  %v683_v47 = vrot.slane %v679_v13, 2  ;;  %v697_v35 = vsel %vm696_vm14, %v693_v12, %v695_v56  ;;  %v698_v25 = vsel %vm696_vm14, %v695_v56, %v693_v12 }
  0xf6   :  { %v2699_v28 = vadd.f32 %v613_v44, %v606_v10  ;;  %v3777_v57 = vstv %s3773_s18  ;;  %1161 = vrot.lane.b32.xlu1 %v2181_v29, %s2096_s6  ;;  %v663_v13 = vmul.f32 %v661_v6, %v2420_v8  ;;  %v664_v20 = vmul.f32 %v662_v60, %v2465_v27  ;;  %s3785_s18 = sld [smem:[#allocation33_spill]] }
  0xf7   :  { %v703_v22 = vmul.f32 %v3777_v57, %v698_v25  ;;  %v3778_v17 = vmov %v3777_v57  ;;  %v686_v14 = vadd.f32 %v682_v41, %v675_v16  ;;  %v687_v1 = vadd.f32 %v683_v47, %v676_v24  ;;  %1159 = vrot.lane.b32.xlu0 %v2176_v26, %s2096_s6  ;;  %s3790_s6 = sld [smem:[#allocation35_spill]] }
  0xf8   :  { %v704_v15 = vmul.f32 %v3778_v17, %v697_v35  ;;  %v3780_v12 = vstv %s3776_s4  ;;  %v720_v57 = vpop.permute.xlu1 %719  ;;  %v400_v6 = vpop.permute.xlu0 %399  ;;  %v3783_v17 = vstv %s3779_s15  ;;  %s3788_s4 = sld [smem:[#allocation34_spill]]  ;;  %s2098_s15 = smov 95   ;;  %vm933_vm12 = vcmp.lt.s32.totalorder %v2263_v30, 15 }
  0xf9   :  { %v700_v31 = vmul.f32 %v3780_v12, %v698_v25  ;;  %v3781_v10 = vmov %v3780_v12  ;;  %v707_v44 = vrot.slane %v703_v22, 2  ;;  %v688_v60 = vmul.f32 %v686_v14, %v2314_v38 }
  0xfa   :  { %v701_v40 = vmul.f32 %v3781_v10, %v697_v35  ;;  %v708_v56 = vrot.slane %v704_v15, 2  ;;  %v689_v16 = vmul.f32 %v687_v1, %v2318_v39  ;;  %v722_v24 = vsel %vm721_vm15, %v718_v18, %v720_v57  ;;  %1323 = vrot.lane.b32.xlu1 %v2181_v29, %s2097_s9 }
  0xfb   :  { %v723_v41 = vsel %vm721_vm15, %v720_v57, %v718_v18  ;;  %v711_v47 = vadd.f32 %v707_v44, %v700_v31  ;;  %v3784_v22 = vmov %v3783_v17  ;;  %v690_v15 = vadd.f32 %v688_v60, %v663_v13  ;;  %1321 = vrot.lane.b32.xlu0 %v2176_v26, %s2097_s9  ;;  %s3798_s9 = sld [smem:[#allocation37_spill]] }
  0xfc   :  { %v712_v25 = vadd.f32 %v708_v56, %v701_v40  ;;  %v725_v35 = vmul.f32 %v3783_v17, %v723_v41  ;;  %v726_v12 = vmul.f32 %v3784_v22, %v722_v24  ;;  %v691_v14 = vadd.f32 %v689_v16, %v664_v20  ;;  %v745_v20 = vpop.permute.xlu1 %744  ;;  %v743_v44 = vpop.permute.xlu0 %742 }
  0xfd   :  { %v3786_v1 = vstv %s3782_s16  ;;  %v713_v18 = vmul.f32 %v711_v47, %v2328_v42  ;;  %v404_v40 = vsel %vm403_vm0, %v2385_v61, %v400_v6  ;;  %v405_v13 = vsel %vm403_vm0, %v400_v6, %v2385_v61  ;;  %s3794_s16 = sld [smem:[#allocation36_spill]] }
  0xfe   :  { %v728_v10 = vmul.f32 %v3786_v1, %v723_v41  ;;  %v3787_v59 = vmov %v3786_v1  ;;  %v714_v31 = vmul.f32 %v712_v25, %v2332_v43  ;;  %v3789_v57 = vstv %s3785_s18  ;;  %1485 = vrot.lane.b32.xlu1 %v2181_v29, %s2098_s15  ;;  %s2099_s18 = smov 80  }
  0xff   :  { %v729_v49 = vmul.f32 %v3787_v59, %v722_v24  ;;  %v407_v60 = vmul.f32 %v3789_v57, %v405_v13  ;;  %v3791_v16 = vmov %v3789_v57  ;;  %v715_v41 = vadd.f32 %v713_v18, %v690_v15  ;;  %1483 = vrot.lane.b32.xlu0 %v2176_v26, %s2098_s15  ;;  %s2874_s15 = sld [smem:[#allocation4 + $0x44]] }
 0x100   :  { %v732_v59 = vrot.slane %v728_v10, 2  ;;  %v408_v24 = vmul.f32 %v3791_v16, %v404_v40  ;;  %v716_v47 = vadd.f32 %v714_v31, %v691_v14  ;;  %v3792_v25 = vstv %s3788_s4  ;;  %v770_v57 = vpop.permute.xlu1 %769  ;;  %v768_v16 = vpop.permute.xlu0 %767  ;;  %s2100_s4 = smov 109  }
 0x101   :  { %v733_v56 = vrot.slane %v729_v49, 2  ;;  %v410_v17 = vmul.f32 %v3792_v25, %v405_v13  ;;  %v3793_v22 = vmov %v3792_v25  ;;  %v747_v49 = vsel %vm746_vm1, %v743_v44, %v745_v20 }
 0x102   :  { %v411_v1 = vmul.f32 %v3793_v22, %v404_v40  ;;  %v736_v61 = vadd.f32 %v732_v59, %v725_v35  ;;  %v748_v10 = vsel %vm746_vm1, %v745_v20, %v743_v44  ;;  %v3795_v18 = vstv %s3790_s6  ;;  %1647 = vrot.lane.b32.xlu1 %v2181_v29, %s2099_s18  ;;  %s2104_s6 = smov 78  }
 0x103   :  { %v737_v6 = vadd.f32 %v733_v56, %v726_v12  ;;  %v414_v15 = vrot.slane %v410_v17, 2  ;;  %v750_v31 = vmul.f32 %v3795_v18, %v748_v10  ;;  %v3796_v40 = vmov %v3795_v18  ;;  %1645 = vrot.lane.b32.xlu0 %v2176_v26, %s2099_s18  ;;  %s2105_s18 = smov 77  }
 0x104   :  { %v415_v14 = vrot.slane %v411_v1, 2  ;;  %v751_v13 = vmul.f32 %v3796_v40, %v747_v49  ;;  %v738_v35 = vmul.f32 %v736_v61, %v2357_v50  ;;  %v3797_v59 = vstv %s3794_s16  ;;  %s2876_s16 = sld [smem:[#allocation4 + $0x19]] }
 0x105   :  { %v739_v12 = vmul.f32 %v737_v6, %v2361_v51  ;;  %v753_v56 = vmul.f32 %v3797_v59, %v748_v10  ;;  %v3799_v20 = vmov %v3797_v59  ;;  %v418_v25 = vadd.f32 %v414_v15, %v407_v60 }
 0x106   :  { %v754_v44 = vmul.f32 %v3799_v20, %v747_v49  ;;  %v419_v17 = vadd.f32 %v415_v14, %v408_v24  ;;  %v772_v22 = vsel %vm771_vm2, %v768_v16, %v770_v57  ;;  %v773_v1 = vsel %vm771_vm2, %v770_v57, %v768_v16  ;;  %v795_v57 = vpop.permute.xlu1 %794  ;;  %v793_v16 = vpop.permute.xlu0 %792  ;;  %1348 = vrot.lane.b32.xlu1 %v2181_v29, %s2100_s4 }
 0x107   :  { %v740_v61 = vadd.f32 %v738_v35, %v715_v41  ;;  %v741_v6 = vadd.f32 %v739_v12, %v716_v47  ;;  %v757_v18 = vrot.slane %v753_v56, 2  ;;  %v428_v60 = vmul.f32 %v2420_v8, %v418_v25  ;;  %1346 = vrot.lane.b32.xlu0 %v2176_v26, %s2100_s4  ;;  %s2911_s4 = sld [smem:[#allocation4 + $0x50]] }
 0x108   :  { %v758_v10 = vrot.slane %v754_v44, 2  ;;  %v429_v24 = vmul.f32 %v2465_v27, %v419_v17  ;;  %v3800_v49 = vstv %s3798_s9  ;;  %v3802_v41 = vstv %s2324_s17  ;;  %s2101_s17 = smov 94   ;;  %s2893_s9 = sld [smem:[#allocation4 + $0x4a]] }
 0x109   :  { %v775_v15 = vmul.f32 %v3800_v49, %v773_v1  ;;  %v3801_v14 = vmov %v3800_v49  ;;  %v761_v59 = vadd.f32 %v757_v18, %v750_v31  ;;  %v778_v47 = vmul.f32 %v3802_v41, %v773_v1 }
 0x10a   :  { %v776_v40 = vmul.f32 %v3801_v14, %v772_v22  ;;  %v762_v20 = vadd.f32 %v758_v10, %v751_v13  ;;  %v3803_v35 = vmov %v3802_v41  ;;  %v463_v56 = vadd.f32 %v2616_v19, %v428_v60  ;;  %v832_v49 = vpop.permute.xlu1 %831  ;;  %v830_v14 = vpop.permute.xlu0 %829  ;;  %1510 = vrot.lane.b32.xlu1 %v2181_v29, %s2101_s17 }
 0x10b   :  { %v779_v12 = vmul.f32 %v3803_v35, %v772_v22  ;;  %v464_v44 = vadd.f32 %v2619_v34, %v429_v24  ;;  %v797_v25 = vsel %vm796_vm3, %v793_v16, %v795_v57  ;;  %v798_v17 = vsel %vm796_vm3, %v795_v57, %v793_v16  ;;  %1508 = vrot.lane.b32.xlu0 %v2176_v26, %s2101_s17  ;;  %s2919_s17 = sld [smem:[#allocation4 + $0x56]] }
 0x10c   :  { %v763_v31 = vmul.f32 %v761_v59, %v2365_v52  ;;  %v764_v13 = vmul.f32 %v762_v20, %v2374_v54  ;;  %v782_v1 = vrot.slane %v778_v47, 2  ;;  %v496_v19 = vadd.f32 %v2627_v4, %v463_v56 }
 0x10d   :  { %v783_v22 = vrot.slane %v779_v12, 2  ;;  %v497_v34 = vadd.f32 %v2630_v23, %v464_v44  ;;  %v3804_v18 = vstv %s2338_s21  ;;  %v3806_v35 = vstv %s2348_s12  ;;  %s2102_s21 = smov 79   ;;  %s2103_s12 = smov 93  }
 0x10e   :  { %v800_v10 = vmul.f32 %v3804_v18, %v798_v17  ;;  %v3805_v60 = vmov %v3804_v18  ;;  %v765_v57 = vadd.f32 %v763_v31, %v740_v61  ;;  %v766_v16 = vadd.f32 %v764_v13, %v741_v6  ;;  %1672 = vrot.lane.b32.xlu1 %v2181_v29, %s2102_s21 }
 0x10f   :  { %v801_v24 = vmul.f32 %v3805_v60, %v797_v25  ;;  %v786_v59 = vadd.f32 %v782_v1, %v775_v15  ;;  %v787_v20 = vadd.f32 %v783_v22, %v776_v40  ;;  %v529_v41 = vadd.f32 %v2651_v55, %v496_v19  ;;  %1670 = vrot.lane.b32.xlu0 %v2176_v26, %s2102_s21  ;;  %s2921_s21 = sld [smem:[#allocation4 + $0x2a]] }
 0x110   :  { %v530_v47 = vadd.f32 %v2654_v5, %v497_v34  ;;  %v803_v4 = vmul.f32 %v3806_v35, %v798_v17  ;;  %v3807_v12 = vmov %v3806_v35  ;;  %v834_v6 = vsel %vm833_vm4, %v830_v14, %v832_v49  ;;  %v855_v17 = vpop.permute.xlu0 %854 }
 0x111   :  { %v804_v23 = vmul.f32 %v3807_v12, %v797_v25  ;;  %v788_v56 = vmul.f32 %v786_v59, %v2389_v62  ;;  %v789_v61 = vmul.f32 %v787_v20, %v2393_v63  ;;  %v835_v15 = vsel %vm833_vm4, %v832_v49, %v830_v14  ;;  %v857_v25 = vpop.permute.xlu1 %856 }
 0x112   :  { %v562_v55 = vadd.f32 %v2657_v0, %v529_v41  ;;  %v563_v5 = vadd.f32 %v2660_v46, %v530_v47  ;;  %v807_v40 = vrot.slane %v803_v4, 2  ;;  %v626_v31 = vmul.f32 %v2403_v3, %v2697_v53  ;;  %1535 = vrot.lane.b32.xlu1 %v2181_v29, %s2103_s12 }
 0x113   :  { %v808_v44 = vrot.slane %v804_v23, 2  ;;  %v627_v13 = vmul.f32 %v2417_v7, %v2699_v28  ;;  %v790_v1 = vadd.f32 %v788_v56, %v765_v57  ;;  %v791_v22 = vadd.f32 %v789_v61, %v766_v16  ;;  %1533 = vrot.lane.b32.xlu0 %v2176_v26, %s2103_s12  ;;  %s3831_s12 = sld [smem:[#allocation41_spill]] }
 0x114   :  { %v595_v0 = vadd.f32 %v2683_v48, %v562_v55  ;;  %v596_v46 = vadd.f32 %v2686_v21, %v563_v5  ;;  %v811_v19 = vadd.f32 %v807_v40, %v800_v10  ;;  %v3808_v18 = vstv %s2368_s2  ;;  %v880_v16 = vpop.permute.xlu0 %879  ;;  %s3814_s2 = sld [smem:[#allocation39_spill]] }
 0x115   :  { %v812_v34 = vadd.f32 %v808_v44, %v801_v24  ;;  %v840_v53 = vmul.f32 %v3808_v18, %v835_v15  ;;  %v3809_v60 = vmov %v3808_v18  ;;  %v859_v28 = vsel %vm858_vm5, %v855_v17, %v857_v25  ;;  %v882_v57 = vpop.permute.xlu1 %881 }
 0x116   :  { %v841_v49 = vmul.f32 %v3809_v60, %v834_v6  ;;  %v860_v14 = vsel %vm858_vm5, %v857_v25, %v855_v17  ;;  %v628_v48 = vadd.f32 %v626_v31, %v595_v0  ;;  %v629_v21 = vadd.f32 %v627_v13, %v596_v46  ;;  %1697 = vrot.lane.b32.xlu1 %v2181_v29, %s2104_s6 }
 0x117   :  { %v813_v10 = vmul.f32 %v811_v19, %v2403_v3  ;;  %v814_v24 = vmul.f32 %v812_v34, %v2417_v7  ;;  %v3810_v59 = vstv %s2350_s3  ;;  %v844_v35 = vrot.slane %v840_v53, 2  ;;  %s2845_s3 = sld [smem:[#allocation4 + $0x13]]  ;;  %1695 = vrot.lane.b32.xlu0 %v2176_v26, %s2104_s6  ;;  %s3200_s6 = sld [smem:[#allocation4 + $0x2d]] }
 0x118   :  { %v837_v20 = vmul.f32 %v3810_v59, %v835_v15  ;;  %v3811_v41 = vmov %v3810_v59  ;;  %v845_v4 = vrot.slane %v841_v49, 2  ;;  %v3812_v12 = vrot.slane %v2379_v58, %v2280_v2  ;;  %v905_v19 = vpop.permute.xlu0 %904 }
 0x119   :  { %v838_v47 = vmul.f32 %v3811_v41, %v834_v6  ;;  %v3813_v56 = vrot.slane %v2428_v11, %v2280_v2  ;;  %v815_v55 = vadd.f32 %v813_v10, %v790_v1  ;;  %v816_v5 = vadd.f32 %v814_v24, %v791_v22  ;;  %v907_v46 = vpop.permute.xlu1 %906 }
 0x11a   :  { %v638_v23 = vmul.f32 %v3812_v12, %v628_v48  ;;  %v848_v6 = vadd.f32 %v844_v35, %v837_v20  ;;  %v3815_v40 = vstv %s2381_s1  ;;  %v3817_v2 = vrot.slane %v2379_v58, %v2287_v33  ;;  %s3821_s1 = sld [smem:[#allocation40_spill]]  ;;  %1722 = vrot.lane.b32.xlu1 %v2181_v29, %s2105_s18 }
 0x11b   :  { %v639_v61 = vmul.f32 %v3813_v56, %v629_v21  ;;  %v849_v15 = vadd.f32 %v845_v4, %v838_v47  ;;  %v865_v44 = vmul.f32 %v3815_v40, %v860_v14  ;;  %v3816_v25 = vmov %v3815_v40  ;;  %1720 = vrot.lane.b32.xlu0 %v2176_v26, %s2105_s18  ;;  %s3230_s18 = sld [smem:[#allocation4 + $0x59]] }
 0x11c   :  { %v866_v17 = vmul.f32 %v3816_v25, %v859_v28  ;;  %v825_v31 = vmul.f32 %v3817_v2, %v815_v55  ;;  %v3818_v13 = vrot.slane %v2428_v11, %v2287_v33  ;;  %v884_v22 = vsel %vm883_vm6, %v880_v16, %v882_v57  ;;  %v2891_v56 = vpop.permute.xlu0 %929 }
 0x11d   :  { %v885_v0 = vsel %vm883_vm6, %v882_v57, %v880_v16  ;;  %v3819_v34 = vstv %s3814_s2  ;;  %v869_v49 = vrot.slane %v865_v44, 2  ;;  %v850_v21 = vmul.f32 %v848_v6, %v2420_v8  ;;  %s2934_s2 = sld [smem:[#allocation4 + $0x2b]] }
 0x11e   :  { %v826_v1 = vmul.f32 %v3818_v13, %v816_v5  ;;  %v862_v18 = vmul.f32 %v3819_v34, %v860_v14  ;;  %v3820_v53 = vmov %v3819_v34  ;;  %v870_v48 = vrot.slane %v866_v17, 2 }
 0x11f   :  { %v863_v60 = vmul.f32 %v3820_v53, %v859_v28  ;;  %v2866_v33 = vadd.f32 %v825_v31, %v638_v23  ;;  %v851_v10 = vmul.f32 %v849_v15, %v2465_v27  ;;  %v3822_v24 = vstv %s2396_s25  ;;  %v1017_v23 = vpop.permute.xlu1 %1016  ;;  %s2895_s25 = sld [smem:[#allocation4 + $0x1f]] }
 0x120   :  { %v2868_v11 = vadd.f32 %v826_v1, %v639_v61  ;;  %v873_v28 = vadd.f32 %v869_v49, %v862_v18  ;;  %v890_v57 = vmul.f32 %v3822_v24, %v885_v0  ;;  %v3823_v16 = vmov %v3822_v24  ;;  %v1019_v53 = vpop.permute.xlu0 %1018 }
 0x121   :  { %v874_v14 = vadd.f32 %v870_v48, %v863_v60  ;;  %v891_v59 = vmul.f32 %v3823_v16, %v884_v22  ;;  %v3824_v20 = vstv %s3821_s1  ;;  %v909_v4 = vsel %vm908_vm7, %v905_v19, %v907_v46  ;;  %s2940_s1 = sld [smem:[#allocation4 + $0x5c]] }
 0x122   :  { %v887_v41 = vmul.f32 %v3824_v20, %v885_v0  ;;  %v3825_v47 = vmov %v3824_v20  ;;  %v910_v12 = vsel %vm908_vm7, %v907_v46, %v905_v19  ;;  %v875_v61 = vmul.f32 %v873_v28, %v2314_v38 }
 0x123   :  { %v888_v35 = vmul.f32 %v3825_v47, %v884_v22  ;;  %v876_v55 = vmul.f32 %v874_v14, %v2318_v39  ;;  %v894_v5 = vrot.slane %v890_v57, 2  ;;  %v895_v6 = vrot.slane %v891_v59, 2  ;;  %v1042_v18 = vpop.permute.xlu1 %1041 }
 0x124   :  { %v3826_v15 = vstv %s2408_s24  ;;  %v961_v17 = vstv %s2845_s3  ;;  %v2907_v2 = vmul.f32 %v2584_v9, %v2361_v51  ;;  %v877_v31 = vadd.f32 %v875_v61, %v850_v21  ;;  %s2913_s24 = sld [smem:[#allocation4 + $0x25]]  ;;  %s3198_s3 = sld [smem:[#allocation4 + $0x58]] }
 0x125   :  { %v915_v40 = vmul.f32 %v3826_v15, %v910_v12  ;;  %v3827_v44 = vmov %v3826_v15  ;;  %v878_v13 = vadd.f32 %v876_v55, %v851_v10  ;;  %v898_v1 = vadd.f32 %v894_v5, %v887_v41 }
 0x126   :  { %v916_v25 = vmul.f32 %v3827_v44, %v909_v4  ;;  %v899_v22 = vadd.f32 %v895_v6, %v888_v35  ;;  %v3828_v0 = vstv %s2398_s23  ;;  %v1021_v49 = vsel %vm1020_vm8, %v1017_v23, %v1019_v53  ;;  %s2932_s23 = sld [smem:[#allocation4 + $0x5b]] }
 0x127   :  { %v912_v29 = vmul.f32 %v3828_v0, %v910_v12  ;;  %v3829_v46 = vmov %v3828_v0  ;;  %v919_v9 = vrot.slane %v915_v40, 2  ;;  %v900_v26 = vmul.f32 %v898_v1, %v2328_v42  ;;  %v1044_v12 = vpop.permute.xlu0 %1043 }
 0x128   :  { %v913_v19 = vmul.f32 %v3829_v46, %v909_v4  ;;  %v920_v34 = vrot.slane %v916_v25, 2  ;;  %v901_v60 = vmul.f32 %v899_v22, %v2332_v43  ;;  %v1022_v48 = vsel %vm1020_vm8, %v1019_v53, %v1017_v23  ;;  %v1067_v4 = vpop.permute.xlu1 %1066 }
 0x129   :  { %v923_v21 = vadd.f32 %v919_v9, %v912_v29  ;;  %v964_v28 = vstv %s2874_s15  ;;  %v1116_v14 = vstv %s2876_s16  ;;  %v902_v24 = vadd.f32 %v900_v26, %v877_v31  ;;  %s3207_s15 = sld [smem:[#allocation4 + $0x5e]]  ;;  %s3209_s16 = sld [smem:[#allocation4 + $0x22]] }
 0x12a   :  { %v924_v10 = vadd.f32 %v920_v34, %v913_v19  ;;  %v903_v57 = vadd.f32 %v901_v60, %v878_v13  ;;  %v3830_v16 = vstv %s2424_s29  ;;  %v1119_v23 = vstv %s2893_s9  ;;  %s3141_s29 = sld [smem:[#allocation4 + $0x4b]] }
 0x12b   :  { %v1027_v59 = vmul.f32 %v3830_v16, %v1022_v48  ;;  %v3832_v20 = vmov %v3830_v16  ;;  %v925_v47 = vmul.f32 %v923_v21, %v2357_v50  ;;  %v1278_v61 = vstv %s2895_s25  ;;  %v1069_v26 = vpop.permute.xlu0 %1068  ;;  %s3222_s9 = sld [smem:[#allocation4 + $0x53]]  ;;  %s3224_s25 = sld [smem:[#allocation4 + $0x28]] }
 0x12c   :  { %v1028_v41 = vmul.f32 %v3832_v20, %v1021_v49  ;;  %v926_v35 = vmul.f32 %v924_v10, %v2361_v51  ;;  %v1046_v6 = vsel %vm1045_vm9, %v1042_v18, %v1044_v12  ;;  %v1047_v15 = vsel %vm1045_vm9, %v1044_v12, %v1042_v18  ;;  %v1197_v53 = vpop.permute.xlu1 %1196 }
 0x12d   :  { %v1031_v55 = vrot.slane %v1027_v59, 2  ;;  %v2950_v40 = vadd.f32 %v925_v47, %v902_v24  ;;  %v3833_v25 = vstv %s3831_s12  ;;  %v3835_v22 = vstv %s2433_s20  ;;  %s3183_s20 = sld [smem:[#allocation4 + $0x21]]  ;;  %s3265_s12 = sld [smem:[#allocation4 + $0x5a]] }
 0x12e   :  { %v1032_v5 = vrot.slane %v1028_v41, 2  ;;  %v2952_v44 = vadd.f32 %v926_v35, %v903_v57  ;;  %v1024_v31 = vmul.f32 %v3833_v25, %v1022_v48  ;;  %v3834_v13 = vmov %v3833_v25 }
 0x12f   :  { %v1025_v1 = vmul.f32 %v3834_v13, %v1021_v49  ;;  %v1052_v0 = vmul.f32 %v3835_v22, %v1047_v15  ;;  %v3836_v29 = vmov %v3835_v22  ;;  %v1281_v19 = vstv %s2911_s4  ;;  %v1199_v22 = vpop.permute.xlu0 %1198  ;;  %s3232_s4 = sld [smem:[#allocation4 + $0x2e]] }
 0x130   :  { %v1053_v46 = vmul.f32 %v3836_v29, %v1046_v6  ;;  %v1440_v9 = vstv %s2913_s24  ;;  %v1035_v34 = vadd.f32 %v1031_v55, %v1024_v31  ;;  %v1443_v60 = vstv %s2919_s17  ;;  %s3246_s24 = sld [smem:[#allocation4 + $0x5f]]  ;;  %s3248_s17 = sld [smem:[#allocation4 + $0x29]] }
 0x131   :  { %v1036_v18 = vadd.f32 %v1032_v5, %v1025_v1  ;;  %v1577_v21 = vstv %s2921_s21  ;;  %v3837_v48 = vstv %s2426_s27  ;;  %v1056_v57 = vrot.slane %v1052_v0, 2  ;;  %v1222_v1 = vpop.permute.xlu1 %1221  ;;  %s3851_s27 = sld [smem:[#allocation42_spill]]  ;;  %s3365_s21 = sld [smem:[#allocation4 + $0x2f]] }
 0x132   :  { %v1049_v49 = vmul.f32 %v3837_v48, %v1047_v15  ;;  %v3838_v10 = vmov %v3837_v48  ;;  %v1057_v16 = vrot.slane %v1053_v46, 2  ;;  %vm1225_vm13 = vcmp.lt.s32.totalorder %v2263_v30, 114 }
 0x133   :  { %v1050_v24 = vmul.f32 %v3838_v10, %v1046_v6  ;;  %v1071_v59 = vsel %vm1070_vm10, %v1067_v4, %v1069_v26  ;;  %v1072_v20 = vsel %vm1070_vm10, %v1069_v26, %v1067_v4  ;;  %v1580_v41 = vstv %s2932_s23  ;;  %s3376_s23 = sld [smem:[#allocation4 + $0x60]] }
 0x134   :  { %v1060_v35 = vadd.f32 %v1056_v57, %v1049_v49  ;;  %v1605_v55 = vstv %s2940_s1  ;;  %v1037_v6 = vmul.f32 %v1035_v34, %v2420_v8  ;;  %v1038_v15 = vmul.f32 %v1036_v18, %v2465_v27  ;;  %s3382_s1 = sld [smem:[#allocation4 + $0x30]] }
 0x135   :  { %v1061_v12 = vadd.f32 %v1057_v16, %v1050_v24  ;;  %v3839_v25 = vstv %s2443_s0  ;;  %vm1250_vm14 = vcmp.lt.s32.totalorder %v2263_v30, 113  ;;  %v1201_v46 = vsel %vm1200_vm11, %v1197_v53, %v1199_v22  ;;  %s3143_s0 = sld [smem:[#allocation4 + $0x20]] }
 0x136   :  { %v1077_v31 = vmul.f32 %v3839_v25, %v1072_v20  ;;  %v3840_v13 = vmov %v3839_v25  ;;  %v1062_v0 = vmul.f32 %v1060_v35, %v2314_v38  ;;  %v1202_v34 = vsel %vm1200_vm11, %v1199_v22, %v1197_v53 }
 0x137   :  { %v1078_v4 = vmul.f32 %v3840_v13, %v1071_v59  ;;  %v1063_v29 = vmul.f32 %v1061_v12, %v2318_v39  ;;  %v3841_v18 = vstv %s2435_s28  ;;  %v3843_v25 = vstv %s2458_s11  ;;  %s3068_s28 = sld [smem:[#allocation4 + $0x14]]  ;;  %s3159_s11 = sld [smem:[#allocation4 + $0x57]] }
 0x138   :  { %v1074_v26 = vmul.f32 %v3841_v18, %v1072_v20  ;;  %v3842_v48 = vmov %v3841_v18  ;;  %v1081_v10 = vrot.slane %v1077_v31, 2  ;;  %v1064_v57 = vadd.f32 %v1062_v0, %v1037_v6  ;;  %v932_v31 = vpop.permute.xlu1 %931 }
 0x139   :  { %v1075_v49 = vmul.f32 %v3842_v48, %v1071_v59  ;;  %v1082_v24 = vrot.slane %v1078_v4, 2  ;;  %v1065_v16 = vadd.f32 %v1063_v29, %v1038_v15  ;;  %v1207_v35 = vmul.f32 %v3843_v25, %v1201_v46  ;;  %v1224_v4 = vpop.permute.xlu0 %1223 }
 0x13a   :  { %v3844_v13 = vmov %v3843_v25  ;;  %vm1387_vm15 = vcmp.lt.s32.totalorder %v2263_v30, 99  ;;  %v1085_v47 = vadd.f32 %v1081_v10, %v1074_v26  ;;  %v3845_v53 = vstv %s2445_s7  ;;  %s3149_s7 = sld [smem:[#allocation4 + $0x51]] }
 0x13b   :  { %v1208_v12 = vmul.f32 %v3844_v13, %v1202_v34  ;;  %v1086_v5 = vadd.f32 %v1082_v24, %v1075_v49  ;;  %v1204_v20 = vmul.f32 %v3845_v53, %v1201_v46  ;;  %v3846_v22 = vmov %v3845_v53 }
 0x13c   :  { %v1205_v59 = vmul.f32 %v3846_v22, %v1202_v34  ;;  %v1211_v6 = vrot.slane %v1207_v35, 2  ;;  %v934_v0 = vsel %vm933_vm12, %v2891_v56, %v932_v31  ;;  %v935_v29 = vsel %vm933_vm12, %v932_v31, %v2891_v56 }
 0x13d   :  { %v1212_v15 = vrot.slane %v1208_v12, 2  ;;  %v1087_v18 = vmul.f32 %v1085_v47, %v2328_v42  ;;  %v1088_v26 = vmul.f32 %v1086_v5, %v2332_v43  ;;  %v3847_v48 = vstv %s2460_s13  ;;  %v1247_v22 = vpop.permute.xlu0 %1246  ;;  %s3161_s13 = sld [smem:[#allocation4 + $0x2c]] }
 0x13e   :  { %v937_v46 = vmul.f32 %v3847_v48, %v935_v29  ;;  %v3848_v49 = vmov %v3847_v48  ;;  %v1215_v10 = vadd.f32 %v1211_v6, %v1204_v20  ;;  %v3849_v25 = vstv %s2470_s14  ;;  %v1249_v20 = vpop.permute.xlu1 %1248  ;;  %s3167_s14 = sld [smem:[#allocation4 + $0x5d]] }
 0x13f   :  { %v938_v34 = vmul.f32 %v3848_v49, %v934_v0  ;;  %v1216_v24 = vadd.f32 %v1212_v15, %v1205_v59  ;;  %v940_v35 = vmul.f32 %v3849_v25, %v935_v29  ;;  %v3850_v13 = vmov %v3849_v25 }
 0x140   :  { %v941_v12 = vmul.f32 %v3850_v13, %v934_v0  ;;  %vm1412_vm0 = vcmp.lt.s32.totalorder %v2263_v30, 98  ;;  %v3024_v56 = vadd.f32 %v1087_v18, %v1064_v57  ;;  %v3026_v47 = vadd.f32 %v1088_v26, %v1065_v16 }
 0x141   :  { %v1226_v5 = vsel %vm1225_vm13, %v1222_v1, %v1224_v4  ;;  %v1227_v53 = vsel %vm1225_vm13, %v1224_v4, %v1222_v1  ;;  %v1217_v59 = vmul.f32 %v1215_v10, %v2420_v8  ;;  %v1218_v31 = vmul.f32 %v1216_v24, %v2465_v27 }
 0x142   :  { %v944_v6 = vrot.slane %v940_v35, 2  ;;  %v945_v15 = vrot.slane %v941_v12, 2  ;;  %v3852_v57 = vstv %s2472_s5  ;;  %v3854_v18 = vstv %s2477_s8  ;;  %s3151_s8 = sld [smem:[#allocation4 + $0x26]]  ;;  %s3169_s5 = sld [smem:[#allocation4 + $0x1b]] }
 0x143   :  { %v1229_v0 = vmul.f32 %v3852_v57, %v1226_v5  ;;  %v3853_v16 = vmov %v3852_v57  ;;  %v1232_v26 = vmul.f32 %v3854_v18, %v1226_v5  ;;  %v3855_v48 = vmov %v3854_v18  ;;  %v1386_v5 = vpop.permute.xlu1 %1385  ;;  %v1384_v18 = vpop.permute.xlu0 %1383 }
 0x144   :  { %v1230_v29 = vmul.f32 %v3853_v16, %v1227_v53  ;;  %v1233_v1 = vmul.f32 %v3855_v48, %v1227_v53  ;;  %v948_v4 = vadd.f32 %v944_v6, %v937_v46  ;;  %v949_v49 = vadd.f32 %v945_v15, %v938_v34 }
 0x145   :  { %v1251_v10 = vsel %vm1250_vm14, %v1247_v22, %v1249_v20  ;;  %v1252_v24 = vsel %vm1250_vm14, %v1249_v20, %v1247_v22  ;;  %vm958_vm1 = vcmp.lt.s32.totalorder %v2263_v30, 14  ;;  %v1236_v25 = vrot.slane %v1232_v26, 2 }
 0x146   :  { %v1237_v35 = vrot.slane %v1233_v1, 2  ;;  %v3856_v13 = vstv %s3851_s27  ;;  %v950_v53 = vmul.f32 %v948_v4, %v2365_v52  ;;  %v951_v46 = vmul.f32 %v949_v49, %v2374_v54  ;;  %s2106_s27 = smov [#allocation11]  }
 0x147   :  { %v1254_v12 = vmul.f32 %v3856_v13, %v1251_v10  ;;  %v3857_v57 = vmov %v3856_v13  ;;  %v3858_v34 = vstv %s2507_s19  ;;  %v1240_v22 = vadd.f32 %v1236_v25, %v1229_v0  ;;  %s3181_s19 = sld [smem:[#allocation4 + $0x4c]] }
 0x148   :  { %v1255_v16 = vmul.f32 %v3857_v57, %v1252_v24  ;;  %v1257_v6 = vmul.f32 %v3858_v34, %v1251_v10  ;;  %v3859_v15 = vmov %v3858_v34  ;;  %v1241_v48 = vadd.f32 %v1237_v35, %v1230_v29 }
 0x149   :  { %v1258_v20 = vmul.f32 %v3859_v15, %v1252_v24  ;;  %v1388_v26 = vsel %vm1387_vm15, %v1384_v18, %v1386_v5  ;;  %v1389_v1 = vsel %vm1387_vm15, %v1386_v5, %v1384_v18  ;;  %vm1113_vm2 = vcmp.lt.s32.totalorder %v2263_v30, 127  ;;  %v1411_v5 = vpop.permute.xlu1 %1410 }
 0x14a   :  { %v3063_v4 = vadd.f32 %v950_v53, %v2950_v40  ;;  %v3066_v49 = vadd.f32 %v951_v46, %v2952_v44  ;;  %v1261_v10 = vrot.slane %v1257_v6, 2  ;;  %v1242_v0 = vmul.f32 %v1240_v22, %v2314_v38  ;;  %v1409_v40 = vpop.permute.xlu0 %1408 }
 0x14b   :  { %v1262_v24 = vrot.slane %v1258_v20, 2  ;;  %v1243_v29 = vmul.f32 %v1241_v48, %v2318_v39  ;;  %v3860_v25 = vstv %s2509_s22  ;;  %v3862_v53 = vstv %s2518_s26  ;;  %s3125_s22 = sld [smem:[#allocation4 + $0x45]]  ;;  %s3127_s26 = sld [smem:[#allocation4 + $0x1a]] }
 0x14c   :  { %v1391_v35 = vmul.f32 %v3860_v25, %v1388_v26  ;;  %v3861_v13 = vmov %v3860_v25  ;;  %v1265_v18 = vadd.f32 %v1261_v10, %v1254_v12  ;;  %v1394_v46 = vmul.f32 %v3862_v53, %v1388_v26 }
 0x14d   :  { %v1392_v57 = vmul.f32 %v3861_v13, %v1389_v1  ;;  %v1266_v44 = vadd.f32 %v1262_v24, %v1255_v16  ;;  %v3863_v34 = vmov %v3862_v53  ;;  %v1244_v15 = vadd.f32 %v1242_v0, %v1217_v59  ;;  %v957_v53 = vpop.permute.xlu1 %956 }
 0x14e   :  { %v1395_v6 = vmul.f32 %v3863_v34, %v1389_v1  ;;  %v1245_v20 = vadd.f32 %v1243_v29, %v1218_v31  ;;  %v1413_v22 = vsel %vm1412_vm0, %v1409_v40, %v1411_v5  ;;  %v1414_v48 = vsel %vm1412_vm0, %v1411_v5, %v1409_v40  ;;  %v955_v34 = vpop.permute.xlu0 %954 }
 0x14f   :  { %vm1275_vm3 = vcmp.lt.s32.totalorder %v2263_v30, 112  ;;  %v1267_v25 = vmul.f32 %v1265_v18, %v2328_v42  ;;  %v1268_v12 = vmul.f32 %v1266_v44, %v2332_v43  ;;  %v1398_v10 = vrot.slane %v1394_v46, 2 }
 0x150   :  { %v1399_v16 = vrot.slane %v1395_v6, 2  ;;  %v3864_v24 = vstv %s2570_s30  ;;  %v3866_v59 = vstv %s2572_s10  ;;  %vm1437_vm4 = vcmp.lt.s32.totalorder %v2263_v30, 97  ;;  %s3188_s30 = sld [smem:[#allocation4 + $0x52]]  ;;  %s3190_s10 = sld [smem:[#allocation4 + $0x27]] }
 0x151   :  { %v1416_v26 = vmul.f32 %v3864_v24, %v1413_v22  ;;  %v3865_v13 = vmov %v3864_v24  ;;  %v1419_v31 = vmul.f32 %v3866_v59, %v1413_v22  ;;  %v3867_v0 = vmov %v3866_v59 }
 0x152   :  { %v1417_v1 = vmul.f32 %v3865_v13, %v1414_v48  ;;  %v1420_v29 = vmul.f32 %v3867_v0, %v1414_v48  ;;  %v3095_v5 = vadd.f32 %v1267_v25, %v1244_v15  ;;  %v3097_v40 = vadd.f32 %v1268_v12, %v1245_v20  ;;  %v3107_v25 = vld [vmem:[#allocation8 + $0x8] sm:$0xff]  ;;  %v1112_v13 = vpop.permute.xlu1 %1111  ;;  %v1110_v59 = vpop.permute.xlu0 %1109 }
 0x153   :  { %v1402_v18 = vadd.f32 %v1398_v10, %v1391_v35  ;;  %v1403_v44 = vadd.f32 %v1399_v16, %v1392_v57  ;;  %v1423_v46 = vrot.slane %v1419_v31, 2  ;;  %v959_v24 = vsel %vm958_vm1, %v955_v34, %v957_v53 }
 0x154   :  { %v1424_v6 = vrot.slane %v1420_v29, 2  ;;  %v960_v22 = vsel %vm958_vm1, %v957_v53, %v955_v34  ;;  %v986_v20 = vstv %s3068_s28  ;;  %v1011_v35 = vrot.slane %v3107_v25, %v2303_v36  ;;  %s1787_s28 = sshll.u32 %s2106_s27, 4  ;;  %s1788_s28 = int_to_ptr.vmem [resolvable:$true] %s1787_s28 }
 0x155   :  { %v1404_v48 = vmul.f32 %v1402_v18, %v2420_v8  ;;  %v1405_v15 = vmul.f32 %v1403_v44, %v2465_v27  ;;  %v1427_v57 = vadd.f32 %v1423_v46, %v1416_v26  ;;  %v965_v10 = vmul.f32 %v964_v28, %v960_v22  ;;  %p2026_p6 = scmp.lt.s32.totalorder %s1788_s28, %s1788_s28 }
 0x156   :  { %v1428_v12 = vadd.f32 %v1424_v6, %v1417_v1  ;;  %v966_v16 = vmul.f32 %v964_v28, %v959_v24  ;;  %v962_v31 = vmul.f32 %v961_v17, %v960_v22  ;;  %v963_v0 = vmul.f32 %v961_v17, %v959_v24 }
 0x157   :  { %v1114_v29 = vsel %vm1113_vm2, %v1110_v59, %v1112_v13  ;;  %v1115_v26 = vsel %vm1113_vm2, %v1112_v13, %v1110_v59  ;;  %v1429_v1 = vmul.f32 %v1427_v57, %v2314_v38  ;;  %v969_v34 = vrot.slane %v965_v10, 2  ;;  %v1272_v10 = vpop.permute.xlu0 %1271 }
 0x158   :  { %v1430_v53 = vmul.f32 %v1428_v12, %v2318_v39  ;;  %v970_v18 = vrot.slane %v966_v16, 2  ;;  %v1117_v28 = vmul.f32 %v1116_v14, %v1114_v29  ;;  %v1118_v17 = vmul.f32 %v1116_v14, %v1115_v26  ;;  %v1274_v12 = vpop.permute.xlu1 %1273 }
 0x159   :  { %v1120_v44 = vmul.f32 %v1119_v23, %v1114_v29  ;;  %v1121_v46 = vmul.f32 %v1119_v23, %v1115_v26  ;;  %v3137_v6 = vadd.f32 %v1429_v1, %v1404_v48  ;;  %v973_v22 = vadd.f32 %v969_v34, %v962_v31 }
 0x15a   :  { %v3139_v24 = vadd.f32 %v1430_v53, %v1405_v15  ;;  %v974_v57 = vadd.f32 %v970_v18, %v963_v0  ;;  %v1276_v13 = vsel %vm1275_vm3, %v1272_v10, %v1274_v12  ;;  %v1277_v23 = vsel %vm1275_vm3, %v1274_v12, %v1272_v10 }
 0x15b   :  { %v1124_v16 = vrot.slane %v1120_v44, 2  ;;  %v1125_v14 = vrot.slane %v1121_v46, 2  ;;  %v975_v48 = vmul.f32 %v973_v22, %v2389_v62  ;;  %v1107_v59 = vadd.f32 %v2545_v32, %v3024_v56 }
 0x15c   :  { %v976_v15 = vmul.f32 %v974_v57, %v2393_v63  ;;  %v1108_v31 = vadd.f32 %v2907_v2, %v3026_v47  ;;  %v1282_v26 = vmul.f32 %v1281_v19, %v1276_v13  ;;  %v1283_v1 = vmul.f32 %v1281_v19, %v1277_v23  ;;  %v1436_v47 = vpop.permute.xlu1 %1435 }
 0x15d   :  { %v1128_v0 = vadd.f32 %v1124_v16, %v1117_v28  ;;  %v1129_v29 = vadd.f32 %v1125_v14, %v1118_v17  ;;  %v3172_v53 = vadd.f32 %v975_v48, %v3063_v4  ;;  %v1279_v2 = vmul.f32 %v1278_v61, %v1276_v13  ;;  %v1434_v28 = vpop.permute.xlu0 %1433 }
 0x15e   :  { %v3175_v32 = vadd.f32 %v976_v15, %v3066_v49  ;;  %v1280_v56 = vmul.f32 %v1278_v61, %v1277_v23  ;;  %v1286_v4 = vrot.slane %v1282_v26, 2  ;;  %v1287_v18 = vrot.slane %v1283_v1, 2 }
 0x15f   :  { %v1130_v19 = vmul.f32 %v1128_v0, %v2365_v52  ;;  %v1131_v34 = vmul.f32 %v1129_v29, %v2374_v54  ;;  %vm1574_vm5 = vcmp.lt.s32.totalorder %v2263_v30, 83  ;;  %v1438_v61 = vsel %vm1437_vm4, %v1434_v28, %v1436_v47 }
 0x160   :  { %v1439_v49 = vsel %vm1437_vm4, %v1436_v47, %v1434_v28  ;;  %v989_v17 = vstv %s3125_s22  ;;  %v1141_v44 = vstv %s3127_s26  ;;  %v1290_v57 = vadd.f32 %v1286_v4, %v1279_v2  ;;  %v1573_v14 = vpop.permute.xlu1 %1572  ;;  %v3242_v47 = vld [vmem:[#allocation8] sm:$0xff]  ;;  %s2021_s22 = scalar_lea.vmem %s1788_s28, 64 }
 0x161   :  { %v3202_v46 = vadd.f32 %v1130_v19, %v1107_v59  ;;  %v3204_v22 = vadd.f32 %v1131_v34, %v1108_v31  ;;  %v1291_v12 = vadd.f32 %v1287_v18, %v1280_v56  ;;  %vm983_vm6 = vcmp.lt.s32.totalorder %v2263_v30, 13  ;;  %v1571_v59 = vpop.permute.xlu0 %1570  ;;  %p2022_p5 = scmp.ne.s32.totalorder %s1788_s28, %s2021_s22  ;;  %p2027_p7 = scmp.lt.s32.totalorder %s2021_s22, %s2021_s22 }
 0x162   :  { %v1444_v10 = vmul.f32 %v1443_v60, %v1438_v61  ;;  %v1445_v16 = vmul.f32 %v1443_v60, %v1439_v49  ;;  %v1144_v13 = vstv %s3141_s29  ;;  %v1303_v23 = vstv %s3143_s0 }
 0x163   :  { %v1292_v48 = vmul.f32 %v1290_v57, %v2357_v50  ;;  %v1293_v15 = vmul.f32 %v1291_v12, %v2361_v51  ;;  %vm1599_vm7 = vcmp.lt.s32.totalorder %v2263_v30, 82  ;;  %v1306_v31 = vstv %s3149_s7  ;;  %p2028_p8 = por %p2027_p7, %p2026_p6 }
 0x164   :  { %v1441_v29 = vmul.f32 %v1440_v9, %v1438_v61  ;;  %v1442_v60 = vmul.f32 %v1440_v9, %v1439_v49  ;;  %v1448_v26 = vrot.slane %v1444_v10, 2  ;;  %v1449_v1 = vrot.slane %v1445_v16, 2  ;;  %v1598_v34 = vpop.permute.xlu1 %1597 }
 0x165   :  { %v3235_v2 = vadd.f32 %v1292_v48, %v3095_v5  ;;  %v3238_v56 = vadd.f32 %v1293_v15, %v3097_v40  ;;  %vm1138_vm8 = vcmp.lt.s32.totalorder %v2263_v30, 126  ;;  %v1468_v9 = vstv %s3159_s11  ;;  %v1596_v28 = vpop.permute.xlu0 %1595  ;;  %p2029_p9 = pnand %p2028_p8, %p2022_p5 }
 0x166   :  { %v1452_v5 = vadd.f32 %v1448_v26, %v1441_v29  ;;  %v1453_v40 = vadd.f32 %v1449_v1, %v1442_v60  ;;  %v1576_v60 = vsel %vm1574_vm5, %v1573_v14, %v1571_v59  ;;  %vm1300_vm9 = vcmp.lt.s32.totalorder %v2263_v30, 111 }
 0x167   :  { %vm1462_vm10 = vcmp.lt.s32.totalorder %v2263_v30, 96  ;;  %v3319_v29 = vmul.f32 %v1580_v41, %v1576_v60  ;;  %vm1163_vm11 = vcmp.lt.s32.totalorder %v2263_v30, 125  ;;  %vm1624_vm12 = vcmp.lt.s32.totalorder %v2263_v30, 81 }
 0x168   :  { %v1454_v10 = vmul.f32 %v1452_v5, %v2328_v42  ;;  %v1455_v16 = vmul.f32 %v1453_v40, %v2332_v43  ;;  %v1575_v40 = vsel %vm1574_vm5, %v1571_v59, %v1573_v14  ;;  %v982_v1 = vpop.permute.xlu1 %981  ;;  %vm1325_vm13 = vcmp.lt.s32.totalorder %v2263_v30, 110 }
 0x169   :  { %v980_v26 = vpop.permute.xlu0 %979  ;;  %vm1487_vm14 = vcmp.lt.s32.totalorder %v2263_v30, 95  ;;  %vm1649_vm15 = vcmp.lt.s32.totalorder %v2263_v30, 80  ;;  %vm1350_vm0 = vcmp.lt.s32.totalorder %v2263_v30, 109  ;;  %vm1512_vm1 = vcmp.lt.s32.totalorder %v2263_v30, 94 }
 0x16a   :  { %v3268_v57 = vadd.f32 %v1454_v10, %v3137_v6  ;;  %v3271_v5 = vadd.f32 %v1455_v16, %v3139_v24  ;;  %v984_v19 = vsel %vm983_vm6, %v980_v26, %v982_v1  ;;  %v985_v14 = vsel %vm983_vm6, %v982_v1, %v980_v26 }
 0x16b   :  { %v3292_v6 = vmul.f32 %v1577_v21, %v1575_v40  ;;  %v3296_v10 = vmul.f32 %v1577_v21, %v1576_v60  ;;  %v3302_v16 = vsel %vm1599_vm7, %v1596_v28, %v1598_v34  ;;  %v3306_v26 = vsel %vm1599_vm7, %v1598_v34, %v1596_v28 }
 0x16c   :  { %v990_v1 = vmul.f32 %v989_v17, %v985_v14  ;;  %v991_v15 = vmul.f32 %v989_v17, %v984_v19  ;;  %v1137_v59 = vpop.permute.xlu1 %1136  ;;  %v3315_v21 = vmul.f32 %v1580_v41, %v1575_v40  ;;  %v987_v24 = vmul.f32 %v986_v20, %v985_v14  ;;  %v3868_v14 = vld [vmem:[#allocation38_spill] sm:$0xff] }
 0x16d   :  { %v988_v34 = vmul.f32 %v986_v20, %v984_v19  ;;  %v1135_v28 = vpop.permute.xlu0 %1134  ;;  %v1606_v18 = vmul.f32 %v1605_v55, %v3302_v16  ;;  %v1607_v41 = vmul.f32 %v1605_v55, %v3306_v26  ;;  %vm1674_vm2 = vcmp.lt.s32.totalorder %v2263_v30, 79 }
 0x16e   :  { %v994_v12 = vrot.slane %v990_v1, 2  ;;  %v995_v17 = vrot.slane %v991_v15, 2  ;;  %v1139_v48 = vsel %vm1138_vm8, %v1135_v28, %v1137_v59  ;;  %v1140_v40 = vsel %vm1138_vm8, %v1137_v59, %v1135_v28 }
 0x16f   :  { %v1145_v15 = vmul.f32 %v1144_v13, %v1139_v48  ;;  %v1146_v4 = vmul.f32 %v1144_v13, %v1140_v40  ;;  %v1585_v49 = vrot.slane %v3315_v21, 2  ;;  %v1586_v59 = vrot.slane %v3319_v29, 2 }
 0x170   :  { %v998_v19 = vadd.f32 %v994_v12, %v987_v24  ;;  %v999_v1 = vadd.f32 %v995_v17, %v988_v34  ;;  %v1299_v61 = vpop.permute.xlu1 %1298  ;;  %v1142_v28 = vmul.f32 %v1141_v44, %v1139_v48  ;;  %v1143_v0 = vmul.f32 %v1141_v44, %v1140_v40 }
 0x171   :  { %v1297_v55 = vpop.permute.xlu0 %1296  ;;  %v1149_v24 = vrot.slane %v1145_v15, 2  ;;  %v1150_v13 = vrot.slane %v1146_v4, 2  ;;  %v1610_v34 = vrot.slane %v1606_v18, 2  ;;  %v1611_v17 = vrot.slane %v1607_v41, 2 }
 0x172   :  { %v1000_v20 = vmul.f32 %v998_v19, %v2403_v3  ;;  %v1001_v12 = vmul.f32 %v999_v1, %v2417_v7  ;;  %v1301_v29 = vsel %vm1300_vm9, %v1297_v55, %v1299_v61  ;;  %v1302_v48 = vsel %vm1300_vm9, %v1299_v61, %v1297_v55 }
 0x173   :  { %v1153_v40 = vadd.f32 %v1149_v24, %v1142_v28  ;;  %v1154_v19 = vadd.f32 %v1150_v13, %v1143_v0  ;;  %v1304_v1 = vmul.f32 %v1303_v23, %v1301_v29  ;;  %v1305_v4 = vmul.f32 %v1303_v23, %v1302_v48 }
 0x174   :  { %v1002_v44 = vadd.f32 %v1000_v20, %v3172_v53  ;;  %v1003_v21 = vadd.f32 %v1001_v12, %v3175_v32  ;;  %v1461_v60 = vpop.permute.xlu1 %1460  ;;  %v1307_v18 = vmul.f32 %v1306_v31, %v1301_v29  ;;  %v1308_v41 = vmul.f32 %v1306_v31, %v1302_v48 }
 0x175   :  { %v1459_v15 = vpop.permute.xlu0 %1458  ;;  %v3869_v53 = vrot.slane %v2379_v58, %v2303_v36  ;;  %v1155_v61 = vmul.f32 %v1153_v40, %v2389_v62  ;;  %v1156_v23 = vmul.f32 %v1154_v19, %v2393_v63  ;;  %vm1537_vm3 = vcmp.lt.s32.totalorder %v2263_v30, 93 }
 0x176   :  { %v1013_v0 = vmul.f32 %v1011_v35, %v1003_v21  ;;  %v1311_v31 = vrot.slane %v1307_v18, 2  ;;  %v1312_v20 = vrot.slane %v1308_v41, 2  ;;  %v1463_v58 = vsel %vm1462_vm10, %v1459_v15, %v1461_v60 }
 0x177   :  { %v1012_v32 = vmul.f32 %v3869_v53, %v1002_v44  ;;  %v1464_v36 = vsel %vm1462_vm10, %v1461_v60, %v1459_v15  ;;  %v3391_v55 = vadd.f32 %v1155_v61, %v3202_v46  ;;  %v3394_v12 = vadd.f32 %v1156_v23, %v3204_v22 }
 0x178   :  { %v3388_v28 = vadd.f32 %v1013_v0, %v2868_v11  ;;  %v1623_v24 = vpop.permute.xlu1 %1622  ;;  %v3870_v60 = vstv %s2934_s2  ;;  %v1315_v48 = vadd.f32 %v1311_v31, %v1304_v1  ;;  %v1316_v11 = vadd.f32 %v1312_v20, %v1305_v4  ;;  %s3492_s2 = sld [smem:[#allocation4 + $0x61]] }
 0x179   :  { %v3385_v35 = vadd.f32 %v1012_v32, %v2866_v33  ;;  %v1603_v13 = vmul.f32 %v3870_v60, %v3302_v16  ;;  %v3871_v33 = vmov %v3870_v60  ;;  %v1621_v44 = vpop.permute.xlu0 %1620  ;;  %v1589_v46 = vadd.f32 %v1585_v49, %v3292_v6 }
 0x17a   :  { %v1604_v29 = vmul.f32 %v3871_v33, %v3306_v26  ;;  %v1590_v21 = vadd.f32 %v1586_v59, %v3296_v10  ;;  %v1469_v22 = vmul.f32 %v1468_v9, %v1463_v58  ;;  %v1470_v40 = vmul.f32 %v1468_v9, %v1464_v36 }
 0x17b   :  { %v1614_v19 = vadd.f32 %v1610_v34, %v1603_v13  ;;  %v1317_v41 = vmul.f32 %v1315_v48, %v2365_v52  ;;  %v1318_v16 = vmul.f32 %v1316_v11, %v2374_v54  ;;  %v3872_v26 = vstv %s3151_s8 }
 0x17c   :  { %v1615_v18 = vadd.f32 %v1611_v17, %v1604_v29  ;;  %v1466_v1 = vmul.f32 %v3872_v26, %v1463_v58  ;;  %v3873_v4 = vmov %v3872_v26  ;;  %v1473_v6 = vrot.slane %v1469_v22, 2  ;;  %v1162_v59 = vpop.permute.xlu1 %1161 }
 0x17d   :  { %v1467_v49 = vmul.f32 %v3873_v4, %v1464_v36  ;;  %v1474_v10 = vrot.slane %v1470_v40, 2  ;;  %v3417_v15 = vadd.f32 %v1317_v41, %v3235_v2  ;;  %v3420_v9 = vadd.f32 %v1318_v16, %v3238_v56  ;;  %v1160_v34 = vpop.permute.xlu0 %1159 }
 0x17e   :  { %v1565_v17 = vrot.slane %v3107_v25, %v3868_v14  ;;  %v1702_v53 = vstv %s3365_s21  ;;  %v3426_v32 = vmul.f32 %v1589_v46, %v2420_v8  ;;  %v1477_v0 = vadd.f32 %v1473_v6, %v1466_v1 }
 0x17f   :  { %v1478_v61 = vadd.f32 %v1474_v10, %v1467_v49  ;;  %v1705_v23 = vstv %s3376_s23  ;;  %v3430_v31 = vmul.f32 %v1590_v21, %v2465_v27  ;;  %v1164_v2 = vsel %vm1163_vm11, %v1160_v34, %v1162_v59 }
 0x180   :  { %v1165_v56 = vsel %vm1163_vm11, %v1162_v59, %v1160_v34  ;;  %v1727_v20 = vstv %s3382_s1  ;;  %v3438_v58 = vmul.f32 %v1614_v19, %v2314_v38  ;;  %v3441_v8 = vmul.f32 %v1615_v18, %v2318_v39  ;;  %v1324_v60 = vpop.permute.xlu1 %1323 }
 0x181   :  { %v1479_v36 = vmul.f32 %v1477_v0, %v2357_v50  ;;  %v1480_v27 = vmul.f32 %v1478_v61, %v2361_v51  ;;  %v1625_v13 = vsel %vm1624_vm12, %v1621_v44, %v1623_v24  ;;  %v1626_v33 = vsel %vm1624_vm12, %v1623_v24, %v1621_v44  ;;  %v1322_v11 = vpop.permute.xlu0 %1321 }
 0x182   :  { %v3874_v29 = vstv %s3181_s19  ;;  %v3876_v22 = vstv %s3169_s5  ;;  %v1326_v41 = vsel %vm1325_vm13, %v1322_v11, %v1324_v60  ;;  %v3878_v16 = vstv %s3161_s13 }
 0x183   :  { %v1170_v38 = vmul.f32 %v3874_v29, %v1164_v2  ;;  %v3875_v48 = vmov %v3874_v29  ;;  %v3455_v46 = vadd.f32 %v1479_v36, %v3268_v57  ;;  %v3458_v21 = vadd.f32 %v1480_v27, %v3271_v5 }
 0x184   :  { %v1171_v39 = vmul.f32 %v3875_v48, %v1165_v56  ;;  %v1167_v40 = vmul.f32 %v3876_v22, %v1164_v2  ;;  %v3877_v19 = vmov %v3876_v22  ;;  %v1327_v57 = vsel %vm1325_vm13, %v1324_v60, %v1322_v11  ;;  %v1486_v59 = vpop.permute.xlu1 %1485 }
 0x185   :  { %v1168_v24 = vmul.f32 %v3877_v19, %v1165_v56  ;;  %v1174_v44 = vrot.slane %v1170_v38, 2  ;;  %v1628_v26 = vmul.f32 %v3878_v16, %v1625_v13  ;;  %v3879_v1 = vmov %v3878_v16  ;;  %v1484_v27 = vpop.permute.xlu0 %1483 }
 0x186   :  { %v1175_v18 = vrot.slane %v1171_v39, 2  ;;  %v1629_v5 = vmul.f32 %v3879_v1, %v1626_v33  ;;  %v3880_v4 = vstv %s3167_s14  ;;  %v3882_v61 = vstv %s3188_s30 }
 0x187   :  { %v1631_v49 = vmul.f32 %v3880_v4, %v1625_v13  ;;  %v3881_v6 = vmov %v3880_v4  ;;  %v1178_v34 = vadd.f32 %v1174_v44, %v1167_v40  ;;  %v1332_v2 = vmul.f32 %v3882_v61, %v1326_v41 }
 0x188   :  { %v1632_v10 = vmul.f32 %v3881_v6, %v1626_v33  ;;  %v1179_v0 = vadd.f32 %v1175_v18, %v1168_v24  ;;  %v3883_v56 = vmov %v3882_v61  ;;  %v3884_v60 = vstv %s3183_s20  ;;  %v1648_v16 = vpop.permute.xlu1 %1647 }
 0x189   :  { %v1333_v36 = vmul.f32 %v3883_v56, %v1327_v57  ;;  %v1329_v29 = vmul.f32 %v3884_v60, %v1326_v41  ;;  %v3885_v38 = vmov %v3884_v60  ;;  %v1488_v13 = vsel %vm1487_vm14, %v1484_v27, %v1486_v59 }
 0x18a   :  { %v1330_v48 = vmul.f32 %v3885_v38, %v1327_v57  ;;  %v1489_v33 = vsel %vm1487_vm14, %v1486_v59, %v1484_v27  ;;  %v1180_v39 = vmul.f32 %v1178_v34, %v2403_v3  ;;  %v1181_v11 = vmul.f32 %v1179_v0, %v2417_v7  ;;  %v1646_v34 = vpop.permute.xlu0 %1645 }
 0x18b   :  { %v1336_v22 = vrot.slane %v1332_v2, 2  ;;  %v1337_v40 = vrot.slane %v1333_v36, 2  ;;  %v1635_v19 = vrot.slane %v1631_v49, 2  ;;  %v1636_v24 = vrot.slane %v1632_v10, 2 }
 0x18c   :  { %v3886_v44 = vstv %s3198_s3  ;;  %v1182_v1 = vadd.f32 %v1180_v39, %v3391_v55  ;;  %v1183_v4 = vadd.f32 %v1181_v11, %v3394_v12  ;;  %v3888_v0 = vstv %s3190_s10  ;;  %v1349_v39 = vpop.permute.xlu1 %1348 }
 0x18d   :  { %v1494_v18 = vmul.f32 %v3886_v44, %v1488_v13  ;;  %v3887_v41 = vmov %v3886_v44  ;;  %v1340_v6 = vadd.f32 %v1336_v22, %v1329_v29  ;;  %v1341_v59 = vadd.f32 %v1337_v40, %v1330_v48 }
 0x18e   :  { %v1495_v57 = vmul.f32 %v3887_v41, %v1489_v33  ;;  %v1491_v61 = vmul.f32 %v3888_v0, %v1488_v13  ;;  %v3889_v2 = vmov %v3888_v0  ;;  %v3890_v49 = vrot.slane %v3242_v47, %v2306_v37  ;;  %v1347_v44 = vpop.permute.xlu0 %1346 }
 0x18f   :  { %v1492_v56 = vmul.f32 %v3889_v2, %v1489_v33  ;;  %v1498_v36 = vrot.slane %v1494_v18, 2  ;;  %v3891_v60 = vrot.slane %v3107_v25, %v2306_v37  ;;  %v1342_v55 = vmul.f32 %v1340_v6, %v2389_v62 }
 0x190   :  { %v1499_v27 = vrot.slane %v1495_v57, 2  ;;  %v1192_v10 = vmul.f32 %v3890_v49, %v1182_v1  ;;  %v1343_v12 = vmul.f32 %v1341_v59, %v2393_v63  ;;  %v1650_v13 = vsel %vm1649_vm15, %v1646_v34, %v1648_v16  ;;  %v1511_v59 = vpop.permute.xlu1 %1510 }
 0x191   :  { %v1193_v38 = vmul.f32 %v3891_v60, %v1183_v4  ;;  %v1502_v29 = vadd.f32 %v1498_v36, %v1491_v61  ;;  %v1651_v33 = vsel %vm1649_vm15, %v1648_v16, %v1646_v34  ;;  %v1344_v22 = vadd.f32 %v1342_v55, %v3417_v15  ;;  %v3892_v4 = vld [vmem:[#allocation16_spill] sm:$0xff] }
 0x192   :  { %v1503_v48 = vadd.f32 %v1499_v27, %v1492_v56  ;;  %v3518_v37 = vadd.f32 %v1192_v10, %v3385_v35  ;;  %v1345_v40 = vadd.f32 %v1343_v12, %v3420_v9  ;;  %v1639_v18 = vadd.f32 %v1635_v19, %v1628_v26 }
 0x193   :  { %v3521_v11 = vadd.f32 %v1193_v38, %v3388_v28  ;;  %v1640_v41 = vadd.f32 %v1636_v24, %v1629_v5  ;;  %v1504_v57 = vmul.f32 %v1502_v29, %v2365_v52  ;;  %v1351_v35 = vsel %vm1350_vm0, %v1347_v44, %v1349_v39 }
 0x194   :  { %v1505_v16 = vmul.f32 %v1503_v48, %v2374_v54  ;;  %v1352_v28 = vsel %vm1350_vm0, %v1349_v39, %v1347_v44  ;;  %v1730_v1 = vstv %s3492_s2  ;;  %v1747_v15 = vsub.s32 6, %v3892_v4  ;;  %v1673_v39 = vpop.permute.xlu1 %1672 }
 0x195   :  { %v1506_v9 = vadd.f32 %v1504_v57, %v3455_v46  ;;  %v3893_v5 = vstv %s3207_s15  ;;  %v1618_v34 = vadd.f32 %v3438_v58, %v3426_v32  ;;  %v1619_v0 = vadd.f32 %v3441_v8, %v3430_v31 }
 0x196   :  { %v1507_v26 = vadd.f32 %v1505_v16, %v3458_v21  ;;  %v1656_v19 = vmul.f32 %v3893_v5, %v1650_v13  ;;  %v3894_v24 = vmov %v3893_v5  ;;  %v3895_v61 = vstv %s3222_s9  ;;  %v1509_v21 = vpop.permute.xlu0 %1508 }
 0x197   :  { %v1657_v6 = vmul.f32 %v3894_v24, %v1651_v33  ;;  %v1357_v46 = vmul.f32 %v3895_v61, %v1351_v35  ;;  %v3896_v2 = vmov %v3895_v61  ;;  %v1641_v36 = vmul.f32 %v1639_v18, %v2328_v42 }
 0x198   :  { %v1358_v56 = vmul.f32 %v3896_v2, %v1352_v28  ;;  %v1642_v27 = vmul.f32 %v1640_v41, %v2332_v43  ;;  %v1513_v49 = vsel %vm1512_vm1, %v1509_v21, %v1511_v59  ;;  %v1514_v32 = vsel %vm1512_vm1, %v1511_v59, %v1509_v21 }
 0x199   :  { %v3897_v58 = vstv %s3209_s16  ;;  %v1361_v60 = vrot.slane %v1357_v46, 2  ;;  %vm1699_vm4 = vcmp.lt.s32.totalorder %v2263_v30, 78  ;;  %v1660_v55 = vrot.slane %v1656_v19, 2 }
 0x19a   :  { %v1354_v31 = vmul.f32 %v3897_v58, %v1351_v35  ;;  %v3898_v8 = vmov %v3897_v58  ;;  %v1362_v38 = vrot.slane %v1358_v56, 2  ;;  %v1661_v42 = vrot.slane %v1657_v6, 2  ;;  %v1671_v5 = vpop.permute.xlu0 %1670 }
 0x19b   :  { %v1355_v10 = vmul.f32 %v3898_v8, %v1352_v28  ;;  %v3899_v12 = vstv %s3230_s18  ;;  %v3901_v44 = vstv %s3200_s6  ;;  %v3903_v24 = vstv %s3224_s25 }
 0x19c   :  { %v1519_v43 = vmul.f32 %v3899_v12, %v1513_v49  ;;  %v3900_v29 = vmov %v3899_v12  ;;  %v1653_v18 = vmul.f32 %v3901_v44, %v1650_v13  ;;  %v3902_v41 = vmov %v3901_v44 }
 0x19d   :  { %v1520_v48 = vmul.f32 %v3900_v29, %v1514_v32  ;;  %v1654_v57 = vmul.f32 %v3902_v41, %v1651_v33  ;;  %v1365_v16 = vadd.f32 %v1361_v60, %v1354_v31  ;;  %v1366_v35 = vadd.f32 %v1362_v38, %v1355_v10  ;;  %v1536_v31 = vpop.permute.xlu1 %1535 }
 0x19e   :  { %v1516_v28 = vmul.f32 %v3903_v24, %v1513_v49  ;;  %v3904_v59 = vmov %v3903_v24  ;;  %v1523_v19 = vrot.slane %v1519_v43, 2  ;;  %v1675_v13 = vsel %vm1674_vm2, %v1671_v5, %v1673_v39  ;;  %v1534_v43 = vpop.permute.xlu0 %1533 }
 0x19f   :  { %v1517_v61 = vmul.f32 %v3904_v59, %v1514_v32  ;;  %v1524_v6 = vrot.slane %v1520_v48, 2  ;;  %v1367_v46 = vmul.f32 %v1365_v16, %v2403_v3  ;;  %v1368_v2 = vmul.f32 %v1366_v35, %v2417_v7 }
 0x1a0   :  { %v1676_v33 = vsel %vm1674_vm2, %v1673_v39, %v1671_v5  ;;  %v1664_v56 = vadd.f32 %v1660_v55, %v1653_v18  ;;  %v1665_v21 = vadd.f32 %v1661_v42, %v1654_v57  ;;  %v1527_v58 = vadd.f32 %v1523_v19, %v1516_v28 }
 0x1a1   :  { %v1528_v49 = vadd.f32 %v1524_v6, %v1517_v61  ;;  %vm1724_vm5 = vcmp.lt.s32.totalorder %v2263_v30, 77  ;;  %v1369_v32 = vadd.f32 %v1367_v46, %v1344_v22  ;;  %v1370_v8 = vadd.f32 %v1368_v2, %v1345_v40  ;;  %v1698_v57 = vpop.permute.xlu1 %1697 }
 0x1a2   :  { %v3905_v10 = vstv %s3246_s24  ;;  %v1643_v29 = vadd.f32 %v1641_v36, %v1618_v34  ;;  %v1644_v48 = vadd.f32 %v1642_v27, %v1619_v0  ;;  %v1529_v44 = vmul.f32 %v1527_v58, %v2389_v62  ;;  %v1696_v24 = vpop.permute.xlu0 %1695 }
 0x1a3   :  { %v1681_v60 = vmul.f32 %v3905_v10, %v1675_v13  ;;  %v3906_v38 = vmov %v3905_v10  ;;  %v1530_v55 = vmul.f32 %v1528_v49, %v2393_v63  ;;  %v3907_v42 = vrot.slane %v3242_v47, %v2336_v45 }
 0x1a4   :  { %v1682_v12 = vmul.f32 %v3906_v38, %v1676_v33  ;;  %v3908_v22 = vrot.slane %v3107_v25, %v2336_v45  ;;  %v1538_v18 = vsel %vm1537_vm3, %v1534_v43, %v1536_v31  ;;  %v1539_v34 = vsel %vm1537_vm3, %v1536_v31, %v1534_v43 }
 0x1a5   :  { %v1379_v39 = vmul.f32 %v3907_v42, %v1369_v32  ;;  %v1666_v0 = vmul.f32 %v1664_v56, %v2357_v50  ;;  %v1667_v36 = vmul.f32 %v1665_v21, %v2361_v51  ;;  %v1531_v27 = vadd.f32 %v1529_v44, %v1506_v9  ;;  %v1723_v32 = vpop.permute.xlu1 %1722 }
 0x1a6   :  { %v1380_v40 = vmul.f32 %v3908_v22, %v1370_v8  ;;  %v1532_v41 = vadd.f32 %v1530_v55, %v1507_v26  ;;  %v1685_v35 = vrot.slane %v1681_v60, 2  ;;  %v1686_v5 = vrot.slane %v1682_v12, 2 }
 0x1a7   :  { %v1381_v45 = vadd.f32 %v1379_v39, %v3518_v37  ;;  %v3909_v28 = vstv %s3265_s12  ;;  %v1700_v51 = vsel %vm1699_vm4, %v1696_v24, %v1698_v57  ;;  %v1701_v9 = vsel %vm1699_vm4, %v1698_v57, %v1696_v24 }
 0x1a8   :  { %v1382_v16 = vadd.f32 %v1380_v40, %v3521_v11  ;;  %v1544_v59 = vmul.f32 %v3909_v28, %v1538_v18  ;;  %v3910_v50 = vmov %v3909_v28  ;;  %v3911_v26 = vstv %s3232_s4 }
 0x1a9   :  { %v1545_v61 = vmul.f32 %v3910_v50, %v1539_v34  ;;  %v1678_v37 = vmul.f32 %v3911_v26, %v1675_v13  ;;  %v3912_v19 = vmov %v3911_v26  ;;  %v3913_v11 = vstv %s3248_s17  ;;  %v1721_v13 = vpop.permute.xlu0 %1720 }
 0x1aa   :  { %v1679_v6 = vmul.f32 %v3912_v19, %v1676_v33  ;;  %v1541_v46 = vmul.f32 %v3913_v11, %v1538_v18  ;;  %v3914_v2 = vmov %v3913_v11  ;;  %v1548_v21 = vrot.slane %v1544_v59, 2 }
 0x1ab   :  { %v1542_v56 = vmul.f32 %v3914_v2, %v1539_v34  ;;  %v1549_v58 = vrot.slane %v1545_v61, 2  ;;  %v1706_v49 = vmul.f32 %v1705_v23, %v1700_v51  ;;  %v1707_v31 = vmul.f32 %v1705_v23, %v1701_v9 }
 0x1ac   :  { %v1689_v8 = vadd.f32 %v1685_v35, %v1678_v37  ;;  %v1690_v10 = vadd.f32 %v1686_v5, %v1679_v6  ;;  %v1703_v60 = vmul.f32 %v1702_v53, %v1700_v51  ;;  %v1704_v38 = vmul.f32 %v1702_v53, %v1701_v9 }
 0x1ad   :  { %v1552_v33 = vadd.f32 %v1548_v21, %v1541_v46  ;;  %v1553_v12 = vadd.f32 %v1549_v58, %v1542_v56  ;;  %v1710_v43 = vrot.slane %v1706_v49, 2  ;;  %v1711_v44 = vrot.slane %v1707_v31, 2 }
 0x1ae   :  { %v1668_v55 = vadd.f32 %v1666_v0, %v1643_v29  ;;  %v1669_v42 = vadd.f32 %v1667_v36, %v1644_v48  ;;  %v1725_v23 = vsel %vm1724_vm5, %v1721_v13, %v1723_v32  ;;  %v1726_v39 = vsel %vm1724_vm5, %v1723_v32, %v1721_v13 }
 0x1af   :  { %v1554_v22 = vmul.f32 %v1552_v33, %v2403_v3  ;;  %v1555_v53 = vmul.f32 %v1553_v12, %v2417_v7  ;;  %v1714_v40 = vadd.f32 %v1710_v43, %v1703_v60  ;;  %v1715_v18 = vadd.f32 %v1711_v44, %v1704_v38 }
 0x1b0   :  { %v1691_v34 = vmul.f32 %v1689_v8, %v2365_v52  ;;  %v1692_v57 = vmul.f32 %v1690_v10, %v2374_v54  ;;  %v1731_v35 = vmul.f32 %v1730_v1, %v1725_v23  ;;  %v1732_v29 = vmul.f32 %v1730_v1, %v1726_v39 }
 0x1b1   :  { %v1556_v48 = vadd.f32 %v1554_v22, %v1531_v27  ;;  %v1557_v0 = vadd.f32 %v1555_v53, %v1532_v41  ;;  %v1728_v36 = vmul.f32 %v1727_v20, %v1725_v23  ;;  %v1729_v30 = vmul.f32 %v1727_v20, %v1726_v39 }
 0x1b2   :  { %v1716_v5 = vmul.f32 %v1714_v40, %v2389_v62  ;;  %v1717_v24 = vmul.f32 %v1715_v18, %v2393_v63  ;;  %v1735_v28 = vrot.slane %v1731_v35, 2  ;;  %v1736_v59 = vrot.slane %v1732_v29, 2 }
 0x1b3   :  { %v3915_v52 = vrot.slane %v3242_v47, %v3868_v14  ;;  %v1567_v1 = vmul.f32 %v1565_v17, %v1557_v0  ;;  %v1693_v27 = vadd.f32 %v1691_v34, %v1668_v55  ;;  %v1694_v41 = vadd.f32 %v1692_v57, %v1669_v42 }
 0x1b4   :  { %v1739_v50 = vadd.f32 %v1735_v28, %v1728_v36  ;;  %v1740_v61 = vadd.f32 %v1736_v59, %v1729_v30  ;;  %v1748_v62 = vrot.slane %v3242_v47, %v1747_v15  ;;  %v1752_v63 = vrot.slane %v3107_v25, %v1747_v15 }
 0x1b5   :  { %v1566_v54 = vmul.f32 %v3915_v52, %v1556_v48  ;;  %v1569_v20 = vadd.f32 %v1567_v1, %v1382_v16  ;;  %v1718_v9 = vadd.f32 %v1716_v5, %v1693_v27  ;;  %v1719_v26 = vadd.f32 %v1717_v24, %v1694_v41 }
 0x1b6   :  { %v1741_v37 = vmul.f32 %v1739_v50, %v2403_v3  ;;  %v1742_v14 = vmul.f32 %v1740_v61, %v2417_v7 }
 0x1b7   :  { %v1568_v51 = vadd.f32 %v1566_v54, %v1381_v45 }
 0x1b8   :  { %v1743_v17 = vadd.f32 %v1741_v37, %v1718_v9  ;;  %v1744_v19 = vadd.f32 %v1742_v14, %v1719_v26 }
 0x1ba   :  { %v1753_v6 = vmul.f32 %v1748_v62, %v1743_v17  ;;  %v1754_v11 = vmul.f32 %v1752_v63, %v1744_v19 }
 0x1bc   :  { %v1755_v45 = vadd.f32 %v1753_v6, %v1568_v51  ;;  %v1756_v16 = vadd.f32 %v1754_v11, %v1569_v20 }
 0x1be   :  { %v1895_v46 = vmul.f32 -1.442695, %v1755_v45  ;;  %v1896_v2 = vmul.f32 -1.442695, %v1756_v16 }
 0x1c0   :  { %1957 = vpow2.f32 %v1895_v46 }
 0x1c1   :  { %1959 = vpow2.f32 %v1896_v2 }
 0x1ca   :  { %v1958_v47 = vpop.eup %1957 }
 0x1cb   :  { %v1960_v4 = vpop.eup %1959  ;;  %v1763_v56 = vadd.f32 1.0, %v1958_v47 }
 0x1cc   :  { %v1764_v25 = vadd.f32 1.0, %v1960_v4 }
 0x1cd   :  { %1961 = vrcp.f32 %v1763_v56 }
 0x1ce   :  { %1963 = vrcp.f32 %v1764_v25 }
 0x1d7   :  { %v1962_v3 = vpop.eup %1961 }
 0x1d8   :  { %v1964_v7 = vpop.eup %1963 }
 0x1d9   :  { %v1771_v15 = vcombine.low %v1962_v3, %v1964_v7 }
 0x1db   :  { %1897 = vst.sshfl [vmem:[#allocation11] sm:$0x33 pattern:$0x76325410] %v1771_v15 }
 0x1dc   :  { %2032 = shalt.err (!%p2029_p9)
}
 0x1dd   :  { %s3916_s0 = sld [smem:[#allocation43_spill]] }
 0x1e3   :  { %s2033_s7 = scalar_lea.hbm %s3916_s0, 64 }
 0x1e4   :  { %p2034_p10 = scmp.ne.s32.totalorder %s3916_s0, %s2033_s7  ;;  %p2037_p11 = scmp.lt.u32.totalorder %s2033_s7, %s3916_s0 }
 0x1e6   :  { %p2039_p12 = pnand %p2037_p11, %p2034_p10 }
 0x1e8   :  { %2042 = shalt.err (!%p2039_p12)
}
 0x1e9   :  { %1790 = dma.vmem_to_hbm [thread:$0]  %s1788_s28, 64, %s3916_s0, [#allocation6]  }
 0x1ea   :  { %2049 = dma.done.wait [#allocation6], 64  }
 0x1eb   :  { %2050 = vsyncadd [#allocation6], 4294967232 }
 0x1ec   :  { %1794 = vsyncpa [#allocation5], 1 }
 0x1ed   :  { %1795 = vsyncpa [#allocation10], 1 }
 0x1ee   :  { %1796 = vsyncpa [#allocation6], 1 }
 0x1ef   :  { %1797 = vsyncpa [#allocation7], 1 }

</bundles_post_ra>
